<compile_context>
chip_gen: v5e
topology: v5e:2x2
jax: 0.10.0
libtpu: 0.0.40
codegen_flags: <defaults>
</compile_context>

<pallas_src>
import functools

import jax
import jax.numpy as jnp
from jax import lax
from jax.experimental import pallas as pl
from jax.experimental.pallas import tpu as pltpu


# ---------------------------------------------------------------------------
# In-kernel helpers
# ---------------------------------------------------------------------------

def _layernorm(x, gamma, beta, eps=1e-6):
    """f32 LayerNorm matching nn.LayerNorm(d_model, eps=1e-06)."""
    mean = jnp.mean(x, axis=-1, keepdims=True)
    var = jnp.mean(jnp.square(x - mean), axis=-1, keepdims=True)
    return (x - mean) * lax.rsqrt(var + eps) * gamma + beta


# ---------------------------------------------------------------------------
# Pallas kernels
# ---------------------------------------------------------------------------

def layernorm_kernel(x_ref, g_ref, b_ref, o_ref):
    x = x_ref[0].astype(jnp.float32)                     # (L, D)
    o_ref[0] = _layernorm(x, g_ref[...], b_ref[...]).astype(o_ref.dtype)


def fused_layer_kernel(q_ref, kv_ref,
                       wq_ref, wk_ref, wv_ref, wfc_ref, g1_ref, bt1_ref,
                       w1_ref, bb1_ref, w2_ref, bb2_ref, g2_ref, bt2_ref,
                       out_ref, *, n_head, d_k, d_v, kv_tile):
    """Fused MultiHeadAttention + Add&Norm + PositionwiseFFN + Add&Norm for one
    (batch element, q-tile) grid step.

    q_ref : (1, TQ, D)  query-side activations (also the residual)
    kv_ref: (1, Lk, D)  key/value-side activations (== q side for self-attn)
    wq/wk : (D, H*d_k) bf16 (wq pre-scaled by 1/sqrt(d_k)), wv: (D, H*d_v) bf16
    wfc   : (H*d_v, D) bf16 (row blocks in head order == torch concat order)
    """
    H = n_head
    Lk = kv_ref.shape[1]
    n_kv = Lk // kv_tile

    xq = q_ref[0].astype(jnp.float32)                    # (TQ, D) f32 residual

    # Packed, lane-dense Q projection: single (TQ, D) @ (D, H*d_k) matmul.
    # (1/sqrt(d_k) already folded into wq host-side.)
    q_all = jnp.dot(xq.astype(jnp.bfloat16), wq_ref[...],
                    preferred_element_type=jnp.float32).astype(jnp.bfloat16)

    # Flash-style pass over KV chunks (static unroll) with online softmax.
    # K/V are projected once per chunk with packed lane-dense matmuls and the
    # (TQ, kv_tile) score tile is the only score intermediate alive at a time.
    m = [None] * H
    l = [None] * H
    acc = [None] * H
    for c in range(n_kv):
        xkv = kv_ref[0, c * kv_tile:(c + 1) * kv_tile, :].astype(jnp.bfloat16)
        k_all = jnp.dot(xkv, wk_ref[...],
                        preferred_element_type=jnp.float32).astype(jnp.bfloat16)
        v_all = jnp.dot(xkv, wv_ref[...],
                        preferred_element_type=jnp.float32).astype(jnp.bfloat16)
        for h in range(H):
            q_h = q_all[:, h * d_k:(h + 1) * d_k]        # (TQ, d_k)
            k_h = k_all[:, h * d_k:(h + 1) * d_k]        # (kv_tile, d_k)
            v_h = v_all[:, h * d_v:(h + 1) * d_v]        # (kv_tile, d_v)
            s = lax.dot_general(q_h, k_h, (((1,), (1,)), ((), ())),
                                preferred_element_type=jnp.float32)  # (TQ, kv)
            s_max = jnp.max(s, axis=-1, keepdims=True)
            if c == 0:
                m_new = s_max
                p = jnp.exp(s - m_new)
                l[h] = jnp.sum(p, axis=-1, keepdims=True)
                acc[h] = jnp.dot(p.astype(jnp.bfloat16), v_h,
                                 preferred_element_type=jnp.float32)
            else:
                m_new = jnp.maximum(m[h], s_max)
                alpha = jnp.exp(m[h] - m_new)
                p = jnp.exp(s - m_new)
                l[h] = alpha * l[h] + jnp.sum(p, axis=-1, keepdims=True)
                acc[h] = alpha * acc[h] + jnp.dot(p.astype(jnp.bfloat16), v_h,
                                                  preferred_element_type=jnp.float32)
            m[h] = m_new

    # Output projection + residual.  Accumulated per head to avoid a
    # lane-merging concat/reshape at small d_v (no (H, TQ, D) f32 intermediate,
    # no H-way final reduction).  TODO(synk): at d_v >= 128, use one packed
    # (TQ, H*d_v) @ (H*d_v, D) matmul instead.
    o = xq
    for h in range(H):
        ctx_h = acc[h] * pl.reciprocal(l[h], approx=True)        # (TQ, d_v)
        o = o + jnp.dot(ctx_h.astype(jnp.bfloat16),
                        wfc_ref[h * d_v:(h + 1) * d_v, :],
                        preferred_element_type=jnp.float32)
    x1 = _layernorm(o, g1_ref[...], bt1_ref[...])                 # (TQ, D)

    # Position-wise feed-forward: relu(x@W1 + b1)@W2 + b2, residual, LayerNorm.
    hdn = jnp.dot(x1.astype(jnp.bfloat16), w1_ref[...],
                  preferred_element_type=jnp.float32) + bb1_ref[...]
    hdn = jnp.maximum(hdn, 0.0)
    y = jnp.dot(hdn.astype(jnp.bfloat16), w2_ref[...],
                preferred_element_type=jnp.float32) + bb2_ref[...]
    y = _layernorm(y + x1, g2_ref[...], bt2_ref[...])
    out_ref[0] = y.astype(out_ref.dtype)


# ---------------------------------------------------------------------------
# pallas_call plumbing
# ---------------------------------------------------------------------------

def _probe_copy_kernel(x_ref, o_ref):
    o_ref[...] = x_ref[...] + 1.0


@functools.lru_cache(maxsize=None)
def _weight_pipeline_mode():
    """pl.Buffered(1) for grid-invariant weight blocks if this Pallas/Mosaic
    build supports it (halves weight VMEM footprint); otherwise None (default
    double buffering)."""
    try:
        mode = pl.Buffered(1)
        with jax.ensure_compile_time_eval():
            x = jnp.zeros((8, 128), jnp.float32)
            fn = pl.pallas_call(
                _probe_copy_kernel,
                out_shape=jax.ShapeDtypeStruct((8, 128), jnp.float32),
                grid=(1,),
                in_specs=[pl.BlockSpec((8, 128), lambda i: (0, 0),
                                       pipeline_mode=mode)],
                out_specs=pl.BlockSpec((8, 128), lambda i: (0, 0)),
            )
            jax.block_until_ready(fn(x))
        return mode
    except Exception:  # noqa: BLE001 - any failure -> safe fallback
        return None


def _weight_spec(shape, mode):
    """Block covering the whole (grid-invariant) array; single-buffered when
    supported since its index_map is constant."""
    ndim = len(shape)
    if mode is None:
        return pl.BlockSpec(shape, lambda *_: (0,) * ndim)
    return pl.BlockSpec(shape, lambda *_: (0,) * ndim, pipeline_mode=mode)


def _choose_q_tile(L):
    """Prefer tq == L (single q iteration -> K/V projection computed once per
    batch element); otherwise the largest 16-multiple (bf16 sublane packing)
    divisor <= 256, then 8-multiple, then L itself (full-dim block)."""
    if L <= 256:
        return L
    for t in range(256, 15, -16):
        if L % t == 0:
            return t
    for t in range(256, 7, -8):
        if L % t == 0:
            return t
    return L


def _choose_kv_tile(L):
    """KV chunk for the in-kernel online-softmax pass."""
    if L <= 512:
        return L
    for t in range(512, 7, -8):
        if L % t == 0:
            return t
    return L


def _vmem_limit_bytes(weight_args, tq, Lk, kv_tile, D, d_inner,
                      n_head, d_k, d_v):
    """Scoped-VMEM limit sized from the real footprint, clamped to
    [32 MiB, 64 MiB] so it is valid on every chip (v7x physical = 64 MiB)."""
    w = sum(int(a.size) * a.dtype.itemsize for a in weight_args)
    act = (2 * tq * D + 2 * Lk * D + 2 * tq * D) * 4           # dbl-buffered tiles
    inter = (tq * n_head * (d_k + 2 * d_v)                     # packed Q + acc
             + kv_tile * n_head * (d_k + d_v)                  # packed K/V chunk
             + 3 * tq * kv_tile                                # scores / exp
             + 4 * tq * max(D, d_inner)) * 4                   # FFN / LN temps
    est = 2 * w + act + inter + (2 << 20)                      # compiler margin
    return int(min(64 << 20, max(32 << 20, 2 * est)))


def layernorm(x, gamma, beta):
    B, L, D = x.shape
    return pl.pallas_call(
        layernorm_kernel,
        out_shape=jax.ShapeDtypeStruct((B, L, D), x.dtype),
        grid_spec=pltpu.PrefetchScalarGridSpec(
            num_scalar_prefetch=0, grid=(B,),
            in_specs=[pl.BlockSpec((1, L, D), lambda b: (b, 0, 0)),
                      pl.BlockSpec((1, D), lambda b: (0, 0)),
                      pl.BlockSpec((1, D), lambda b: (0, 0))],
            out_specs=pl.BlockSpec((1, L, D), lambda b: (b, 0, 0))),
        compiler_params=pltpu.CompilerParams(dimension_semantics=("parallel",)),
    )(x, gamma, beta)


def fused_attn_ffn_layer(q_in, kv_in, p, *, n_head, d_k, d_v):
    """One {Slf,Cross}AttnLayer: MHA(q_in, kv_in, kv_in) + FFN, fully fused."""
    B, Lq, D = q_in.shape
    Lk = kv_in.shape[1]
    d_inner = p["w1"].shape[1]
    tq = _choose_q_tile(Lq)
    kv_tile = _choose_kv_tile(Lk)
    grid = (B, Lq // tq)

    act_spec = pl.BlockSpec((1, tq, D), lambda b, i: (b, i, 0))
    kv_spec = pl.BlockSpec((1, Lk, D), lambda b, i: (b, 0, 0))
    out_spec = pl.BlockSpec((1, tq, D), lambda b, i: (b, i, 0))

    weight_names = ("wq", "wk", "wv", "wfc", "ln1_g", "ln1_b",
                    "w1", "b1", "w2", "b2", "ln2_g", "ln2_b")
    weight_args = tuple(p[name] for name in weight_names)
    mode = _weight_pipeline_mode()
    weight_specs = [_weight_spec(w.shape, mode) for w in weight_args]

    vmem_limit = _vmem_limit_bytes(weight_args, tq, Lk, kv_tile, D, d_inner,
                                   n_head, d_k, d_v)

    kernel = functools.partial(fused_layer_kernel, n_head=n_head,
                               d_k=d_k, d_v=d_v, kv_tile=kv_tile)
    return pl.pallas_call(
        kernel,
        out_shape=jax.ShapeDtypeStruct((B, Lq, D), q_in.dtype),
        grid_spec=pltpu.PrefetchScalarGridSpec(
            num_scalar_prefetch=0, grid=grid,
            in_specs=[act_spec, kv_spec] + weight_specs,
            out_specs=out_spec),
        compiler_params=pltpu.CompilerParams(
            dimension_semantics=("parallel", "parallel"),
            vmem_limit_bytes=vmem_limit),
    )(q_in, kv_in, *weight_args)


# ---------------------------------------------------------------------------
# Parameter construction (deterministic, synthetic)
# ---------------------------------------------------------------------------

def init_params(key, d_model, d_inner, d_k, d_v, n_head, n_layers):
    def normal(k, shape, scale=0.05):
        return (scale * jax.random.normal(k, shape)).astype(jnp.float32)

    keys = iter(jax.random.split(key, 16 * n_layers + 1))
    inv_scale = 1.0 / (d_k ** 0.5)          # folded into wq (one-time, host-side)

    def sublayer():
        return dict(
            # Packed lane-dense projection weights (bf16 MXU operands).
            wq=(normal(next(keys), (d_model, n_head * d_k)) * inv_scale
                ).astype(jnp.bfloat16),
            wk=normal(next(keys), (d_model, n_head * d_k)).astype(jnp.bfloat16),
            wv=normal(next(keys), (d_model, n_head * d_v)).astype(jnp.bfloat16),
            wfc=normal(next(keys), (n_head * d_v, d_model)).astype(jnp.bfloat16),
            ln1_g=jnp.ones((1, d_model), jnp.float32),
            ln1_b=jnp.zeros((1, d_model), jnp.float32),
            w1=normal(next(keys), (d_model, d_inner)).astype(jnp.bfloat16),
            b1=normal(next(keys), (1, d_inner)),
            w2=normal(next(keys), (d_inner, d_model)).astype(jnp.bfloat16),
            b2=normal(next(keys), (1, d_model)),
            ln2_g=jnp.ones((1, d_model), jnp.float32),
            ln2_b=jnp.zeros((1, d_model), jnp.float32),
        )

    layers = [dict(slf=sublayer(), cross=sublayer()) for _ in range(n_layers)]
    return dict(
        layers=layers,
        ln_g=jnp.ones((1, d_model), jnp.float32),
        ln_b=jnp.zeros((1, d_model), jnp.float32),
    )


# ---------------------------------------------------------------------------
# CrossAttn forward (return_attns=False path; attention maps are not built)
# ---------------------------------------------------------------------------

def cross_attn_forward(emb_feat, dec_feat, params, *, n_head, d_k, d_v):
    # dec_feat = self.layer_norm(dec_feat)  (computed once, reused by all layers)
    dec_feat = layernorm(dec_feat, params["ln_g"], params["ln_b"])
    for lp in params["layers"]:
        # SlfAttnLayer: MHA(q=k=v=emb_feat) + FFN (fused)
        emb_feat = fused_attn_ffn_layer(emb_feat, emb_feat, lp["slf"],
                                        n_head=n_head, d_k=d_k, d_v=d_v)
        # CrossAttnLayer: MHA(q=slf output, k=v=dec_feat) + FFN (fused)
        emb_feat = fused_attn_ffn_layer(emb_feat, dec_feat, lp["cross"],
                                        n_head=n_head, d_k=d_k, d_v=d_v)
    return emb_feat


# ---------------------------------------------------------------------------
# Demo
# ---------------------------------------------------------------------------

if __name__ == "__main__":
    # Small demo shapes consistent with the module.  For production configs,
    # make d_model / H*d_k / d_inner multiples of 128 so stores are lane-dense.
    B, L_EMB, L_DEC = 2, 8, 8
    D_MODEL, D_INNER = 32, 64
    N_HEAD, D_K, D_V = 4, 8, 8
    N_LAYERS = 2

    key = jax.random.PRNGKey(0)
    k_emb, k_dec, k_par = jax.random.split(key, 3)
    emb_feat = jax.random.normal(k_emb, (B, L_EMB, D_MODEL), jnp.float32)
    dec_feat = jax.random.normal(k_dec, (B, L_DEC, D_MODEL), jnp.float32)

    params = init_params(k_par, D_MODEL, D_INNER, D_K, D_V, N_HEAD, N_LAYERS)

    _weight_pipeline_mode()   # probe single-buffered weight support eagerly

    fwd = jax.jit(functools.partial(cross_attn_forward,
                                    n_head=N_HEAD, d_k=D_K, d_v=D_V))
    out = jax.block_until_ready(fwd(emb_feat, dec_feat, params))
    assert out.shape == (B, L_EMB, D_MODEL)
    assert bool(jnp.all(jnp.isfinite(out)))
    print("KERNEL_OK")
</pallas_src>

<mosaic_0001>
module attributes {stable_mosaic.version = 11 : i64} {
  func.func @_probe_copy_kernel(%arg0: i32, %arg1: memref<8x128xf32, #tpu.memory_space<vmem>>, %arg2: memref<8x128xf32, #tpu.memory_space<vmem>>) attributes {dimension_semantics = [#tpu.dimension_semantics<arbitrary>], iteration_bounds = array<i64: 1>, scalar_prefetch = 0 : i64, scratch_operands = 0 : i64, tpu.core_type = #tpu.core_type<tc>, window_params = [{pipeline_mode = #tpu.pipeline_mode<synchronous>, transform_indices = @transform_0, window_bounds = array<i64: 8, 128>}, {pipeline_mode = #tpu.pipeline_mode<synchronous>, transform_indices = @transform_1, window_bounds = array<i64: 8, 128>}]} {
    %c0 = arith.constant 0 : index
    %c0_0 = arith.constant 0 : index
    %0 = vector.load %arg1[%c0, %c0_0] : memref<8x128xf32, #tpu.memory_space<vmem>>, vector<8x128xf32>
    %cst = arith.constant 1.000000e+00 : f32
    %1 = vector.broadcast %cst : f32 to vector<8x128xf32>
    %2 = arith.addf %0, %1 : vector<8x128xf32>
    %c0_1 = arith.constant 0 : index
    %c0_2 = arith.constant 0 : index
    %3 = vector.load %arg2[%c0_1, %c0_2] : memref<8x128xf32, #tpu.memory_space<vmem>>, vector<8x128xf32>
    tpu.vector_store %arg2[%c0_1, %c0_2], %2 {strides = array<i32>} : memref<8x128xf32, #tpu.memory_space<vmem>>, vector<8x128xf32>,
    return
  }
  func.func @transform_0(%arg0: i32) -> (i32, i32) {
    %c0_i32 = arith.constant 0 : i32
    %c0_i32_0 = arith.constant 0 : i32
    %c0_i32_1 = arith.constant 0 : i32
    return %c0_i32, %c0_i32_0 : i32, i32
  }
  func.func @transform_1(%arg0: i32) -> (i32, i32) {
    %c0_i32 = arith.constant 0 : i32
    %c0_i32_0 = arith.constant 0 : i32
    %c0_i32_1 = arith.constant 0 : i32
    return %c0_i32, %c0_i32_0 : i32, i32
  }
}

module attributes {stable_mosaic.version = 11 : i64} {
  func.func @fused_layer_kernel(%arg0: i32, %arg1: i32, %arg2: memref<1x8x32xf32, #tpu.memory_space<vmem>>, %arg3: memref<1x8x32xf32, #tpu.memory_space<vmem>>, %arg4: memref<32x32xbf16, #tpu.memory_space<vmem>>, %arg5: memref<32x32xbf16, #tpu.memory_space<vmem>>, %arg6: memref<32x32xbf16, #tpu.memory_space<vmem>>, %arg7: memref<32x32xbf16, #tpu.memory_space<vmem>>, %arg8: memref<1x32xf32, #tpu.memory_space<vmem>>, %arg9: memref<1x32xf32, #tpu.memory_space<vmem>>, %arg10: memref<32x64xbf16, #tpu.memory_space<vmem>>, %arg11: memref<1x64xf32, #tpu.memory_space<vmem>>, %arg12: memref<64x32xbf16, #tpu.memory_space<vmem>>, %arg13: memref<1x32xf32, #tpu.memory_space<vmem>>, %arg14: memref<1x32xf32, #tpu.memory_space<vmem>>, %arg15: memref<1x32xf32, #tpu.memory_space<vmem>>, %arg16: memref<1x8x32xf32, #tpu.memory_space<vmem>>) attributes {dimension_semantics = [#tpu.dimension_semantics<parallel>, #tpu.dimension_semantics<parallel>], iteration_bounds = array<i64: 2, 1>, scalar_prefetch = 0 : i64, scratch_operands = 0 : i64, tpu.core_type = #tpu.core_type<tc>, window_params = [{transform_indices = @transform_0, window_bounds = array<i64: 1, 8, 32>}, {transform_indices = @transform_1, window_bounds = array<i64: 1, 8, 32>}, {pipeline_mode = #tpu.pipeline_mode<synchronous>, transform_indices = @transform_2, window_bounds = array<i64: 32, 32>}, {pipeline_mode = #tpu.pipeline_mode<synchronous>, transform_indices = @transform_3, window_bounds = array<i64: 32, 32>}, {pipeline_mode = #tpu.pipeline_mode<synchronous>, transform_indices = @transform_4, window_bounds = array<i64: 32, 32>}, {pipeline_mode = #tpu.pipeline_mode<synchronous>, transform_indices = @transform_5, window_bounds = array<i64: 32, 32>}, {pipeline_mode = #tpu.pipeline_mode<synchronous>, transform_indices = @transform_6, window_bounds = array<i64: 1, 32>}, {pipeline_mode = #tpu.pipeline_mode<synchronous>, transform_indices = @transform_7, window_bounds = array<i64: 1, 32>}, {pipeline_mode = #tpu.pipeline_mode<synchronous>, transform_indices = @transform_8, window_bounds = array<i64: 32, 64>}, {pipeline_mode = #tpu.pipeline_mode<synchronous>, transform_indices = @transform_9, window_bounds = array<i64: 1, 64>}, {pipeline_mode = #tpu.pipeline_mode<synchronous>, transform_indices = @transform_10, window_bounds = array<i64: 64, 32>}, {pipeline_mode = #tpu.pipeline_mode<synchronous>, transform_indices = @transform_11, window_bounds = array<i64: 1, 32>}, {pipeline_mode = #tpu.pipeline_mode<synchronous>, transform_indices = @transform_12, window_bounds = array<i64: 1, 32>}, {pipeline_mode = #tpu.pipeline_mode<synchronous>, transform_indices = @transform_13, window_bounds = array<i64: 1, 32>}, {transform_indices = @transform_14, window_bounds = array<i64: 1, 8, 32>}]} {
    %c0 = arith.constant 0 : index
    %c0_0 = arith.constant 0 : index
    %c0_1 = arith.constant 0 : index
    %0 = vector.load %arg2[%c0, %c0_0, %c0_1] : memref<1x8x32xf32, #tpu.memory_space<vmem>>, vector<1x8x32xf32>
    %1 = vector.shape_cast %0 : vector<1x8x32xf32> to vector<8x32xf32>
    %2 = arith.truncf %1 : vector<8x32xf32> to vector<8x32xbf16>
    %c0_2 = arith.constant 0 : index
    %c0_3 = arith.constant 0 : index
    %3 = vector.load %arg4[%c0_2, %c0_3] : memref<32x32xbf16, #tpu.memory_space<vmem>>, vector<32x32xbf16>
    %cst = arith.constant dense<0.000000e+00> : vector<8x32xf32>
    %4 = tpu.matmul %2, %3, %cst {dimension_numbers = #tpu.dot_dimension_numbers<[1], [0], [0], [1], [0, 0, 1, 1], [], []>} : vector<8x32xbf16>, vector<32x32xbf16>, vector<8x32xf32> -> vector<8x32xf32>
    %5 = arith.truncf %4 : vector<8x32xf32> to vector<8x32xbf16>
    %c0_4 = arith.constant 0 : index
    %c0_5 = arith.constant 0 : index
    %c0_6 = arith.constant 0 : index
    %6 = vector.load %arg3[%c0_4, %c0_5, %c0_6] : memref<1x8x32xf32, #tpu.memory_space<vmem>>, vector<1x8x32xf32>
    %7 = vector.shape_cast %6 : vector<1x8x32xf32> to vector<8x32xf32>
    %8 = arith.truncf %7 : vector<8x32xf32> to vector<8x32xbf16>
    %c0_7 = arith.constant 0 : index
    %c0_8 = arith.constant 0 : index
    %9 = vector.load %arg5[%c0_7, %c0_8] : memref<32x32xbf16, #tpu.memory_space<vmem>>, vector<32x32xbf16>
    %cst_9 = arith.constant dense<0.000000e+00> : vector<8x32xf32>
    %10 = tpu.matmul %8, %9, %cst_9 {dimension_numbers = #tpu.dot_dimension_numbers<[1], [0], [0], [1], [0, 0, 1, 1], [], []>} : vector<8x32xbf16>, vector<32x32xbf16>, vector<8x32xf32> -> vector<8x32xf32>
    %11 = arith.truncf %10 : vector<8x32xf32> to vector<8x32xbf16>
    %c0_10 = arith.constant 0 : index
    %c0_11 = arith.constant 0 : index
    %12 = vector.load %arg6[%c0_10, %c0_11] : memref<32x32xbf16, #tpu.memory_space<vmem>>, vector<32x32xbf16>
    %cst_12 = arith.constant dense<0.000000e+00> : vector<8x32xf32>
    %13 = tpu.matmul %8, %12, %cst_12 {dimension_numbers = #tpu.dot_dimension_numbers<[1], [0], [0], [1], [0, 0, 1, 1], [], []>} : vector<8x32xbf16>, vector<32x32xbf16>, vector<8x32xf32> -> vector<8x32xf32>
    %14 = arith.truncf %13 : vector<8x32xf32> to vector<8x32xbf16>
    %15 = vector.extract_strided_slice %5 {offsets = [0, 0], sizes = [8, 8], strides = [1, 1]} : vector<8x32xbf16> to vector<8x8xbf16>
    %16 = vector.extract_strided_slice %11 {offsets = [0, 0], sizes = [8, 8], strides = [1, 1]} : vector<8x32xbf16> to vector<8x8xbf16>
    %17 = vector.extract_strided_slice %14 {offsets = [0, 0], sizes = [8, 8], strides = [1, 1]} : vector<8x32xbf16> to vector<8x8xbf16>
    %cst_13 = arith.constant dense<0.000000e+00> : vector<8x8xf32>
    %18 = tpu.matmul %15, %16, %cst_13 {dimension_numbers = #tpu.dot_dimension_numbers<[1], [1], [0], [0], [0, 0, 1, 0], [], []>} : vector<8x8xbf16>, vector<8x8xbf16>, vector<8x8xf32> -> vector<8x8xf32>
    %cst_14 = arith.constant dense<0xFF800000> : vector<8xf32>
    %19 = vector.multi_reduction <maximumf>, %18, %cst_14 [1] : vector<8x8xf32> to vector<8xf32>
    %20 = vector.shape_cast %19 : vector<8xf32> to vector<8x1xf32>
    %21 = vector.broadcast %20 : vector<8x1xf32> to vector<8x8xf32>
    %22 = arith.subf %18, %21 : vector<8x8xf32>
    %23 = math.exp %22 : vector<8x8xf32>
    %cst_15 = arith.constant dense<0.000000e+00> : vector<8xf32>
    %24 = vector.multi_reduction <add>, %23, %cst_15 [1] : vector<8x8xf32> to vector<8xf32>
    %25 = vector.shape_cast %24 : vector<8xf32> to vector<8x1xf32>
    %26 = arith.truncf %23 : vector<8x8xf32> to vector<8x8xbf16>
    %cst_16 = arith.constant dense<0.000000e+00> : vector<8x8xf32>
    %27 = tpu.matmul %26, %17, %cst_16 {dimension_numbers = #tpu.dot_dimension_numbers<[1], [0], [0], [1], [0, 0, 1, 1], [], []>} : vector<8x8xbf16>, vector<8x8xbf16>, vector<8x8xf32> -> vector<8x8xf32>
    %28 = vector.extract_strided_slice %5 {offsets = [0, 8], sizes = [8, 8], strides = [1, 1]} : vector<8x32xbf16> to vector<8x8xbf16>
    %29 = vector.extract_strided_slice %11 {offsets = [0, 8], sizes = [8, 8], strides = [1, 1]} : vector<8x32xbf16> to vector<8x8xbf16>
    %30 = vector.extract_strided_slice %14 {offsets = [0, 8], sizes = [8, 8], strides = [1, 1]} : vector<8x32xbf16> to vector<8x8xbf16>
    %cst_17 = arith.constant dense<0.000000e+00> : vector<8x8xf32>
    %31 = tpu.matmul %28, %29, %cst_17 {dimension_numbers = #tpu.dot_dimension_numbers<[1], [1], [0], [0], [0, 0, 1, 0], [], []>} : vector<8x8xbf16>, vector<8x8xbf16>, vector<8x8xf32> -> vector<8x8xf32>
    %cst_18 = arith.constant dense<0xFF800000> : vector<8xf32>
    %32 = vector.multi_reduction <maximumf>, %31, %cst_18 [1] : vector<8x8xf32> to vector<8xf32>
    %33 = vector.shape_cast %32 : vector<8xf32> to vector<8x1xf32>
    %34 = vector.broadcast %33 : vector<8x1xf32> to vector<8x8xf32>
    %35 = arith.subf %31, %34 : vector<8x8xf32>
    %36 = math.exp %35 : vector<8x8xf32>
    %cst_19 = arith.constant dense<0.000000e+00> : vector<8xf32>
    %37 = vector.multi_reduction <add>, %36, %cst_19 [1] : vector<8x8xf32> to vector<8xf32>
    %38 = vector.shape_cast %37 : vector<8xf32> to vector<8x1xf32>
    %39 = arith.truncf %36 : vector<8x8xf32> to vector<8x8xbf16>
    %cst_20 = arith.constant dense<0.000000e+00> : vector<8x8xf32>
    %40 = tpu.matmul %39, %30, %cst_20 {dimension_numbers = #tpu.dot_dimension_numbers<[1], [0], [0], [1], [0, 0, 1, 1], [], []>} : vector<8x8xbf16>, vector<8x8xbf16>, vector<8x8xf32> -> vector<8x8xf32>
    %41 = vector.extract_strided_slice %5 {offsets = [0, 16], sizes = [8, 8], strides = [1, 1]} : vector<8x32xbf16> to vector<8x8xbf16>
    %42 = vector.extract_strided_slice %11 {offsets = [0, 16], sizes = [8, 8], strides = [1, 1]} : vector<8x32xbf16> to vector<8x8xbf16>
    %43 = vector.extract_strided_slice %14 {offsets = [0, 16], sizes = [8, 8], strides = [1, 1]} : vector<8x32xbf16> to vector<8x8xbf16>
    %cst_21 = arith.constant dense<0.000000e+00> : vector<8x8xf32>
    %44 = tpu.matmul %41, %42, %cst_21 {dimension_numbers = #tpu.dot_dimension_numbers<[1], [1], [0], [0], [0, 0, 1, 0], [], []>} : vector<8x8xbf16>, vector<8x8xbf16>, vector<8x8xf32> -> vector<8x8xf32>
    %cst_22 = arith.constant dense<0xFF800000> : vector<8xf32>
    %45 = vector.multi_reduction <maximumf>, %44, %cst_22 [1] : vector<8x8xf32> to vector<8xf32>
    %46 = vector.shape_cast %45 : vector<8xf32> to vector<8x1xf32>
    %47 = vector.broadcast %46 : vector<8x1xf32> to vector<8x8xf32>
    %48 = arith.subf %44, %47 : vector<8x8xf32>
    %49 = math.exp %48 : vector<8x8xf32>
    %cst_23 = arith.constant dense<0.000000e+00> : vector<8xf32>
    %50 = vector.multi_reduction <add>, %49, %cst_23 [1] : vector<8x8xf32> to vector<8xf32>
    %51 = vector.shape_cast %50 : vector<8xf32> to vector<8x1xf32>
    %52 = arith.truncf %49 : vector<8x8xf32> to vector<8x8xbf16>
    %cst_24 = arith.constant dense<0.000000e+00> : vector<8x8xf32>
    %53 = tpu.matmul %52, %43, %cst_24 {dimension_numbers = #tpu.dot_dimension_numbers<[1], [0], [0], [1], [0, 0, 1, 1], [], []>} : vector<8x8xbf16>, vector<8x8xbf16>, vector<8x8xf32> -> vector<8x8xf32>
    %54 = vector.extract_strided_slice %5 {offsets = [0, 24], sizes = [8, 8], strides = [1, 1]} : vector<8x32xbf16> to vector<8x8xbf16>
    %55 = vector.extract_strided_slice %11 {offsets = [0, 24], sizes = [8, 8], strides = [1, 1]} : vector<8x32xbf16> to vector<8x8xbf16>
    %56 = vector.extract_strided_slice %14 {offsets = [0, 24], sizes = [8, 8], strides = [1, 1]} : vector<8x32xbf16> to vector<8x8xbf16>
    %cst_25 = arith.constant dense<0.000000e+00> : vector<8x8xf32>
    %57 = tpu.matmul %54, %55, %cst_25 {dimension_numbers = #tpu.dot_dimension_numbers<[1], [1], [0], [0], [0, 0, 1, 0], [], []>} : vector<8x8xbf16>, vector<8x8xbf16>, vector<8x8xf32> -> vector<8x8xf32>
    %cst_26 = arith.constant dense<0xFF800000> : vector<8xf32>
    %58 = vector.multi_reduction <maximumf>, %57, %cst_26 [1] : vector<8x8xf32> to vector<8xf32>
    %59 = vector.shape_cast %58 : vector<8xf32> to vector<8x1xf32>
    %60 = vector.broadcast %59 : vector<8x1xf32> to vector<8x8xf32>
    %61 = arith.subf %57, %60 : vector<8x8xf32>
    %62 = math.exp %61 : vector<8x8xf32>
    %cst_27 = arith.constant dense<0.000000e+00> : vector<8xf32>
    %63 = vector.multi_reduction <add>, %62, %cst_27 [1] : vector<8x8xf32> to vector<8xf32>
    %64 = vector.shape_cast %63 : vector<8xf32> to vector<8x1xf32>
    %65 = arith.truncf %62 : vector<8x8xf32> to vector<8x8xbf16>
    %cst_28 = arith.constant dense<0.000000e+00> : vector<8x8xf32>
    %66 = tpu.matmul %65, %56, %cst_28 {dimension_numbers = #tpu.dot_dimension_numbers<[1], [0], [0], [1], [0, 0, 1, 1], [], []>} : vector<8x8xbf16>, vector<8x8xbf16>, vector<8x8xf32> -> vector<8x8xf32>
    %67 = tpu.reciprocal %25 {approx = true} : vector<8x1xf32> -> vector<8x1xf32>
    %68 = vector.broadcast %67 : vector<8x1xf32> to vector<8x8xf32>
    %69 = arith.mulf %27, %68 : vector<8x8xf32>
    %70 = arith.truncf %69 : vector<8x8xf32> to vector<8x8xbf16>
    %c0_29 = arith.constant 0 : index
    %c0_30 = arith.constant 0 : index
    %71 = vector.load %arg7[%c0_29, %c0_30] : memref<32x32xbf16, #tpu.memory_space<vmem>>, vector<8x32xbf16>
    %cst_31 = arith.constant dense<0.000000e+00> : vector<8x32xf32>
    %72 = tpu.matmul %70, %71, %cst_31 {dimension_numbers = #tpu.dot_dimension_numbers<[1], [0], [0], [1], [0, 0, 1, 1], [], []>} : vector<8x8xbf16>, vector<8x32xbf16>, vector<8x32xf32> -> vector<8x32xf32>
    %73 = arith.addf %1, %72 : vector<8x32xf32>
    %74 = tpu.reciprocal %38 {approx = true} : vector<8x1xf32> -> vector<8x1xf32>
    %75 = vector.broadcast %74 : vector<8x1xf32> to vector<8x8xf32>
    %76 = arith.mulf %40, %75 : vector<8x8xf32>
    %77 = arith.truncf %76 : vector<8x8xf32> to vector<8x8xbf16>
    %c8 = arith.constant 8 : index
    %c0_32 = arith.constant 0 : index
    %78 = vector.load %arg7[%c8, %c0_32] : memref<32x32xbf16, #tpu.memory_space<vmem>>, vector<8x32xbf16>
    %cst_33 = arith.constant dense<0.000000e+00> : vector<8x32xf32>
    %79 = tpu.matmul %77, %78, %cst_33 {dimension_numbers = #tpu.dot_dimension_numbers<[1], [0], [0], [1], [0, 0, 1, 1], [], []>} : vector<8x8xbf16>, vector<8x32xbf16>, vector<8x32xf32> -> vector<8x32xf32>
    %80 = arith.addf %73, %79 : vector<8x32xf32>
    %81 = tpu.reciprocal %51 {approx = true} : vector<8x1xf32> -> vector<8x1xf32>
    %82 = vector.broadcast %81 : vector<8x1xf32> to vector<8x8xf32>
    %83 = arith.mulf %53, %82 : vector<8x8xf32>
    %84 = arith.truncf %83 : vector<8x8xf32> to vector<8x8xbf16>
    %c16 = arith.constant 16 : index
    %c0_34 = arith.constant 0 : index
    %85 = vector.load %arg7[%c16, %c0_34] : memref<32x32xbf16, #tpu.memory_space<vmem>>, vector<8x32xbf16>
    %cst_35 = arith.constant dense<0.000000e+00> : vector<8x32xf32>
    %86 = tpu.matmul %84, %85, %cst_35 {dimension_numbers = #tpu.dot_dimension_numbers<[1], [0], [0], [1], [0, 0, 1, 1], [], []>} : vector<8x8xbf16>, vector<8x32xbf16>, vector<8x32xf32> -> vector<8x32xf32>
    %87 = arith.addf %80, %86 : vector<8x32xf32>
    %88 = tpu.reciprocal %64 {approx = true} : vector<8x1xf32> -> vector<8x1xf32>
    %89 = vector.broadcast %88 : vector<8x1xf32> to vector<8x8xf32>
    %90 = arith.mulf %66, %89 : vector<8x8xf32>
    %91 = arith.truncf %90 : vector<8x8xf32> to vector<8x8xbf16>
    %c24 = arith.constant 24 : index
    %c0_36 = arith.constant 0 : index
    %92 = vector.load %arg7[%c24, %c0_36] : memref<32x32xbf16, #tpu.memory_space<vmem>>, vector<8x32xbf16>
    %cst_37 = arith.constant dense<0.000000e+00> : vector<8x32xf32>
    %93 = tpu.matmul %91, %92, %cst_37 {dimension_numbers = #tpu.dot_dimension_numbers<[1], [0], [0], [1], [0, 0, 1, 1], [], []>} : vector<8x8xbf16>, vector<8x32xbf16>, vector<8x32xf32> -> vector<8x32xf32>
    %94 = arith.addf %87, %93 : vector<8x32xf32>
    %c0_38 = arith.constant 0 : index
    %c0_39 = arith.constant 0 : index
    %95 = vector.load %arg8[%c0_38, %c0_39] : memref<1x32xf32, #tpu.memory_space<vmem>>, vector<1x32xf32>
    %c0_40 = arith.constant 0 : index
    %c0_41 = arith.constant 0 : index
    %96 = vector.load %arg9[%c0_40, %c0_41] : memref<1x32xf32, #tpu.memory_space<vmem>>, vector<1x32xf32>
    %cst_42 = arith.constant dense<0.000000e+00> : vector<8xf32>
    %97 = vector.multi_reduction <add>, %94, %cst_42 [1] : vector<8x32xf32> to vector<8xf32>
    %98 = vector.shape_cast %97 : vector<8xf32> to vector<8x1xf32>
    %cst_43 = arith.constant 3.200000e+01 : f32
    %99 = vector.broadcast %cst_43 : f32 to vector<8x1xf32>
    %100 = arith.divf %98, %99 : vector<8x1xf32>
    %101 = vector.broadcast %100 : vector<8x1xf32> to vector<8x32xf32>
    %102 = arith.subf %94, %101 : vector<8x32xf32>
    %103 = arith.mulf %102, %102 : vector<8x32xf32>
    %cst_44 = arith.constant dense<0.000000e+00> : vector<8xf32>
    %104 = vector.multi_reduction <add>, %103, %cst_44 [1] : vector<8x32xf32> to vector<8xf32>
    %105 = vector.shape_cast %104 : vector<8xf32> to vector<8x1xf32>
    %cst_45 = arith.constant 3.200000e+01 : f32
    %106 = vector.broadcast %cst_45 : f32 to vector<8x1xf32>
    %107 = arith.divf %105, %106 : vector<8x1xf32>
    %108 = vector.broadcast %100 : vector<8x1xf32> to vector<8x32xf32>
    %109 = arith.subf %94, %108 : vector<8x32xf32>
    %cst_46 = arith.constant 9.99999997E-7 : f32
    %110 = vector.broadcast %cst_46 : f32 to vector<8x1xf32>
    %111 = arith.addf %107, %110 : vector<8x1xf32>
    %112 = math.rsqrt %111 : vector<8x1xf32>
    %113 = vector.broadcast %112 : vector<8x1xf32> to vector<8x32xf32>
    %114 = arith.mulf %109, %113 : vector<8x32xf32>
    %115 = vector.broadcast %95 : vector<1x32xf32> to vector<8x32xf32>
    %116 = arith.mulf %114, %115 : vector<8x32xf32>
    %117 = vector.broadcast %96 : vector<1x32xf32> to vector<8x32xf32>
    %118 = arith.addf %116, %117 : vector<8x32xf32>
    %119 = arith.truncf %118 : vector<8x32xf32> to vector<8x32xbf16>
    %c0_47 = arith.constant 0 : index
    %c0_48 = arith.constant 0 : index
    %120 = vector.load %arg10[%c0_47, %c0_48] : memref<32x64xbf16, #tpu.memory_space<vmem>>, vector<32x64xbf16>
    %cst_49 = arith.constant dense<0.000000e+00> : vector<8x64xf32>
    %121 = tpu.matmul %119, %120, %cst_49 {dimension_numbers = #tpu.dot_dimension_numbers<[1], [0], [0], [1], [0, 0, 1, 1], [], []>} : vector<8x32xbf16>, vector<32x64xbf16>, vector<8x64xf32> -> vector<8x64xf32>
    %c0_50 = arith.constant 0 : index
    %c0_51 = arith.constant 0 : index
    %122 = vector.load %arg11[%c0_50, %c0_51] : memref<1x64xf32, #tpu.memory_space<vmem>>, vector<1x64xf32>
    %123 = vector.broadcast %122 : vector<1x64xf32> to vector<8x64xf32>
    %124 = arith.addf %121, %123 : vector<8x64xf32>
    %cst_52 = arith.constant 0.000000e+00 : f32
    %125 = vector.broadcast %cst_52 : f32 to vector<8x64xf32>
    %126 = arith.maximumf %124, %125 : vector<8x64xf32>
    %127 = arith.truncf %126 : vector<8x64xf32> to vector<8x64xbf16>
    %c0_53 = arith.constant 0 : index
    %c0_54 = arith.constant 0 : index
    %128 = vector.load %arg12[%c0_53, %c0_54] : memref<64x32xbf16, #tpu.memory_space<vmem>>, vector<64x32xbf16>
    %cst_55 = arith.constant dense<0.000000e+00> : vector<8x32xf32>
    %129 = tpu.matmul %127, %128, %cst_55 {dimension_numbers = #tpu.dot_dimension_numbers<[1], [0], [0], [1], [0, 0, 1, 1], [], []>} : vector<8x64xbf16>, vector<64x32xbf16>, vector<8x32xf32> -> vector<8x32xf32>
    %c0_56 = arith.constant 0 : index
    %c0_57 = arith.constant 0 : index
    %130 = vector.load %arg13[%c0_56, %c0_57] : memref<1x32xf32, #tpu.memory_space<vmem>>, vector<1x32xf32>
    %131 = vector.broadcast %130 : vector<1x32xf32> to vector<8x32xf32>
    %132 = arith.addf %129, %131 : vector<8x32xf32>
    %133 = arith.addf %132, %118 : vector<8x32xf32>
    %c0_58 = arith.constant 0 : index
    %c0_59 = arith.constant 0 : index
    %134 = vector.load %arg14[%c0_58, %c0_59] : memref<1x32xf32, #tpu.memory_space<vmem>>, vector<1x32xf32>
    %c0_60 = arith.constant 0 : index
    %c0_61 = arith.constant 0 : index
    %135 = vector.load %arg15[%c0_60, %c0_61] : memref<1x32xf32, #tpu.memory_space<vmem>>, vector<1x32xf32>
    %cst_62 = arith.constant dense<0.000000e+00> : vector<8xf32>
    %136 = vector.multi_reduction <add>, %133, %cst_62 [1] : vector<8x32xf32> to vector<8xf32>
    %137 = vector.shape_cast %136 : vector<8xf32> to vector<8x1xf32>
    %cst_63 = arith.constant 3.200000e+01 : f32
    %138 = vector.broadcast %cst_63 : f32 to vector<8x1xf32>
    %139 = arith.divf %137, %138 : vector<8x1xf32>
    %140 = vector.broadcast %139 : vector<8x1xf32> to vector<8x32xf32>
    %141 = arith.subf %133, %140 : vector<8x32xf32>
    %142 = arith.mulf %141, %141 : vector<8x32xf32>
    %cst_64 = arith.constant dense<0.000000e+00> : vector<8xf32>
    %143 = vector.multi_reduction <add>, %142, %cst_64 [1] : vector<8x32xf32> to vector<8xf32>
    %144 = vector.shape_cast %143 : vector<8xf32> to vector<8x1xf32>
    %cst_65 = arith.constant 3.200000e+01 : f32
    %145 = vector.broadcast %cst_65 : f32 to vector<8x1xf32>
    %146 = arith.divf %144, %145 : vector<8x1xf32>
    %147 = vector.broadcast %139 : vector<8x1xf32> to vector<8x32xf32>
    %148 = arith.subf %133, %147 : vector<8x32xf32>
    %cst_66 = arith.constant 9.99999997E-7 : f32
    %149 = vector.broadcast %cst_66 : f32 to vector<8x1xf32>
    %150 = arith.addf %146, %149 : vector<8x1xf32>
    %151 = math.rsqrt %150 : vector<8x1xf32>
    %152 = vector.broadcast %151 : vector<8x1xf32> to vector<8x32xf32>
    %153 = arith.mulf %148, %152 : vector<8x32xf32>
    %154 = vector.broadcast %134 : vector<1x32xf32> to vector<8x32xf32>
    %155 = arith.mulf %153, %154 : vector<8x32xf32>
    %156 = vector.broadcast %135 : vector<1x32xf32> to vector<8x32xf32>
    %157 = arith.addf %155, %156 : vector<8x32xf32>
    %c0_67 = arith.constant 0 : index
    %c0_68 = arith.constant 0 : index
    %c0_69 = arith.constant 0 : index
    %158 = vector.load %arg16[%c0_67, %c0_68, %c0_69] : memref<1x8x32xf32, #tpu.memory_space<vmem>>, vector<1x8x32xf32>
    %159 = vector.shape_cast %158 : vector<1x8x32xf32> to vector<8x32xf32>
    %160 = vector.shape_cast %157 : vector<8x32xf32> to vector<1x8x32xf32>
    tpu.vector_store %arg16[%c0_67, %c0_68, %c0_69], %160 {strides = array<i32>} : memref<1x8x32xf32, #tpu.memory_space<vmem>>, vector<1x8x32xf32>,
    return
  }
  func.func @transform_0(%arg0: i32, %arg1: i32) -> (i32, i32, i32) {
    %c0_i32 = arith.constant 0 : i32
    %c0_i32_0 = arith.constant 0 : i32
    return %arg0, %arg1, %c0_i32 : i32, i32, i32
  }
  func.func @transform_1(%arg0: i32, %arg1: i32) -> (i32, i32, i32) {
    %c0_i32 = arith.constant 0 : i32
    %c0_i32_0 = arith.constant 0 : i32
    %c0_i32_1 = arith.constant 0 : i32
    return %arg0, %c0_i32, %c0_i32_0 : i32, i32, i32
  }
  func.func @transform_2(%arg0: i32, %arg1: i32) -> (i32, i32) {
    %c0_i32 = arith.constant 0 : i32
    %c0_i32_0 = arith.constant 0 : i32
    %c0_i32_1 = arith.constant 0 : i32
    return %c0_i32, %c0_i32_0 : i32, i32
  }
  func.func @transform_3(%arg0: i32, %arg1: i32) -> (i32, i32) {
    %c0_i32 = arith.constant 0 : i32
    %c0_i32_0 = arith.constant 0 : i32
    %c0_i32_1 = arith.constant 0 : i32
    return %c0_i32, %c0_i32_0 : i32, i32
  }
  func.func @transform_4(%arg0: i32, %arg1: i32) -> (i32, i32) {
    %c0_i32 = arith.constant 0 : i32
    %c0_i32_0 = arith.constant 0 : i32
    %c0_i32_1 = arith.constant 0 : i32
    return %c0_i32, %c0_i32_0 : i32, i32
  }
  func.func @transform_5(%arg0: i32, %arg1: i32) -> (i32, i32) {
    %c0_i32 = arith.constant 0 : i32
    %c0_i32_0 = arith.constant 0 : i32
    %c0_i32_1 = arith.constant 0 : i32
    return %c0_i32, %c0_i32_0 : i32, i32
  }
  func.func @transform_6(%arg0: i32, %arg1: i32) -> (i32, i32) {
    %c0_i32 = arith.constant 0 : i32
    %c0_i32_0 = arith.constant 0 : i32
    %c0_i32_1 = arith.constant 0 : i32
    return %c0_i32, %c0_i32_0 : i32, i32
  }
  func.func @transform_7(%arg0: i32, %arg1: i32) -> (i32, i32) {
    %c0_i32 = arith.constant 0 : i32
    %c0_i32_0 = arith.constant 0 : i32
    %c0_i32_1 = arith.constant 0 : i32
    return %c0_i32, %c0_i32_0 : i32, i32
  }
  func.func @transform_8(%arg0: i32, %arg1: i32) -> (i32, i32) {
    %c0_i32 = arith.constant 0 : i32
    %c0_i32_0 = arith.constant 0 : i32
    %c0_i32_1 = arith.constant 0 : i32
    return %c0_i32, %c0_i32_0 : i32, i32
  }
  func.func @transform_9(%arg0: i32, %arg1: i32) -> (i32, i32) {
    %c0_i32 = arith.constant 0 : i32
    %c0_i32_0 = arith.constant 0 : i32
    %c0_i32_1 = arith.constant 0 : i32
    return %c0_i32, %c0_i32_0 : i32, i32
  }
  func.func @transform_10(%arg0: i32, %arg1: i32) -> (i32, i32) {
    %c0_i32 = arith.constant 0 : i32
    %c0_i32_0 = arith.constant 0 : i32
    %c0_i32_1 = arith.constant 0 : i32
    return %c0_i32, %c0_i32_0 : i32, i32
  }
  func.func @transform_11(%arg0: i32, %arg1: i32) -> (i32, i32) {
    %c0_i32 = arith.constant 0 : i32
    %c0_i32_0 = arith.constant 0 : i32
    %c0_i32_1 = arith.constant 0 : i32
    return %c0_i32, %c0_i32_0 : i32, i32
  }
  func.func @transform_12(%arg0: i32, %arg1: i32) -> (i32, i32) {
    %c0_i32 = arith.constant 0 : i32
    %c0_i32_0 = arith.constant 0 : i32
    %c0_i32_1 = arith.constant 0 : i32
    return %c0_i32, %c0_i32_0 : i32, i32
  }
  func.func @transform_13(%arg0: i32, %arg1: i32) -> (i32, i32) {
    %c0_i32 = arith.constant 0 : i32
    %c0_i32_0 = arith.constant 0 : i32
    %c0_i32_1 = arith.constant 0 : i32
    return %c0_i32, %c0_i32_0 : i32, i32
  }
  func.func @transform_14(%arg0: i32, %arg1: i32) -> (i32, i32, i32) {
    %c0_i32 = arith.constant 0 : i32
    %c0_i32_0 = arith.constant 0 : i32
    return %arg0, %arg1, %c0_i32 : i32, i32, i32
  }
}

module attributes {stable_mosaic.version = 11 : i64} {
  func.func @layernorm_kernel(%arg0: i32, %arg1: memref<1x8x32xf32, #tpu.memory_space<vmem>>, %arg2: memref<1x32xf32, #tpu.memory_space<vmem>>, %arg3: memref<1x32xf32, #tpu.memory_space<vmem>>, %arg4: memref<1x8x32xf32, #tpu.memory_space<vmem>>) attributes {dimension_semantics = [#tpu.dimension_semantics<parallel>], iteration_bounds = array<i64: 2>, scalar_prefetch = 0 : i64, scratch_operands = 0 : i64, tpu.core_type = #tpu.core_type<tc>, window_params = [{transform_indices = @transform_0, window_bounds = array<i64: 1, 8, 32>}, {pipeline_mode = #tpu.pipeline_mode<synchronous>, transform_indices = @transform_1, window_bounds = array<i64: 1, 32>}, {pipeline_mode = #tpu.pipeline_mode<synchronous>, transform_indices = @transform_2, window_bounds = array<i64: 1, 32>}, {transform_indices = @transform_3, window_bounds = array<i64: 1, 8, 32>}]} {
    %c0 = arith.constant 0 : index
    %c0_0 = arith.constant 0 : index
    %c0_1 = arith.constant 0 : index
    %0 = vector.load %arg1[%c0, %c0_0, %c0_1] : memref<1x8x32xf32, #tpu.memory_space<vmem>>, vector<1x8x32xf32>
    %1 = vector.shape_cast %0 : vector<1x8x32xf32> to vector<8x32xf32>
    %c0_2 = arith.constant 0 : index
    %c0_3 = arith.constant 0 : index
    %2 = vector.load %arg2[%c0_2, %c0_3] : memref<1x32xf32, #tpu.memory_space<vmem>>, vector<1x32xf32>
    %c0_4 = arith.constant 0 : index
    %c0_5 = arith.constant 0 : index
    %3 = vector.load %arg3[%c0_4, %c0_5] : memref<1x32xf32, #tpu.memory_space<vmem>>, vector<1x32xf32>
    %cst = arith.constant dense<0.000000e+00> : vector<8xf32>
    %4 = vector.multi_reduction <add>, %1, %cst [1] : vector<8x32xf32> to vector<8xf32>
    %5 = vector.shape_cast %4 : vector<8xf32> to vector<8x1xf32>
    %cst_6 = arith.constant 3.200000e+01 : f32
    %6 = vector.broadcast %cst_6 : f32 to vector<8x1xf32>
    %7 = arith.divf %5, %6 : vector<8x1xf32>
    %8 = vector.broadcast %7 : vector<8x1xf32> to vector<8x32xf32>
    %9 = arith.subf %1, %8 : vector<8x32xf32>
    %10 = arith.mulf %9, %9 : vector<8x32xf32>
    %cst_7 = arith.constant dense<0.000000e+00> : vector<8xf32>
    %11 = vector.multi_reduction <add>, %10, %cst_7 [1] : vector<8x32xf32> to vector<8xf32>
    %12 = vector.shape_cast %11 : vector<8xf32> to vector<8x1xf32>
    %cst_8 = arith.constant 3.200000e+01 : f32
    %13 = vector.broadcast %cst_8 : f32 to vector<8x1xf32>
    %14 = arith.divf %12, %13 : vector<8x1xf32>
    %15 = vector.broadcast %7 : vector<8x1xf32> to vector<8x32xf32>
    %16 = arith.subf %1, %15 : vector<8x32xf32>
    %cst_9 = arith.constant 9.99999997E-7 : f32
    %17 = vector.broadcast %cst_9 : f32 to vector<8x1xf32>
    %18 = arith.addf %14, %17 : vector<8x1xf32>
    %19 = math.rsqrt %18 : vector<8x1xf32>
    %20 = vector.broadcast %19 : vector<8x1xf32> to vector<8x32xf32>
    %21 = arith.mulf %16, %20 : vector<8x32xf32>
    %22 = vector.broadcast %2 : vector<1x32xf32> to vector<8x32xf32>
    %23 = arith.mulf %21, %22 : vector<8x32xf32>
    %24 = vector.broadcast %3 : vector<1x32xf32> to vector<8x32xf32>
    %25 = arith.addf %23, %24 : vector<8x32xf32>
    %c0_10 = arith.constant 0 : index
    %c0_11 = arith.constant 0 : index
    %c0_12 = arith.constant 0 : index
    %26 = vector.load %arg4[%c0_10, %c0_11, %c0_12] : memref<1x8x32xf32, #tpu.memory_space<vmem>>, vector<1x8x32xf32>
    %27 = vector.shape_cast %26 : vector<1x8x32xf32> to vector<8x32xf32>
    %28 = vector.shape_cast %25 : vector<8x32xf32> to vector<1x8x32xf32>
    tpu.vector_store %arg4[%c0_10, %c0_11, %c0_12], %28 {strides = array<i32>} : memref<1x8x32xf32, #tpu.memory_space<vmem>>, vector<1x8x32xf32>,
    return
  }
  func.func @transform_0(%arg0: i32) -> (i32, i32, i32) {
    %c0_i32 = arith.constant 0 : i32
    %c0_i32_0 = arith.constant 0 : i32
    %c0_i32_1 = arith.constant 0 : i32
    return %arg0, %c0_i32, %c0_i32_0 : i32, i32, i32
  }
  func.func @transform_1(%arg0: i32) -> (i32, i32) {
    %c0_i32 = arith.constant 0 : i32
    %c0_i32_0 = arith.constant 0 : i32
    %c0_i32_1 = arith.constant 0 : i32
    return %c0_i32, %c0_i32_0 : i32, i32
  }
  func.func @transform_2(%arg0: i32) -> (i32, i32) {
    %c0_i32 = arith.constant 0 : i32
    %c0_i32_0 = arith.constant 0 : i32
    %c0_i32_1 = arith.constant 0 : i32
    return %c0_i32, %c0_i32_0 : i32, i32
  }
  func.func @transform_3(%arg0: i32) -> (i32, i32, i32) {
    %c0_i32 = arith.constant 0 : i32
    %c0_i32_0 = arith.constant 0 : i32
    %c0_i32_1 = arith.constant 0 : i32
    return %arg0, %c0_i32, %c0_i32_0 : i32, i32, i32
  }
}

module attributes {stable_mosaic.version = 11 : i64} {
  func.func @fused_layer_kernel(%arg0: i32, %arg1: i32, %arg2: memref<1x8x32xf32, #tpu.memory_space<vmem>>, %arg3: memref<1x8x32xf32, #tpu.memory_space<vmem>>, %arg4: memref<32x32xbf16, #tpu.memory_space<vmem>>, %arg5: memref<32x32xbf16, #tpu.memory_space<vmem>>, %arg6: memref<32x32xbf16, #tpu.memory_space<vmem>>, %arg7: memref<32x32xbf16, #tpu.memory_space<vmem>>, %arg8: memref<1x32xf32, #tpu.memory_space<vmem>>, %arg9: memref<1x32xf32, #tpu.memory_space<vmem>>, %arg10: memref<32x64xbf16, #tpu.memory_space<vmem>>, %arg11: memref<1x64xf32, #tpu.memory_space<vmem>>, %arg12: memref<64x32xbf16, #tpu.memory_space<vmem>>, %arg13: memref<1x32xf32, #tpu.memory_space<vmem>>, %arg14: memref<1x32xf32, #tpu.memory_space<vmem>>, %arg15: memref<1x32xf32, #tpu.memory_space<vmem>>, %arg16: memref<1x8x32xf32, #tpu.memory_space<vmem>>) attributes {dimension_semantics = [#tpu.dimension_semantics<parallel>, #tpu.dimension_semantics<parallel>], iteration_bounds = array<i64: 2, 1>, scalar_prefetch = 0 : i64, scratch_operands = 0 : i64, tpu.core_type = #tpu.core_type<tc>, window_params = [{transform_indices = @transform_0, window_bounds = array<i64: 1, 8, 32>}, {transform_indices = @transform_1, window_bounds = array<i64: 1, 8, 32>}, {pipeline_mode = #tpu.pipeline_mode<synchronous>, transform_indices = @transform_2, window_bounds = array<i64: 32, 32>}, {pipeline_mode = #tpu.pipeline_mode<synchronous>, transform_indices = @transform_3, window_bounds = array<i64: 32, 32>}, {pipeline_mode = #tpu.pipeline_mode<synchronous>, transform_indices = @transform_4, window_bounds = array<i64: 32, 32>}, {pipeline_mode = #tpu.pipeline_mode<synchronous>, transform_indices = @transform_5, window_bounds = array<i64: 32, 32>}, {pipeline_mode = #tpu.pipeline_mode<synchronous>, transform_indices = @transform_6, window_bounds = array<i64: 1, 32>}, {pipeline_mode = #tpu.pipeline_mode<synchronous>, transform_indices = @transform_7, window_bounds = array<i64: 1, 32>}, {pipeline_mode = #tpu.pipeline_mode<synchronous>, transform_indices = @transform_8, window_bounds = array<i64: 32, 64>}, {pipeline_mode = #tpu.pipeline_mode<synchronous>, transform_indices = @transform_9, window_bounds = array<i64: 1, 64>}, {pipeline_mode = #tpu.pipeline_mode<synchronous>, transform_indices = @transform_10, window_bounds = array<i64: 64, 32>}, {pipeline_mode = #tpu.pipeline_mode<synchronous>, transform_indices = @transform_11, window_bounds = array<i64: 1, 32>}, {pipeline_mode = #tpu.pipeline_mode<synchronous>, transform_indices = @transform_12, window_bounds = array<i64: 1, 32>}, {pipeline_mode = #tpu.pipeline_mode<synchronous>, transform_indices = @transform_13, window_bounds = array<i64: 1, 32>}, {transform_indices = @transform_14, window_bounds = array<i64: 1, 8, 32>}]} {
    %c0 = arith.constant 0 : index
    %c0_0 = arith.constant 0 : index
    %c0_1 = arith.constant 0 : index
    %0 = vector.load %arg2[%c0, %c0_0, %c0_1] : memref<1x8x32xf32, #tpu.memory_space<vmem>>, vector<1x8x32xf32>
    %1 = vector.shape_cast %0 : vector<1x8x32xf32> to vector<8x32xf32>
    %2 = arith.truncf %1 : vector<8x32xf32> to vector<8x32xbf16>
    %c0_2 = arith.constant 0 : index
    %c0_3 = arith.constant 0 : index
    %3 = vector.load %arg4[%c0_2, %c0_3] : memref<32x32xbf16, #tpu.memory_space<vmem>>, vector<32x32xbf16>
    %cst = arith.constant dense<0.000000e+00> : vector<8x32xf32>
    %4 = tpu.matmul %2, %3, %cst {dimension_numbers = #tpu.dot_dimension_numbers<[1], [0], [0], [1], [0, 0, 1, 1], [], []>} : vector<8x32xbf16>, vector<32x32xbf16>, vector<8x32xf32> -> vector<8x32xf32>
    %5 = arith.truncf %4 : vector<8x32xf32> to vector<8x32xbf16>
    %c0_4 = arith.constant 0 : index
    %c0_5 = arith.constant 0 : index
    %c0_6 = arith.constant 0 : index
    %6 = vector.load %arg3[%c0_4, %c0_5, %c0_6] : memref<1x8x32xf32, #tpu.memory_space<vmem>>, vector<1x8x32xf32>
    %7 = vector.shape_cast %6 : vector<1x8x32xf32> to vector<8x32xf32>
    %8 = arith.truncf %7 : vector<8x32xf32> to vector<8x32xbf16>
    %c0_7 = arith.constant 0 : index
    %c0_8 = arith.constant 0 : index
    %9 = vector.load %arg5[%c0_7, %c0_8] : memref<32x32xbf16, #tpu.memory_space<vmem>>, vector<32x32xbf16>
    %cst_9 = arith.constant dense<0.000000e+00> : vector<8x32xf32>
    %10 = tpu.matmul %8, %9, %cst_9 {dimension_numbers = #tpu.dot_dimension_numbers<[1], [0], [0], [1], [0, 0, 1, 1], [], []>} : vector<8x32xbf16>, vector<32x32xbf16>, vector<8x32xf32> -> vector<8x32xf32>
    %11 = arith.truncf %10 : vector<8x32xf32> to vector<8x32xbf16>
    %c0_10 = arith.constant 0 : index
    %c0_11 = arith.constant 0 : index
    %12 = vector.load %arg6[%c0_10, %c0_11] : memref<32x32xbf16, #tpu.memory_space<vmem>>, vector<32x32xbf16>
    %cst_12 = arith.constant dense<0.000000e+00> : vector<8x32xf32>
    %13 = tpu.matmul %8, %12, %cst_12 {dimension_numbers = #tpu.dot_dimension_numbers<[1], [0], [0], [1], [0, 0, 1, 1], [], []>} : vector<8x32xbf16>, vector<32x32xbf16>, vector<8x32xf32> -> vector<8x32xf32>
    %14 = arith.truncf %13 : vector<8x32xf32> to vector<8x32xbf16>
    %15 = vector.extract_strided_slice %5 {offsets = [0, 0], sizes = [8, 8], strides = [1, 1]} : vector<8x32xbf16> to vector<8x8xbf16>
    %16 = vector.extract_strided_slice %11 {offsets = [0, 0], sizes = [8, 8], strides = [1, 1]} : vector<8x32xbf16> to vector<8x8xbf16>
    %17 = vector.extract_strided_slice %14 {offsets = [0, 0], sizes = [8, 8], strides = [1, 1]} : vector<8x32xbf16> to vector<8x8xbf16>
    %cst_13 = arith.constant dense<0.000000e+00> : vector<8x8xf32>
    %18 = tpu.matmul %15, %16, %cst_13 {dimension_numbers = #tpu.dot_dimension_numbers<[1], [1], [0], [0], [0, 0, 1, 0], [], []>} : vector<8x8xbf16>, vector<8x8xbf16>, vector<8x8xf32> -> vector<8x8xf32>
    %cst_14 = arith.constant dense<0xFF800000> : vector<8xf32>
    %19 = vector.multi_reduction <maximumf>, %18, %cst_14 [1] : vector<8x8xf32> to vector<8xf32>
    %20 = vector.shape_cast %19 : vector<8xf32> to vector<8x1xf32>
    %21 = vector.broadcast %20 : vector<8x1xf32> to vector<8x8xf32>
    %22 = arith.subf %18, %21 : vector<8x8xf32>
    %23 = math.exp %22 : vector<8x8xf32>
    %cst_15 = arith.constant dense<0.000000e+00> : vector<8xf32>
    %24 = vector.multi_reduction <add>, %23, %cst_15 [1] : vector<8x8xf32> to vector<8xf32>
    %25 = vector.shape_cast %24 : vector<8xf32> to vector<8x1xf32>
    %26 = arith.truncf %23 : vector<8x8xf32> to vector<8x8xbf16>
    %cst_16 = arith.constant dense<0.000000e+00> : vector<8x8xf32>
    %27 = tpu.matmul %26, %17, %cst_16 {dimension_numbers = #tpu.dot_dimension_numbers<[1], [0], [0], [1], [0, 0, 1, 1], [], []>} : vector<8x8xbf16>, vector<8x8xbf16>, vector<8x8xf32> -> vector<8x8xf32>
    %28 = vector.extract_strided_slice %5 {offsets = [0, 8], sizes = [8, 8], strides = [1, 1]} : vector<8x32xbf16> to vector<8x8xbf16>
    %29 = vector.extract_strided_slice %11 {offsets = [0, 8], sizes = [8, 8], strides = [1, 1]} : vector<8x32xbf16> to vector<8x8xbf16>
    %30 = vector.extract_strided_slice %14 {offsets = [0, 8], sizes = [8, 8], strides = [1, 1]} : vector<8x32xbf16> to vector<8x8xbf16>
    %cst_17 = arith.constant dense<0.000000e+00> : vector<8x8xf32>
    %31 = tpu.matmul %28, %29, %cst_17 {dimension_numbers = #tpu.dot_dimension_numbers<[1], [1], [0], [0], [0, 0, 1, 0], [], []>} : vector<8x8xbf16>, vector<8x8xbf16>, vector<8x8xf32> -> vector<8x8xf32>
    %cst_18 = arith.constant dense<0xFF800000> : vector<8xf32>
    %32 = vector.multi_reduction <maximumf>, %31, %cst_18 [1] : vector<8x8xf32> to vector<8xf32>
    %33 = vector.shape_cast %32 : vector<8xf32> to vector<8x1xf32>
    %34 = vector.broadcast %33 : vector<8x1xf32> to vector<8x8xf32>
    %35 = arith.subf %31, %34 : vector<8x8xf32>
    %36 = math.exp %35 : vector<8x8xf32>
    %cst_19 = arith.constant dense<0.000000e+00> : vector<8xf32>
    %37 = vector.multi_reduction <add>, %36, %cst_19 [1] : vector<8x8xf32> to vector<8xf32>
    %38 = vector.shape_cast %37 : vector<8xf32> to vector<8x1xf32>
    %39 = arith.truncf %36 : vector<8x8xf32> to vector<8x8xbf16>
    %cst_20 = arith.constant dense<0.000000e+00> : vector<8x8xf32>
    %40 = tpu.matmul %39, %30, %cst_20 {dimension_numbers = #tpu.dot_dimension_numbers<[1], [0], [0], [1], [0, 0, 1, 1], [], []>} : vector<8x8xbf16>, vector<8x8xbf16>, vector<8x8xf32> -> vector<8x8xf32>
    %41 = vector.extract_strided_slice %5 {offsets = [0, 16], sizes = [8, 8], strides = [1, 1]} : vector<8x32xbf16> to vector<8x8xbf16>
    %42 = vector.extract_strided_slice %11 {offsets = [0, 16], sizes = [8, 8], strides = [1, 1]} : vector<8x32xbf16> to vector<8x8xbf16>
    %43 = vector.extract_strided_slice %14 {offsets = [0, 16], sizes = [8, 8], strides = [1, 1]} : vector<8x32xbf16> to vector<8x8xbf16>
    %cst_21 = arith.constant dense<0.000000e+00> : vector<8x8xf32>
    %44 = tpu.matmul %41, %42, %cst_21 {dimension_numbers = #tpu.dot_dimension_numbers<[1], [1], [0], [0], [0, 0, 1, 0], [], []>} : vector<8x8xbf16>, vector<8x8xbf16>, vector<8x8xf32> -> vector<8x8xf32>
    %cst_22 = arith.constant dense<0xFF800000> : vector<8xf32>
    %45 = vector.multi_reduction <maximumf>, %44, %cst_22 [1] : vector<8x8xf32> to vector<8xf32>
    %46 = vector.shape_cast %45 : vector<8xf32> to vector<8x1xf32>
    %47 = vector.broadcast %46 : vector<8x1xf32> to vector<8x8xf32>
    %48 = arith.subf %44, %47 : vector<8x8xf32>
    %49 = math.exp %48 : vector<8x8xf32>
    %cst_23 = arith.constant dense<0.000000e+00> : vector<8xf32>
    %50 = vector.multi_reduction <add>, %49, %cst_23 [1] : vector<8x8xf32> to vector<8xf32>
    %51 = vector.shape_cast %50 : vector<8xf32> to vector<8x1xf32>
    %52 = arith.truncf %49 : vector<8x8xf32> to vector<8x8xbf16>
    %cst_24 = arith.constant dense<0.000000e+00> : vector<8x8xf32>
    %53 = tpu.matmul %52, %43, %cst_24 {dimension_numbers = #tpu.dot_dimension_numbers<[1], [0], [0], [1], [0, 0, 1, 1], [], []>} : vector<8x8xbf16>, vector<8x8xbf16>, vector<8x8xf32> -> vector<8x8xf32>
    %54 = vector.extract_strided_slice %5 {offsets = [0, 24], sizes = [8, 8], strides = [1, 1]} : vector<8x32xbf16> to vector<8x8xbf16>
    %55 = vector.extract_strided_slice %11 {offsets = [0, 24], sizes = [8, 8], strides = [1, 1]} : vector<8x32xbf16> to vector<8x8xbf16>
    %56 = vector.extract_strided_slice %14 {offsets = [0, 24], sizes = [8, 8], strides = [1, 1]} : vector<8x32xbf16> to vector<8x8xbf16>
    %cst_25 = arith.constant dense<0.000000e+00> : vector<8x8xf32>
    %57 = tpu.matmul %54, %55, %cst_25 {dimension_numbers = #tpu.dot_dimension_numbers<[1], [1], [0], [0], [0, 0, 1, 0], [], []>} : vector<8x8xbf16>, vector<8x8xbf16>, vector<8x8xf32> -> vector<8x8xf32>
    %cst_26 = arith.constant dense<0xFF800000> : vector<8xf32>
    %58 = vector.multi_reduction <maximumf>, %57, %cst_26 [1] : vector<8x8xf32> to vector<8xf32>
    %59 = vector.shape_cast %58 : vector<8xf32> to vector<8x1xf32>
    %60 = vector.broadcast %59 : vector<8x1xf32> to vector<8x8xf32>
    %61 = arith.subf %57, %60 : vector<8x8xf32>
    %62 = math.exp %61 : vector<8x8xf32>
    %cst_27 = arith.constant dense<0.000000e+00> : vector<8xf32>
    %63 = vector.multi_reduction <add>, %62, %cst_27 [1] : vector<8x8xf32> to vector<8xf32>
    %64 = vector.shape_cast %63 : vector<8xf32> to vector<8x1xf32>
    %65 = arith.truncf %62 : vector<8x8xf32> to vector<8x8xbf16>
    %cst_28 = arith.constant dense<0.000000e+00> : vector<8x8xf32>
    %66 = tpu.matmul %65, %56, %cst_28 {dimension_numbers = #tpu.dot_dimension_numbers<[1], [0], [0], [1], [0, 0, 1, 1], [], []>} : vector<8x8xbf16>, vector<8x8xbf16>, vector<8x8xf32> -> vector<8x8xf32>
    %67 = tpu.reciprocal %25 {approx = true} : vector<8x1xf32> -> vector<8x1xf32>
    %68 = vector.broadcast %67 : vector<8x1xf32> to vector<8x8xf32>
    %69 = arith.mulf %27, %68 : vector<8x8xf32>
    %70 = arith.truncf %69 : vector<8x8xf32> to vector<8x8xbf16>
    %c0_29 = arith.constant 0 : index
    %c0_30 = arith.constant 0 : index
    %71 = vector.load %arg7[%c0_29, %c0_30] : memref<32x32xbf16, #tpu.memory_space<vmem>>, vector<8x32xbf16>
    %cst_31 = arith.constant dense<0.000000e+00> : vector<8x32xf32>
    %72 = tpu.matmul %70, %71, %cst_31 {dimension_numbers = #tpu.dot_dimension_numbers<[1], [0], [0], [1], [0, 0, 1, 1], [], []>} : vector<8x8xbf16>, vector<8x32xbf16>, vector<8x32xf32> -> vector<8x32xf32>
    %73 = arith.addf %1, %72 : vector<8x32xf32>
    %74 = tpu.reciprocal %38 {approx = true} : vector<8x1xf32> -> vector<8x1xf32>
    %75 = vector.broadcast %74 : vector<8x1xf32> to vector<8x8xf32>
    %76 = arith.mulf %40, %75 : vector<8x8xf32>
    %77 = arith.truncf %76 : vector<8x8xf32> to vector<8x8xbf16>
    %c8 = arith.constant 8 : index
    %c0_32 = arith.constant 0 : index
    %78 = vector.load %arg7[%c8, %c0_32] : memref<32x32xbf16, #tpu.memory_space<vmem>>, vector<8x32xbf16>
    %cst_33 = arith.constant dense<0.000000e+00> : vector<8x32xf32>
    %79 = tpu.matmul %77, %78, %cst_33 {dimension_numbers = #tpu.dot_dimension_numbers<[1], [0], [0], [1], [0, 0, 1, 1], [], []>} : vector<8x8xbf16>, vector<8x32xbf16>, vector<8x32xf32> -> vector<8x32xf32>
    %80 = arith.addf %73, %79 : vector<8x32xf32>
    %81 = tpu.reciprocal %51 {approx = true} : vector<8x1xf32> -> vector<8x1xf32>
    %82 = vector.broadcast %81 : vector<8x1xf32> to vector<8x8xf32>
    %83 = arith.mulf %53, %82 : vector<8x8xf32>
    %84 = arith.truncf %83 : vector<8x8xf32> to vector<8x8xbf16>
    %c16 = arith.constant 16 : index
    %c0_34 = arith.constant 0 : index
    %85 = vector.load %arg7[%c16, %c0_34] : memref<32x32xbf16, #tpu.memory_space<vmem>>, vector<8x32xbf16>
    %cst_35 = arith.constant dense<0.000000e+00> : vector<8x32xf32>
    %86 = tpu.matmul %84, %85, %cst_35 {dimension_numbers = #tpu.dot_dimension_numbers<[1], [0], [0], [1], [0, 0, 1, 1], [], []>} : vector<8x8xbf16>, vector<8x32xbf16>, vector<8x32xf32> -> vector<8x32xf32>
    %87 = arith.addf %80, %86 : vector<8x32xf32>
    %88 = tpu.reciprocal %64 {approx = true} : vector<8x1xf32> -> vector<8x1xf32>
    %89 = vector.broadcast %88 : vector<8x1xf32> to vector<8x8xf32>
    %90 = arith.mulf %66, %89 : vector<8x8xf32>
    %91 = arith.truncf %90 : vector<8x8xf32> to vector<8x8xbf16>
    %c24 = arith.constant 24 : index
    %c0_36 = arith.constant 0 : index
    %92 = vector.load %arg7[%c24, %c0_36] : memref<32x32xbf16, #tpu.memory_space<vmem>>, vector<8x32xbf16>
    %cst_37 = arith.constant dense<0.000000e+00> : vector<8x32xf32>
    %93 = tpu.matmul %91, %92, %cst_37 {dimension_numbers = #tpu.dot_dimension_numbers<[1], [0], [0], [1], [0, 0, 1, 1], [], []>} : vector<8x8xbf16>, vector<8x32xbf16>, vector<8x32xf32> -> vector<8x32xf32>
    %94 = arith.addf %87, %93 : vector<8x32xf32>
    %c0_38 = arith.constant 0 : index
    %c0_39 = arith.constant 0 : index
    %95 = vector.load %arg8[%c0_38, %c0_39] : memref<1x32xf32, #tpu.memory_space<vmem>>, vector<1x32xf32>
    %c0_40 = arith.constant 0 : index
    %c0_41 = arith.constant 0 : index
    %96 = vector.load %arg9[%c0_40, %c0_41] : memref<1x32xf32, #tpu.memory_space<vmem>>, vector<1x32xf32>
    %cst_42 = arith.constant dense<0.000000e+00> : vector<8xf32>
    %97 = vector.multi_reduction <add>, %94, %cst_42 [1] : vector<8x32xf32> to vector<8xf32>
    %98 = vector.shape_cast %97 : vector<8xf32> to vector<8x1xf32>
    %cst_43 = arith.constant 3.200000e+01 : f32
    %99 = vector.broadcast %cst_43 : f32 to vector<8x1xf32>
    %100 = arith.divf %98, %99 : vector<8x1xf32>
    %101 = vector.broadcast %100 : vector<8x1xf32> to vector<8x32xf32>
    %102 = arith.subf %94, %101 : vector<8x32xf32>
    %103 = arith.mulf %102, %102 : vector<8x32xf32>
    %cst_44 = arith.constant dense<0.000000e+00> : vector<8xf32>
    %104 = vector.multi_reduction <add>, %103, %cst_44 [1] : vector<8x32xf32> to vector<8xf32>
    %105 = vector.shape_cast %104 : vector<8xf32> to vector<8x1xf32>
    %cst_45 = arith.constant 3.200000e+01 : f32
    %106 = vector.broadcast %cst_45 : f32 to vector<8x1xf32>
    %107 = arith.divf %105, %106 : vector<8x1xf32>
    %108 = vector.broadcast %100 : vector<8x1xf32> to vector<8x32xf32>
    %109 = arith.subf %94, %108 : vector<8x32xf32>
    %cst_46 = arith.constant 9.99999997E-7 : f32
    %110 = vector.broadcast %cst_46 : f32 to vector<8x1xf32>
    %111 = arith.addf %107, %110 : vector<8x1xf32>
    %112 = math.rsqrt %111 : vector<8x1xf32>
    %113 = vector.broadcast %112 : vector<8x1xf32> to vector<8x32xf32>
    %114 = arith.mulf %109, %113 : vector<8x32xf32>
    %115 = vector.broadcast %95 : vector<1x32xf32> to vector<8x32xf32>
    %116 = arith.mulf %114, %115 : vector<8x32xf32>
    %117 = vector.broadcast %96 : vector<1x32xf32> to vector<8x32xf32>
    %118 = arith.addf %116, %117 : vector<8x32xf32>
    %119 = arith.truncf %118 : vector<8x32xf32> to vector<8x32xbf16>
    %c0_47 = arith.constant 0 : index
    %c0_48 = arith.constant 0 : index
    %120 = vector.load %arg10[%c0_47, %c0_48] : memref<32x64xbf16, #tpu.memory_space<vmem>>, vector<32x64xbf16>
    %cst_49 = arith.constant dense<0.000000e+00> : vector<8x64xf32>
    %121 = tpu.matmul %119, %120, %cst_49 {dimension_numbers = #tpu.dot_dimension_numbers<[1], [0], [0], [1], [0, 0, 1, 1], [], []>} : vector<8x32xbf16>, vector<32x64xbf16>, vector<8x64xf32> -> vector<8x64xf32>
    %c0_50 = arith.constant 0 : index
    %c0_51 = arith.constant 0 : index
    %122 = vector.load %arg11[%c0_50, %c0_51] : memref<1x64xf32, #tpu.memory_space<vmem>>, vector<1x64xf32>
    %123 = vector.broadcast %122 : vector<1x64xf32> to vector<8x64xf32>
    %124 = arith.addf %121, %123 : vector<8x64xf32>
    %cst_52 = arith.constant 0.000000e+00 : f32
    %125 = vector.broadcast %cst_52 : f32 to vector<8x64xf32>
    %126 = arith.maximumf %124, %125 : vector<8x64xf32>
    %127 = arith.truncf %126 : vector<8x64xf32> to vector<8x64xbf16>
    %c0_53 = arith.constant 0 : index
    %c0_54 = arith.constant 0 : index
    %128 = vector.load %arg12[%c0_53, %c0_54] : memref<64x32xbf16, #tpu.memory_space<vmem>>, vector<64x32xbf16>
    %cst_55 = arith.constant dense<0.000000e+00> : vector<8x32xf32>
    %129 = tpu.matmul %127, %128, %cst_55 {dimension_numbers = #tpu.dot_dimension_numbers<[1], [0], [0], [1], [0, 0, 1, 1], [], []>} : vector<8x64xbf16>, vector<64x32xbf16>, vector<8x32xf32> -> vector<8x32xf32>
    %c0_56 = arith.constant 0 : index
    %c0_57 = arith.constant 0 : index
    %130 = vector.load %arg13[%c0_56, %c0_57] : memref<1x32xf32, #tpu.memory_space<vmem>>, vector<1x32xf32>
    %131 = vector.broadcast %130 : vector<1x32xf32> to vector<8x32xf32>
    %132 = arith.addf %129, %131 : vector<8x32xf32>
    %133 = arith.addf %132, %118 : vector<8x32xf32>
    %c0_58 = arith.constant 0 : index
    %c0_59 = arith.constant 0 : index
    %134 = vector.load %arg14[%c0_58, %c0_59] : memref<1x32xf32, #tpu.memory_space<vmem>>, vector<1x32xf32>
    %c0_60 = arith.constant 0 : index
    %c0_61 = arith.constant 0 : index
    %135 = vector.load %arg15[%c0_60, %c0_61] : memref<1x32xf32, #tpu.memory_space<vmem>>, vector<1x32xf32>
    %cst_62 = arith.constant dense<0.000000e+00> : vector<8xf32>
    %136 = vector.multi_reduction <add>, %133, %cst_62 [1] : vector<8x32xf32> to vector<8xf32>
    %137 = vector.shape_cast %136 : vector<8xf32> to vector<8x1xf32>
    %cst_63 = arith.constant 3.200000e+01 : f32
    %138 = vector.broadcast %cst_63 : f32 to vector<8x1xf32>
    %139 = arith.divf %137, %138 : vector<8x1xf32>
    %140 = vector.broadcast %139 : vector<8x1xf32> to vector<8x32xf32>
    %141 = arith.subf %133, %140 : vector<8x32xf32>
    %142 = arith.mulf %141, %141 : vector<8x32xf32>
    %cst_64 = arith.constant dense<0.000000e+00> : vector<8xf32>
    %143 = vector.multi_reduction <add>, %142, %cst_64 [1] : vector<8x32xf32> to vector<8xf32>
    %144 = vector.shape_cast %143 : vector<8xf32> to vector<8x1xf32>
    %cst_65 = arith.constant 3.200000e+01 : f32
    %145 = vector.broadcast %cst_65 : f32 to vector<8x1xf32>
    %146 = arith.divf %144, %145 : vector<8x1xf32>
    %147 = vector.broadcast %139 : vector<8x1xf32> to vector<8x32xf32>
    %148 = arith.subf %133, %147 : vector<8x32xf32>
    %cst_66 = arith.constant 9.99999997E-7 : f32
    %149 = vector.broadcast %cst_66 : f32 to vector<8x1xf32>
    %150 = arith.addf %146, %149 : vector<8x1xf32>
    %151 = math.rsqrt %150 : vector<8x1xf32>
    %152 = vector.broadcast %151 : vector<8x1xf32> to vector<8x32xf32>
    %153 = arith.mulf %148, %152 : vector<8x32xf32>
    %154 = vector.broadcast %134 : vector<1x32xf32> to vector<8x32xf32>
    %155 = arith.mulf %153, %154 : vector<8x32xf32>
    %156 = vector.broadcast %135 : vector<1x32xf32> to vector<8x32xf32>
    %157 = arith.addf %155, %156 : vector<8x32xf32>
    %c0_67 = arith.constant 0 : index
    %c0_68 = arith.constant 0 : index
    %c0_69 = arith.constant 0 : index
    %158 = vector.load %arg16[%c0_67, %c0_68, %c0_69] : memref<1x8x32xf32, #tpu.memory_space<vmem>>, vector<1x8x32xf32>
    %159 = vector.shape_cast %158 : vector<1x8x32xf32> to vector<8x32xf32>
    %160 = vector.shape_cast %157 : vector<8x32xf32> to vector<1x8x32xf32>
    tpu.vector_store %arg16[%c0_67, %c0_68, %c0_69], %160 {strides = array<i32>} : memref<1x8x32xf32, #tpu.memory_space<vmem>>, vector<1x8x32xf32>,
    return
  }
  func.func @transform_0(%arg0: i32, %arg1: i32) -> (i32, i32, i32) {
    %c0_i32 = arith.constant 0 : i32
    %c0_i32_0 = arith.constant 0 : i32
    return %arg0, %arg1, %c0_i32 : i32, i32, i32
  }
  func.func @transform_1(%arg0: i32, %arg1: i32) -> (i32, i32, i32) {
    %c0_i32 = arith.constant 0 : i32
    %c0_i32_0 = arith.constant 0 : i32
    %c0_i32_1 = arith.constant 0 : i32
    return %arg0, %c0_i32, %c0_i32_0 : i32, i32, i32
  }
  func.func @transform_2(%arg0: i32, %arg1: i32) -> (i32, i32) {
    %c0_i32 = arith.constant 0 : i32
    %c0_i32_0 = arith.constant 0 : i32
    %c0_i32_1 = arith.constant 0 : i32
    return %c0_i32, %c0_i32_0 : i32, i32
  }
  func.func @transform_3(%arg0: i32, %arg1: i32) -> (i32, i32) {
    %c0_i32 = arith.constant 0 : i32
    %c0_i32_0 = arith.constant 0 : i32
    %c0_i32_1 = arith.constant 0 : i32
    return %c0_i32, %c0_i32_0 : i32, i32
  }
  func.func @transform_4(%arg0: i32, %arg1: i32) -> (i32, i32) {
    %c0_i32 = arith.constant 0 : i32
    %c0_i32_0 = arith.constant 0 : i32
    %c0_i32_1 = arith.constant 0 : i32
    return %c0_i32, %c0_i32_0 : i32, i32
  }
  func.func @transform_5(%arg0: i32, %arg1: i32) -> (i32, i32) {
    %c0_i32 = arith.constant 0 : i32
    %c0_i32_0 = arith.constant 0 : i32
    %c0_i32_1 = arith.constant 0 : i32
    return %c0_i32, %c0_i32_0 : i32, i32
  }
  func.func @transform_6(%arg0: i32, %arg1: i32) -> (i32, i32) {
    %c0_i32 = arith.constant 0 : i32
    %c0_i32_0 = arith.constant 0 : i32
    %c0_i32_1 = arith.constant 0 : i32
    return %c0_i32, %c0_i32_0 : i32, i32
  }
  func.func @transform_7(%arg0: i32, %arg1: i32) -> (i32, i32) {
    %c0_i32 = arith.constant 0 : i32
    %c0_i32_0 = arith.constant 0 : i32
    %c0_i32_1 = arith.constant 0 : i32
    return %c0_i32, %c0_i32_0 : i32, i32
  }
  func.func @transform_8(%arg0: i32, %arg1: i32) -> (i32, i32) {
    %c0_i32 = arith.constant 0 : i32
    %c0_i32_0 = arith.constant 0 : i32
    %c0_i32_1 = arith.constant 0 : i32
    return %c0_i32, %c0_i32_0 : i32, i32
  }
  func.func @transform_9(%arg0: i32, %arg1: i32) -> (i32, i32) {
    %c0_i32 = arith.constant 0 : i32
    %c0_i32_0 = arith.constant 0 : i32
    %c0_i32_1 = arith.constant 0 : i32
    return %c0_i32, %c0_i32_0 : i32, i32
  }
  func.func @transform_10(%arg0: i32, %arg1: i32) -> (i32, i32) {
    %c0_i32 = arith.constant 0 : i32
    %c0_i32_0 = arith.constant 0 : i32
    %c0_i32_1 = arith.constant 0 : i32
    return %c0_i32, %c0_i32_0 : i32, i32
  }
  func.func @transform_11(%arg0: i32, %arg1: i32) -> (i32, i32) {
    %c0_i32 = arith.constant 0 : i32
    %c0_i32_0 = arith.constant 0 : i32
    %c0_i32_1 = arith.constant 0 : i32
    return %c0_i32, %c0_i32_0 : i32, i32
  }
  func.func @transform_12(%arg0: i32, %arg1: i32) -> (i32, i32) {
    %c0_i32 = arith.constant 0 : i32
    %c0_i32_0 = arith.constant 0 : i32
    %c0_i32_1 = arith.constant 0 : i32
    return %c0_i32, %c0_i32_0 : i32, i32
  }
  func.func @transform_13(%arg0: i32, %arg1: i32) -> (i32, i32) {
    %c0_i32 = arith.constant 0 : i32
    %c0_i32_0 = arith.constant 0 : i32
    %c0_i32_1 = arith.constant 0 : i32
    return %c0_i32, %c0_i32_0 : i32, i32
  }
  func.func @transform_14(%arg0: i32, %arg1: i32) -> (i32, i32, i32) {
    %c0_i32 = arith.constant 0 : i32
    %c0_i32_0 = arith.constant 0 : i32
    return %arg0, %arg1, %c0_i32 : i32, i32, i32
  }
}

module attributes {stable_mosaic.version = 11 : i64} {
  func.func @fused_layer_kernel(%arg0: i32, %arg1: i32, %arg2: memref<1x8x32xf32, #tpu.memory_space<vmem>>, %arg3: memref<1x8x32xf32, #tpu.memory_space<vmem>>, %arg4: memref<32x32xbf16, #tpu.memory_space<vmem>>, %arg5: memref<32x32xbf16, #tpu.memory_space<vmem>>, %arg6: memref<32x32xbf16, #tpu.memory_space<vmem>>, %arg7: memref<32x32xbf16, #tpu.memory_space<vmem>>, %arg8: memref<1x32xf32, #tpu.memory_space<vmem>>, %arg9: memref<1x32xf32, #tpu.memory_space<vmem>>, %arg10: memref<32x64xbf16, #tpu.memory_space<vmem>>, %arg11: memref<1x64xf32, #tpu.memory_space<vmem>>, %arg12: memref<64x32xbf16, #tpu.memory_space<vmem>>, %arg13: memref<1x32xf32, #tpu.memory_space<vmem>>, %arg14: memref<1x32xf32, #tpu.memory_space<vmem>>, %arg15: memref<1x32xf32, #tpu.memory_space<vmem>>, %arg16: memref<1x8x32xf32, #tpu.memory_space<vmem>>) attributes {dimension_semantics = [#tpu.dimension_semantics<parallel>, #tpu.dimension_semantics<parallel>], iteration_bounds = array<i64: 2, 1>, scalar_prefetch = 0 : i64, scratch_operands = 0 : i64, tpu.core_type = #tpu.core_type<tc>, window_params = [{transform_indices = @transform_0, window_bounds = array<i64: 1, 8, 32>}, {transform_indices = @transform_1, window_bounds = array<i64: 1, 8, 32>}, {pipeline_mode = #tpu.pipeline_mode<synchronous>, transform_indices = @transform_2, window_bounds = array<i64: 32, 32>}, {pipeline_mode = #tpu.pipeline_mode<synchronous>, transform_indices = @transform_3, window_bounds = array<i64: 32, 32>}, {pipeline_mode = #tpu.pipeline_mode<synchronous>, transform_indices = @transform_4, window_bounds = array<i64: 32, 32>}, {pipeline_mode = #tpu.pipeline_mode<synchronous>, transform_indices = @transform_5, window_bounds = array<i64: 32, 32>}, {pipeline_mode = #tpu.pipeline_mode<synchronous>, transform_indices = @transform_6, window_bounds = array<i64: 1, 32>}, {pipeline_mode = #tpu.pipeline_mode<synchronous>, transform_indices = @transform_7, window_bounds = array<i64: 1, 32>}, {pipeline_mode = #tpu.pipeline_mode<synchronous>, transform_indices = @transform_8, window_bounds = array<i64: 32, 64>}, {pipeline_mode = #tpu.pipeline_mode<synchronous>, transform_indices = @transform_9, window_bounds = array<i64: 1, 64>}, {pipeline_mode = #tpu.pipeline_mode<synchronous>, transform_indices = @transform_10, window_bounds = array<i64: 64, 32>}, {pipeline_mode = #tpu.pipeline_mode<synchronous>, transform_indices = @transform_11, window_bounds = array<i64: 1, 32>}, {pipeline_mode = #tpu.pipeline_mode<synchronous>, transform_indices = @transform_12, window_bounds = array<i64: 1, 32>}, {pipeline_mode = #tpu.pipeline_mode<synchronous>, transform_indices = @transform_13, window_bounds = array<i64: 1, 32>}, {transform_indices = @transform_14, window_bounds = array<i64: 1, 8, 32>}]} {
    %c0 = arith.constant 0 : index
    %c0_0 = arith.constant 0 : index
    %c0_1 = arith.constant 0 : index
    %0 = vector.load %arg2[%c0, %c0_0, %c0_1] : memref<1x8x32xf32, #tpu.memory_space<vmem>>, vector<1x8x32xf32>
    %1 = vector.shape_cast %0 : vector<1x8x32xf32> to vector<8x32xf32>
    %2 = arith.truncf %1 : vector<8x32xf32> to vector<8x32xbf16>
    %c0_2 = arith.constant 0 : index
    %c0_3 = arith.constant 0 : index
    %3 = vector.load %arg4[%c0_2, %c0_3] : memref<32x32xbf16, #tpu.memory_space<vmem>>, vector<32x32xbf16>
    %cst = arith.constant dense<0.000000e+00> : vector<8x32xf32>
    %4 = tpu.matmul %2, %3, %cst {dimension_numbers = #tpu.dot_dimension_numbers<[1], [0], [0], [1], [0, 0, 1, 1], [], []>} : vector<8x32xbf16>, vector<32x32xbf16>, vector<8x32xf32> -> vector<8x32xf32>
    %5 = arith.truncf %4 : vector<8x32xf32> to vector<8x32xbf16>
    %c0_4 = arith.constant 0 : index
    %c0_5 = arith.constant 0 : index
    %c0_6 = arith.constant 0 : index
    %6 = vector.load %arg3[%c0_4, %c0_5, %c0_6] : memref<1x8x32xf32, #tpu.memory_space<vmem>>, vector<1x8x32xf32>
    %7 = vector.shape_cast %6 : vector<1x8x32xf32> to vector<8x32xf32>
    %8 = arith.truncf %7 : vector<8x32xf32> to vector<8x32xbf16>
    %c0_7 = arith.constant 0 : index
    %c0_8 = arith.constant 0 : index
    %9 = vector.load %arg5[%c0_7, %c0_8] : memref<32x32xbf16, #tpu.memory_space<vmem>>, vector<32x32xbf16>
    %cst_9 = arith.constant dense<0.000000e+00> : vector<8x32xf32>
    %10 = tpu.matmul %8, %9, %cst_9 {dimension_numbers = #tpu.dot_dimension_numbers<[1], [0], [0], [1], [0, 0, 1, 1], [], []>} : vector<8x32xbf16>, vector<32x32xbf16>, vector<8x32xf32> -> vector<8x32xf32>
    %11 = arith.truncf %10 : vector<8x32xf32> to vector<8x32xbf16>
    %c0_10 = arith.constant 0 : index
    %c0_11 = arith.constant 0 : index
    %12 = vector.load %arg6[%c0_10, %c0_11] : memref<32x32xbf16, #tpu.memory_space<vmem>>, vector<32x32xbf16>
    %cst_12 = arith.constant dense<0.000000e+00> : vector<8x32xf32>
    %13 = tpu.matmul %8, %12, %cst_12 {dimension_numbers = #tpu.dot_dimension_numbers<[1], [0], [0], [1], [0, 0, 1, 1], [], []>} : vector<8x32xbf16>, vector<32x32xbf16>, vector<8x32xf32> -> vector<8x32xf32>
    %14 = arith.truncf %13 : vector<8x32xf32> to vector<8x32xbf16>
    %15 = vector.extract_strided_slice %5 {offsets = [0, 0], sizes = [8, 8], strides = [1, 1]} : vector<8x32xbf16> to vector<8x8xbf16>
    %16 = vector.extract_strided_slice %11 {offsets = [0, 0], sizes = [8, 8], strides = [1, 1]} : vector<8x32xbf16> to vector<8x8xbf16>
    %17 = vector.extract_strided_slice %14 {offsets = [0, 0], sizes = [8, 8], strides = [1, 1]} : vector<8x32xbf16> to vector<8x8xbf16>
    %cst_13 = arith.constant dense<0.000000e+00> : vector<8x8xf32>
    %18 = tpu.matmul %15, %16, %cst_13 {dimension_numbers = #tpu.dot_dimension_numbers<[1], [1], [0], [0], [0, 0, 1, 0], [], []>} : vector<8x8xbf16>, vector<8x8xbf16>, vector<8x8xf32> -> vector<8x8xf32>
    %cst_14 = arith.constant dense<0xFF800000> : vector<8xf32>
    %19 = vector.multi_reduction <maximumf>, %18, %cst_14 [1] : vector<8x8xf32> to vector<8xf32>
    %20 = vector.shape_cast %19 : vector<8xf32> to vector<8x1xf32>
    %21 = vector.broadcast %20 : vector<8x1xf32> to vector<8x8xf32>
    %22 = arith.subf %18, %21 : vector<8x8xf32>
    %23 = math.exp %22 : vector<8x8xf32>
    %cst_15 = arith.constant dense<0.000000e+00> : vector<8xf32>
    %24 = vector.multi_reduction <add>, %23, %cst_15 [1] : vector<8x8xf32> to vector<8xf32>
    %25 = vector.shape_cast %24 : vector<8xf32> to vector<8x1xf32>
    %26 = arith.truncf %23 : vector<8x8xf32> to vector<8x8xbf16>
    %cst_16 = arith.constant dense<0.000000e+00> : vector<8x8xf32>
    %27 = tpu.matmul %26, %17, %cst_16 {dimension_numbers = #tpu.dot_dimension_numbers<[1], [0], [0], [1], [0, 0, 1, 1], [], []>} : vector<8x8xbf16>, vector<8x8xbf16>, vector<8x8xf32> -> vector<8x8xf32>
    %28 = vector.extract_strided_slice %5 {offsets = [0, 8], sizes = [8, 8], strides = [1, 1]} : vector<8x32xbf16> to vector<8x8xbf16>
    %29 = vector.extract_strided_slice %11 {offsets = [0, 8], sizes = [8, 8], strides = [1, 1]} : vector<8x32xbf16> to vector<8x8xbf16>
    %30 = vector.extract_strided_slice %14 {offsets = [0, 8], sizes = [8, 8], strides = [1, 1]} : vector<8x32xbf16> to vector<8x8xbf16>
    %cst_17 = arith.constant dense<0.000000e+00> : vector<8x8xf32>
    %31 = tpu.matmul %28, %29, %cst_17 {dimension_numbers = #tpu.dot_dimension_numbers<[1], [1], [0], [0], [0, 0, 1, 0], [], []>} : vector<8x8xbf16>, vector<8x8xbf16>, vector<8x8xf32> -> vector<8x8xf32>
    %cst_18 = arith.constant dense<0xFF800000> : vector<8xf32>
    %32 = vector.multi_reduction <maximumf>, %31, %cst_18 [1] : vector<8x8xf32> to vector<8xf32>
    %33 = vector.shape_cast %32 : vector<8xf32> to vector<8x1xf32>
    %34 = vector.broadcast %33 : vector<8x1xf32> to vector<8x8xf32>
    %35 = arith.subf %31, %34 : vector<8x8xf32>
    %36 = math.exp %35 : vector<8x8xf32>
    %cst_19 = arith.constant dense<0.000000e+00> : vector<8xf32>
    %37 = vector.multi_reduction <add>, %36, %cst_19 [1] : vector<8x8xf32> to vector<8xf32>
    %38 = vector.shape_cast %37 : vector<8xf32> to vector<8x1xf32>
    %39 = arith.truncf %36 : vector<8x8xf32> to vector<8x8xbf16>
    %cst_20 = arith.constant dense<0.000000e+00> : vector<8x8xf32>
    %40 = tpu.matmul %39, %30, %cst_20 {dimension_numbers = #tpu.dot_dimension_numbers<[1], [0], [0], [1], [0, 0, 1, 1], [], []>} : vector<8x8xbf16>, vector<8x8xbf16>, vector<8x8xf32> -> vector<8x8xf32>
    %41 = vector.extract_strided_slice %5 {offsets = [0, 16], sizes = [8, 8], strides = [1, 1]} : vector<8x32xbf16> to vector<8x8xbf16>
    %42 = vector.extract_strided_slice %11 {offsets = [0, 16], sizes = [8, 8], strides = [1, 1]} : vector<8x32xbf16> to vector<8x8xbf16>
    %43 = vector.extract_strided_slice %14 {offsets = [0, 16], sizes = [8, 8], strides = [1, 1]} : vector<8x32xbf16> to vector<8x8xbf16>
    %cst_21 = arith.constant dense<0.000000e+00> : vector<8x8xf32>
    %44 = tpu.matmul %41, %42, %cst_21 {dimension_numbers = #tpu.dot_dimension_numbers<[1], [1], [0], [0], [0, 0, 1, 0], [], []>} : vector<8x8xbf16>, vector<8x8xbf16>, vector<8x8xf32> -> vector<8x8xf32>
    %cst_22 = arith.constant dense<0xFF800000> : vector<8xf32>
    %45 = vector.multi_reduction <maximumf>, %44, %cst_22 [1] : vector<8x8xf32> to vector<8xf32>
    %46 = vector.shape_cast %45 : vector<8xf32> to vector<8x1xf32>
    %47 = vector.broadcast %46 : vector<8x1xf32> to vector<8x8xf32>
    %48 = arith.subf %44, %47 : vector<8x8xf32>
    %49 = math.exp %48 : vector<8x8xf32>
    %cst_23 = arith.constant dense<0.000000e+00> : vector<8xf32>
    %50 = vector.multi_reduction <add>, %49, %cst_23 [1] : vector<8x8xf32> to vector<8xf32>
    %51 = vector.shape_cast %50 : vector<8xf32> to vector<8x1xf32>
    %52 = arith.truncf %49 : vector<8x8xf32> to vector<8x8xbf16>
    %cst_24 = arith.constant dense<0.000000e+00> : vector<8x8xf32>
    %53 = tpu.matmul %52, %43, %cst_24 {dimension_numbers = #tpu.dot_dimension_numbers<[1], [0], [0], [1], [0, 0, 1, 1], [], []>} : vector<8x8xbf16>, vector<8x8xbf16>, vector<8x8xf32> -> vector<8x8xf32>
    %54 = vector.extract_strided_slice %5 {offsets = [0, 24], sizes = [8, 8], strides = [1, 1]} : vector<8x32xbf16> to vector<8x8xbf16>
    %55 = vector.extract_strided_slice %11 {offsets = [0, 24], sizes = [8, 8], strides = [1, 1]} : vector<8x32xbf16> to vector<8x8xbf16>
    %56 = vector.extract_strided_slice %14 {offsets = [0, 24], sizes = [8, 8], strides = [1, 1]} : vector<8x32xbf16> to vector<8x8xbf16>
    %cst_25 = arith.constant dense<0.000000e+00> : vector<8x8xf32>
    %57 = tpu.matmul %54, %55, %cst_25 {dimension_numbers = #tpu.dot_dimension_numbers<[1], [1], [0], [0], [0, 0, 1, 0], [], []>} : vector<8x8xbf16>, vector<8x8xbf16>, vector<8x8xf32> -> vector<8x8xf32>
    %cst_26 = arith.constant dense<0xFF800000> : vector<8xf32>
    %58 = vector.multi_reduction <maximumf>, %57, %cst_26 [1] : vector<8x8xf32> to vector<8xf32>
    %59 = vector.shape_cast %58 : vector<8xf32> to vector<8x1xf32>
    %60 = vector.broadcast %59 : vector<8x1xf32> to vector<8x8xf32>
    %61 = arith.subf %57, %60 : vector<8x8xf32>
    %62 = math.exp %61 : vector<8x8xf32>
    %cst_27 = arith.constant dense<0.000000e+00> : vector<8xf32>
    %63 = vector.multi_reduction <add>, %62, %cst_27 [1] : vector<8x8xf32> to vector<8xf32>
    %64 = vector.shape_cast %63 : vector<8xf32> to vector<8x1xf32>
    %65 = arith.truncf %62 : vector<8x8xf32> to vector<8x8xbf16>
    %cst_28 = arith.constant dense<0.000000e+00> : vector<8x8xf32>
    %66 = tpu.matmul %65, %56, %cst_28 {dimension_numbers = #tpu.dot_dimension_numbers<[1], [0], [0], [1], [0, 0, 1, 1], [], []>} : vector<8x8xbf16>, vector<8x8xbf16>, vector<8x8xf32> -> vector<8x8xf32>
    %67 = tpu.reciprocal %25 {approx = true} : vector<8x1xf32> -> vector<8x1xf32>
    %68 = vector.broadcast %67 : vector<8x1xf32> to vector<8x8xf32>
    %69 = arith.mulf %27, %68 : vector<8x8xf32>
    %70 = arith.truncf %69 : vector<8x8xf32> to vector<8x8xbf16>
    %c0_29 = arith.constant 0 : index
    %c0_30 = arith.constant 0 : index
    %71 = vector.load %arg7[%c0_29, %c0_30] : memref<32x32xbf16, #tpu.memory_space<vmem>>, vector<8x32xbf16>
    %cst_31 = arith.constant dense<0.000000e+00> : vector<8x32xf32>
    %72 = tpu.matmul %70, %71, %cst_31 {dimension_numbers = #tpu.dot_dimension_numbers<[1], [0], [0], [1], [0, 0, 1, 1], [], []>} : vector<8x8xbf16>, vector<8x32xbf16>, vector<8x32xf32> -> vector<8x32xf32>
    %73 = arith.addf %1, %72 : vector<8x32xf32>
    %74 = tpu.reciprocal %38 {approx = true} : vector<8x1xf32> -> vector<8x1xf32>
    %75 = vector.broadcast %74 : vector<8x1xf32> to vector<8x8xf32>
    %76 = arith.mulf %40, %75 : vector<8x8xf32>
    %77 = arith.truncf %76 : vector<8x8xf32> to vector<8x8xbf16>
    %c8 = arith.constant 8 : index
    %c0_32 = arith.constant 0 : index
    %78 = vector.load %arg7[%c8, %c0_32] : memref<32x32xbf16, #tpu.memory_space<vmem>>, vector<8x32xbf16>
    %cst_33 = arith.constant dense<0.000000e+00> : vector<8x32xf32>
    %79 = tpu.matmul %77, %78, %cst_33 {dimension_numbers = #tpu.dot_dimension_numbers<[1], [0], [0], [1], [0, 0, 1, 1], [], []>} : vector<8x8xbf16>, vector<8x32xbf16>, vector<8x32xf32> -> vector<8x32xf32>
    %80 = arith.addf %73, %79 : vector<8x32xf32>
    %81 = tpu.reciprocal %51 {approx = true} : vector<8x1xf32> -> vector<8x1xf32>
    %82 = vector.broadcast %81 : vector<8x1xf32> to vector<8x8xf32>
    %83 = arith.mulf %53, %82 : vector<8x8xf32>
    %84 = arith.truncf %83 : vector<8x8xf32> to vector<8x8xbf16>
    %c16 = arith.constant 16 : index
    %c0_34 = arith.constant 0 : index
    %85 = vector.load %arg7[%c16, %c0_34] : memref<32x32xbf16, #tpu.memory_space<vmem>>, vector<8x32xbf16>
    %cst_35 = arith.constant dense<0.000000e+00> : vector<8x32xf32>
    %86 = tpu.matmul %84, %85, %cst_35 {dimension_numbers = #tpu.dot_dimension_numbers<[1], [0], [0], [1], [0, 0, 1, 1], [], []>} : vector<8x8xbf16>, vector<8x32xbf16>, vector<8x32xf32> -> vector<8x32xf32>
    %87 = arith.addf %80, %86 : vector<8x32xf32>
    %88 = tpu.reciprocal %64 {approx = true} : vector<8x1xf32> -> vector<8x1xf32>
    %89 = vector.broadcast %88 : vector<8x1xf32> to vector<8x8xf32>
    %90 = arith.mulf %66, %89 : vector<8x8xf32>
    %91 = arith.truncf %90 : vector<8x8xf32> to vector<8x8xbf16>
    %c24 = arith.constant 24 : index
    %c0_36 = arith.constant 0 : index
    %92 = vector.load %arg7[%c24, %c0_36] : memref<32x32xbf16, #tpu.memory_space<vmem>>, vector<8x32xbf16>
    %cst_37 = arith.constant dense<0.000000e+00> : vector<8x32xf32>
    %93 = tpu.matmul %91, %92, %cst_37 {dimension_numbers = #tpu.dot_dimension_numbers<[1], [0], [0], [1], [0, 0, 1, 1], [], []>} : vector<8x8xbf16>, vector<8x32xbf16>, vector<8x32xf32> -> vector<8x32xf32>
    %94 = arith.addf %87, %93 : vector<8x32xf32>
    %c0_38 = arith.constant 0 : index
    %c0_39 = arith.constant 0 : index
    %95 = vector.load %arg8[%c0_38, %c0_39] : memref<1x32xf32, #tpu.memory_space<vmem>>, vector<1x32xf32>
    %c0_40 = arith.constant 0 : index
    %c0_41 = arith.constant 0 : index
    %96 = vector.load %arg9[%c0_40, %c0_41] : memref<1x32xf32, #tpu.memory_space<vmem>>, vector<1x32xf32>
    %cst_42 = arith.constant dense<0.000000e+00> : vector<8xf32>
    %97 = vector.multi_reduction <add>, %94, %cst_42 [1] : vector<8x32xf32> to vector<8xf32>
    %98 = vector.shape_cast %97 : vector<8xf32> to vector<8x1xf32>
    %cst_43 = arith.constant 3.200000e+01 : f32
    %99 = vector.broadcast %cst_43 : f32 to vector<8x1xf32>
    %100 = arith.divf %98, %99 : vector<8x1xf32>
    %101 = vector.broadcast %100 : vector<8x1xf32> to vector<8x32xf32>
    %102 = arith.subf %94, %101 : vector<8x32xf32>
    %103 = arith.mulf %102, %102 : vector<8x32xf32>
    %cst_44 = arith.constant dense<0.000000e+00> : vector<8xf32>
    %104 = vector.multi_reduction <add>, %103, %cst_44 [1] : vector<8x32xf32> to vector<8xf32>
    %105 = vector.shape_cast %104 : vector<8xf32> to vector<8x1xf32>
    %cst_45 = arith.constant 3.200000e+01 : f32
    %106 = vector.broadcast %cst_45 : f32 to vector<8x1xf32>
    %107 = arith.divf %105, %106 : vector<8x1xf32>
    %108 = vector.broadcast %100 : vector<8x1xf32> to vector<8x32xf32>
    %109 = arith.subf %94, %108 : vector<8x32xf32>
    %cst_46 = arith.constant 9.99999997E-7 : f32
    %110 = vector.broadcast %cst_46 : f32 to vector<8x1xf32>
    %111 = arith.addf %107, %110 : vector<8x1xf32>
    %112 = math.rsqrt %111 : vector<8x1xf32>
    %113 = vector.broadcast %112 : vector<8x1xf32> to vector<8x32xf32>
    %114 = arith.mulf %109, %113 : vector<8x32xf32>
    %115 = vector.broadcast %95 : vector<1x32xf32> to vector<8x32xf32>
    %116 = arith.mulf %114, %115 : vector<8x32xf32>
    %117 = vector.broadcast %96 : vector<1x32xf32> to vector<8x32xf32>
    %118 = arith.addf %116, %117 : vector<8x32xf32>
    %119 = arith.truncf %118 : vector<8x32xf32> to vector<8x32xbf16>
    %c0_47 = arith.constant 0 : index
    %c0_48 = arith.constant 0 : index
    %120 = vector.load %arg10[%c0_47, %c0_48] : memref<32x64xbf16, #tpu.memory_space<vmem>>, vector<32x64xbf16>
    %cst_49 = arith.constant dense<0.000000e+00> : vector<8x64xf32>
    %121 = tpu.matmul %119, %120, %cst_49 {dimension_numbers = #tpu.dot_dimension_numbers<[1], [0], [0], [1], [0, 0, 1, 1], [], []>} : vector<8x32xbf16>, vector<32x64xbf16>, vector<8x64xf32> -> vector<8x64xf32>
    %c0_50 = arith.constant 0 : index
    %c0_51 = arith.constant 0 : index
    %122 = vector.load %arg11[%c0_50, %c0_51] : memref<1x64xf32, #tpu.memory_space<vmem>>, vector<1x64xf32>
    %123 = vector.broadcast %122 : vector<1x64xf32> to vector<8x64xf32>
    %124 = arith.addf %121, %123 : vector<8x64xf32>
    %cst_52 = arith.constant 0.000000e+00 : f32
    %125 = vector.broadcast %cst_52 : f32 to vector<8x64xf32>
    %126 = arith.maximumf %124, %125 : vector<8x64xf32>
    %127 = arith.truncf %126 : vector<8x64xf32> to vector<8x64xbf16>
    %c0_53 = arith.constant 0 : index
    %c0_54 = arith.constant 0 : index
    %128 = vector.load %arg12[%c0_53, %c0_54] : memref<64x32xbf16, #tpu.memory_space<vmem>>, vector<64x32xbf16>
    %cst_55 = arith.constant dense<0.000000e+00> : vector<8x32xf32>
    %129 = tpu.matmul %127, %128, %cst_55 {dimension_numbers = #tpu.dot_dimension_numbers<[1], [0], [0], [1], [0, 0, 1, 1], [], []>} : vector<8x64xbf16>, vector<64x32xbf16>, vector<8x32xf32> -> vector<8x32xf32>
    %c0_56 = arith.constant 0 : index
    %c0_57 = arith.constant 0 : index
    %130 = vector.load %arg13[%c0_56, %c0_57] : memref<1x32xf32, #tpu.memory_space<vmem>>, vector<1x32xf32>
    %131 = vector.broadcast %130 : vector<1x32xf32> to vector<8x32xf32>
    %132 = arith.addf %129, %131 : vector<8x32xf32>
    %133 = arith.addf %132, %118 : vector<8x32xf32>
    %c0_58 = arith.constant 0 : index
    %c0_59 = arith.constant 0 : index
    %134 = vector.load %arg14[%c0_58, %c0_59] : memref<1x32xf32, #tpu.memory_space<vmem>>, vector<1x32xf32>
    %c0_60 = arith.constant 0 : index
    %c0_61 = arith.constant 0 : index
    %135 = vector.load %arg15[%c0_60, %c0_61] : memref<1x32xf32, #tpu.memory_space<vmem>>, vector<1x32xf32>
    %cst_62 = arith.constant dense<0.000000e+00> : vector<8xf32>
    %136 = vector.multi_reduction <add>, %133, %cst_62 [1] : vector<8x32xf32> to vector<8xf32>
    %137 = vector.shape_cast %136 : vector<8xf32> to vector<8x1xf32>
    %cst_63 = arith.constant 3.200000e+01 : f32
    %138 = vector.broadcast %cst_63 : f32 to vector<8x1xf32>
    %139 = arith.divf %137, %138 : vector<8x1xf32>
    %140 = vector.broadcast %139 : vector<8x1xf32> to vector<8x32xf32>
    %141 = arith.subf %133, %140 : vector<8x32xf32>
    %142 = arith.mulf %141, %141 : vector<8x32xf32>
    %cst_64 = arith.constant dense<0.000000e+00> : vector<8xf32>
    %143 = vector.multi_reduction <add>, %142, %cst_64 [1] : vector<8x32xf32> to vector<8xf32>
    %144 = vector.shape_cast %143 : vector<8xf32> to vector<8x1xf32>
    %cst_65 = arith.constant 3.200000e+01 : f32
    %145 = vector.broadcast %cst_65 : f32 to vector<8x1xf32>
    %146 = arith.divf %144, %145 : vector<8x1xf32>
    %147 = vector.broadcast %139 : vector<8x1xf32> to vector<8x32xf32>
    %148 = arith.subf %133, %147 : vector<8x32xf32>
    %cst_66 = arith.constant 9.99999997E-7 : f32
    %149 = vector.broadcast %cst_66 : f32 to vector<8x1xf32>
    %150 = arith.addf %146, %149 : vector<8x1xf32>
    %151 = math.rsqrt %150 : vector<8x1xf32>
    %152 = vector.broadcast %151 : vector<8x1xf32> to vector<8x32xf32>
    %153 = arith.mulf %148, %152 : vector<8x32xf32>
    %154 = vector.broadcast %134 : vector<1x32xf32> to vector<8x32xf32>
    %155 = arith.mulf %153, %154 : vector<8x32xf32>
    %156 = vector.broadcast %135 : vector<1x32xf32> to vector<8x32xf32>
    %157 = arith.addf %155, %156 : vector<8x32xf32>
    %c0_67 = arith.constant 0 : index
    %c0_68 = arith.constant 0 : index
    %c0_69 = arith.constant 0 : index
    %158 = vector.load %arg16[%c0_67, %c0_68, %c0_69] : memref<1x8x32xf32, #tpu.memory_space<vmem>>, vector<1x8x32xf32>
    %159 = vector.shape_cast %158 : vector<1x8x32xf32> to vector<8x32xf32>
    %160 = vector.shape_cast %157 : vector<8x32xf32> to vector<1x8x32xf32>
    tpu.vector_store %arg16[%c0_67, %c0_68, %c0_69], %160 {strides = array<i32>} : memref<1x8x32xf32, #tpu.memory_space<vmem>>, vector<1x8x32xf32>,
    return
  }
  func.func @transform_0(%arg0: i32, %arg1: i32) -> (i32, i32, i32) {
    %c0_i32 = arith.constant 0 : i32
    %c0_i32_0 = arith.constant 0 : i32
    return %arg0, %arg1, %c0_i32 : i32, i32, i32
  }
  func.func @transform_1(%arg0: i32, %arg1: i32) -> (i32, i32, i32) {
    %c0_i32 = arith.constant 0 : i32
    %c0_i32_0 = arith.constant 0 : i32
    %c0_i32_1 = arith.constant 0 : i32
    return %arg0, %c0_i32, %c0_i32_0 : i32, i32, i32
  }
  func.func @transform_2(%arg0: i32, %arg1: i32) -> (i32, i32) {
    %c0_i32 = arith.constant 0 : i32
    %c0_i32_0 = arith.constant 0 : i32
    %c0_i32_1 = arith.constant 0 : i32
    return %c0_i32, %c0_i32_0 : i32, i32
  }
  func.func @transform_3(%arg0: i32, %arg1: i32) -> (i32, i32) {
    %c0_i32 = arith.constant 0 : i32
    %c0_i32_0 = arith.constant 0 : i32
    %c0_i32_1 = arith.constant 0 : i32
    return %c0_i32, %c0_i32_0 : i32, i32
  }
  func.func @transform_4(%arg0: i32, %arg1: i32) -> (i32, i32) {
    %c0_i32 = arith.constant 0 : i32
    %c0_i32_0 = arith.constant 0 : i32
    %c0_i32_1 = arith.constant 0 : i32
    return %c0_i32, %c0_i32_0 : i32, i32
  }
  func.func @transform_5(%arg0: i32, %arg1: i32) -> (i32, i32) {
    %c0_i32 = arith.constant 0 : i32
    %c0_i32_0 = arith.constant 0 : i32
    %c0_i32_1 = arith.constant 0 : i32
    return %c0_i32, %c0_i32_0 : i32, i32
  }
  func.func @transform_6(%arg0: i32, %arg1: i32) -> (i32, i32) {
    %c0_i32 = arith.constant 0 : i32
    %c0_i32_0 = arith.constant 0 : i32
    %c0_i32_1 = arith.constant 0 : i32
    return %c0_i32, %c0_i32_0 : i32, i32
  }
  func.func @transform_7(%arg0: i32, %arg1: i32) -> (i32, i32) {
    %c0_i32 = arith.constant 0 : i32
    %c0_i32_0 = arith.constant 0 : i32
    %c0_i32_1 = arith.constant 0 : i32
    return %c0_i32, %c0_i32_0 : i32, i32
  }
  func.func @transform_8(%arg0: i32, %arg1: i32) -> (i32, i32) {
    %c0_i32 = arith.constant 0 : i32
    %c0_i32_0 = arith.constant 0 : i32
    %c0_i32_1 = arith.constant 0 : i32
    return %c0_i32, %c0_i32_0 : i32, i32
  }
  func.func @transform_9(%arg0: i32, %arg1: i32) -> (i32, i32) {
    %c0_i32 = arith.constant 0 : i32
    %c0_i32_0 = arith.constant 0 : i32
    %c0_i32_1 = arith.constant 0 : i32
    return %c0_i32, %c0_i32_0 : i32, i32
  }
  func.func @transform_10(%arg0: i32, %arg1: i32) -> (i32, i32) {
    %c0_i32 = arith.constant 0 : i32
    %c0_i32_0 = arith.constant 0 : i32
    %c0_i32_1 = arith.constant 0 : i32
    return %c0_i32, %c0_i32_0 : i32, i32
  }
  func.func @transform_11(%arg0: i32, %arg1: i32) -> (i32, i32) {
    %c0_i32 = arith.constant 0 : i32
    %c0_i32_0 = arith.constant 0 : i32
    %c0_i32_1 = arith.constant 0 : i32
    return %c0_i32, %c0_i32_0 : i32, i32
  }
  func.func @transform_12(%arg0: i32, %arg1: i32) -> (i32, i32) {
    %c0_i32 = arith.constant 0 : i32
    %c0_i32_0 = arith.constant 0 : i32
    %c0_i32_1 = arith.constant 0 : i32
    return %c0_i32, %c0_i32_0 : i32, i32
  }
  func.func @transform_13(%arg0: i32, %arg1: i32) -> (i32, i32) {
    %c0_i32 = arith.constant 0 : i32
    %c0_i32_0 = arith.constant 0 : i32
    %c0_i32_1 = arith.constant 0 : i32
    return %c0_i32, %c0_i32_0 : i32, i32
  }
  func.func @transform_14(%arg0: i32, %arg1: i32) -> (i32, i32, i32) {
    %c0_i32 = arith.constant 0 : i32
    %c0_i32_0 = arith.constant 0 : i32
    return %arg0, %arg1, %c0_i32 : i32, i32, i32
  }
}

</mosaic_0001>

<bundles_post_ra>
// kernel: tpu_custom_call.1
= control target key start
LH: loop header
LB: loop body
LE: loop exit
PB: predicated region body
PF: predicated region fallthrough
CT: control target
= control target key end

     0   :  { %6 = vsyncpa [#allocation3], 0  ;;  %s115_s0 = inlined_call_operand.hbm [shape: f32[8,128], index: 0, kind: input, shape index: {}]   ;;  %s116_s1 = inlined_call_operand.hbm [shape: f32[8,128], index: 1, kind: output, shape index: {}]  }
   0x1   :  { %7 = vsyncpa [#allocation4], 0  ;;  %s13_s8 = sshll.u32 %s115_s0, 4  ;;  %s97_s9 = smov [#allocation2]   ;;  %s14_s8 = int_to_ptr.hbm [resolvable:$true] %s13_s8 }
   0x2   :  { %s15_s10 = sshll.u32 %s97_s9, 4  ;;  %s16_s10 = int_to_ptr.vmem [resolvable:$true] %s15_s10 }
   0x3   :  { %18 = dma.hbm_to_vmem [thread:$0]  %s14_s8, 128, %s16_s10, [#allocation3]  }
   0x4   :  { %93 = dma.done.wait [#allocation3], 128  }
   0x5   :  { %94 = vsyncadd [#allocation3], 4294967168  ;;  %s98_s11 = smov [#allocation5]   ;;  %s33_s15 = sshll.u32 %s116_s1, 4  ;;  %v23_v0 = vld [vmem:[#allocation2] sm:$0xff]  ;;  %s34_s15 = int_to_ptr.hbm [resolvable:$true] %s33_s15 }
   0x6   :  { %s31_s12 = sshll.u32 %s98_s11, 4  ;;  %v24_v1 = vadd.f32 1.0, %v23_v0  ;;  %s32_s12 = int_to_ptr.vmem [resolvable:$true] %s31_s12 }
   0x8   :  { %25 = vst [vmem:[#allocation5] sm:$0xff] %v24_v1 }
   0x9   :  { %36 = dma.vmem_to_hbm [thread:$0]  %s32_s12, 128, %s34_s15, [#allocation4]  }
   0xa   :  { %95 = dma.done.wait [#allocation4], 128  }
   0xb   :  { %96 = vsyncadd [#allocation4], 4294967168 }
   0xc   :  { %41 = vsyncpa [#allocation3], 1 }
   0xd   :  { %42 = vsyncpa [#allocation4], 1 }

// kernel: cross_attn_forward.5
= control target key start
LH: loop header
LB: loop body
LE: loop exit
PB: predicated region body
PF: predicated region fallthrough
CT: control target
= control target key end

     0   :  { %s314_s12 = smov 0   ;;  %s347_s0 = inlined_call_operand.vmem [shape: f32[2,8,32], index: 0, kind: input, shape index: {}]   ;;  %s348_s1 = inlined_call_operand.vmem [shape: f32[1,32], index: 1, kind: input, shape index: {}]   ;;  %s349_s2 = inlined_call_operand.vmem [shape: f32[1,32], index: 2, kind: input, shape index: {}]   ;;  %s350_s3 = inlined_call_operand.vmem [shape: f32[2,8,32], index: 3, kind: output, shape index: {}]  }
   0x1 LB: > { %s261_s13 = sadd.s32 4294967295, %s291_s12   ;;  %p265_p0 = scmp.ge.s32.totalorder %s291_s12, 1  ;;  %s291_s12 = sphi %s314_s12, %s13_s12  }
   0x2   : > { %p136_p1 = scmp.lt.s32.totalorder %s291_s12, 3 }
   0x4   : > { %p137_p2 = pnand %p265_p0, %p136_p1 }
   0x5   : > { %p158_p3 = scmp.lt.s32.totalorder (!%p137_p2), %s261_s13, 1 }
   0x6   : > { %140 = sbr.rel (%p137_p2) target bundleno = 284 (0x11c), region = 32 }
   0xb   : > { %s352_s13 = smov (!%p158_p3, %s261_s13), 1  ;;  %vm169_vm0 = vcmask 261120   ;;  %v293_v2 = vmov 32.0   ;;  %v279_v23 = vld [vmem:[%s348_s1] ss:$0 sm:$0xff] }
   0xc   : > { %s266_s14 = sshll.u32 %s352_s13, 3  ;;  %281 = vrcp.f32 %v293_v2  ;;  %v280_v25 = vld [vmem:[%s349_s2] ss:$0 sm:$0xff] }
   0xd   : > { %s161_s17 = scalar_lea.vmem %s347_s0, %s266_s14  ;;  %s165_s24 = scalar_lea.vmem %s350_s3, %s266_s14 }
   0xe   : > { %v166_v0 = vld [vmem:[%s161_s17] sm:$0xff] }
   0xf   : > { %v170_v1 = vsel %vm169_vm0, %v166_v0, 0.0 }
  0x10   : > { %171 = vadd.xlane.f32.xlu0 %v170_v1 }
  0x12   : > { %v282_v3 = vpop.eup %281 }
  0x13   : > { %v174_v4 = vmul.f32 32.0, %v282_v3  ;;  %vm178_vm1 = vweird.f32 %v282_v3 }
  0x15   : > { %v175_v5 = vsub.f32 1.0, %v174_v4 }
  0x17   : > { %v176_v6 = vmul.f32 %v282_v3, %v175_v5 }
  0x19   : > { %v177_v7 = vadd.f32 %v282_v3, %v176_v6 }
  0x1b   : > { %v179_v8 = vsel %vm178_vm1, %v282_v3, %v177_v7 }
  0x83   : > { %v172_v9 = vpop.xlane.xlu0 %171 }
  0x84   : > { %v180_v10 = vmul.f32 %v179_v8, %v172_v9 }
  0x86   : > { %v181_v11 = vsub.f32 %v166_v0, %v180_v10 }
  0x88   : > { %v182_v12 = vmul.f32 %v181_v11, %v181_v11 }
  0x8a   : > { %v183_v13 = vsel %vm169_vm0, %v182_v12, 0.0 }
  0x8b   : > { %184 = vadd.xlane.f32.xlu0 %v183_v13 }
  0xfe   : > { %v185_v14 = vpop.xlane.xlu0 %184 }
  0xff   : > { %v186_v15 = vmul.f32 %v185_v14, %v179_v8 }
 0x101   : > { %v187_v16 = vadd.f32 1e-06, %v186_v15 }
 0x103   : > { %283 = vrsqrt.f32 %v187_v16  ;;  %vm194_vm3 = vweird.f32 %v187_v16 }
 0x109   : > { %v284_v17 = vpop.eup %283 }
 0x10a   : > { %v189_v18 = vmul.f32 %v284_v17, %v187_v16  ;;  %vm195_vm2 = vweird.f32 %v284_v17 }
 0x10b   : > { %vm196_vm4 = vmor %vm194_vm3, %vm195_vm2 }
 0x10c   : > { %v190_v19 = vmul.f32 %v284_v17, %v189_v18 }
 0x10e   : > { %v191_v20 = vmul.f32 0.5, %v190_v19 }
 0x110   : > { %v192_v21 = vsub.f32 1.5, %v191_v20 }
 0x112   : > { %v193_v22 = vmul.f32 %v284_v17, %v192_v21 }
 0x114   : > { %v197_v24 = vsel %vm196_vm4, %v284_v17, %v193_v22 }
 0x115   : > { %v198_v26 = vmul.f32 %v197_v24, %v181_v11 }
 0x117   : > { %v202_v27 = vmul.f32 %v279_v23, %v198_v26 }
 0x119   : > { %v206_v28 = vadd.f32 %v280_v25, %v202_v27 }
 0x11b   : > { %207 = vst.msk [vmem:[%s165_s24] sm:$0xff] %vm169_vm0, %v206_v28 }
 0x11c PF: > { %s13_s12 = sadd.s32 1, %s291_s12  }
 0x11d   : > { %p10_p4 = scmp.ge.s32.totalorder %s13_s12, 4  }
 0x11f   :  { %12 = sbr.rel (!%p10_p4) target bundleno = 1 (0x1), region = 62 }

// kernel: cross_attn_forward.7
= control target key start
LH: loop header
LB: loop body
LE: loop exit
PB: predicated region body
PF: predicated region fallthrough
CT: control target
= control target key end

     0   :  { %s2279_s0 = inlined_call_operand.vmem [shape: f32[2,8,32], index: 0, kind: input, shape index: {}, may-alias: {0,1}]   ;;  %s2280_s1 = inlined_call_operand.vmem [shape: f32[2,8,32], index: 1, kind: input, shape index: {}, may-alias: {0,1}]   ;;  %s2281_s2 = inlined_call_operand.vmem [shape: bf16[32,32], index: 2, kind: input, shape index: {}]   ;;  %s2282_s3 = inlined_call_operand.vmem [shape: bf16[32,32], index: 3, kind: input, shape index: {}]   ;;  %s2283_s4 = inlined_call_operand.hbm [shape: bf16[32,32], index: 4, kind: input, shape index: {}]   ;;  %s2284_s5 = inlined_call_operand.hbm [shape: bf16[32,32], index: 5, kind: input, shape index: {}]   ;;  %s2285_s6 = inlined_call_operand.hbm [shape: f32[1,32], index: 6, kind: input, shape index: {}]   ;;  %s2286_s7 = inlined_call_operand.hbm [shape: f32[1,32], index: 7, kind: input, shape index: {}]   ;;  %s2287_s8 = inlined_call_operand.hbm [shape: bf16[32,64], index: 8, kind: input, shape index: {}]   ;;  %s2288_s9 = inlined_call_operand.hbm [shape: f32[1,64], index: 9, kind: input, shape index: {}]   ;;  %s2289_s10 = inlined_call_operand.vmem [shape: bf16[64,32], index: 10, kind: input, shape index: {}]   ;;  %s2290_s11 = inlined_call_operand.hbm [shape: f32[1,32], index: 11, kind: input, shape index: {}]   ;;  %s2291_s12 = inlined_call_operand.hbm [shape: f32[1,32], index: 12, kind: input, shape index: {}]   ;;  %s2292_s13 = inlined_call_operand.hbm [shape: f32[1,32], index: 13, kind: input, shape index: {}]   ;;  %s2293_s14 = inlined_call_operand.vmem [shape: f32[2,8,32], index: 14, kind: output, shape index: {}]  }
   0x1   :  { %2297 = sst [smem:[#allocation22_spill]] %s2283_s4 }
   0x2   :  { %2298 = sst [smem:[#allocation23_spill]] %s2284_s5 }
   0x3   :  { %2299 = sst [smem:[#allocation24_spill]] %s2285_s6 }
   0x4   :  { %2300 = sst [smem:[#allocation25_spill]] %s2286_s7 }
   0x5   :  { %2301 = sst [smem:[#allocation26_spill]] %s2288_s9 }
   0x6   :  { %19 = vsyncpa [#allocation3], 0 }
   0x7   :  { %20 = vsyncpa [#allocation5], 0 }
   0x8   :  { %21 = vsyncpa [#allocation8], 0 }
   0x9   :  { %22 = vsyncpa [#allocation11], 0 }
   0xa   :  { %23 = vsyncpa [#allocation14], 0  ;;  %s2065_s29 = smov 0   ;;  %s2067_s30 = smov 0  }
   0xb   :  { %s2069_s15 = smov 0  }
   0xc LB: > { %2302 = sst [smem:[#allocation21_spill]] %s1973_s15  ;;  %s1407_s16 = sadd.s32 4294967295, %s1973_s15   ;;  %s1973_s15 = sphi %s2069_s15, %s29_s15   ;;  %s1969_s30 = sphi %s2067_s30, %s2314_s30   ;;  %s1965_s29 = sphi %s2065_s29, %s2313_s29  }
   0xd   : > { %p1409_p0 = scmp.ge.s32.totalorder %s1973_s15, 1  ;;  %p380_p1 = scmp.lt.s32.totalorder %s1973_s15, 3 }
   0xe   : > { %p2083_p2 = scmp.eq.s32.totalorder %s1407_s16, 0  ;;  %s2304_s5 = sld [smem:[#allocation23_spill]] }
   0xf   : > { %p2090_p3 = pnand %p1409_p0, %p380_p1  ;;  %s2306_s7 = sld [smem:[#allocation25_spill]] }
  0x10   : > { %s1975_s25 = smov [#allocation4]   ;;  %s1976_s28 = smov [#allocation7]  }
  0x11   : > { %p1548_p4 = pneg %p2090_p3  ;;  %s413_s26 = sshll.u32 %s1975_s25, 4  ;;  %s414_s26 = int_to_ptr.vmem [resolvable:$true] %s413_s26 }
  0x12   : > { %s440_s16 = sshll.u32 %s1976_s28, 4  ;;  %s2308_s9 = sld [smem:[#allocation26_spill]]  ;;  %s441_s16 = int_to_ptr.vmem [resolvable:$true] %s440_s16 }
  0x13   : > { %p2101_p5 = pnand %p2083_p2, %p1548_p4  ;;  %s2295_s23 = smov 64  }
  0x14   : > { %s411_s20 = sshll.u32 %s2304_s5, 4  ;;  %s1978_s25 = smov 4   ;;  %s412_s20 = int_to_ptr.hbm [resolvable:$true] %s411_s20 }
  0x15   : > { %s438_s24 = sshll.u32 %s2306_s7, 4  ;;  %s1979_s5 = smov [#allocation10]   ;;  %s439_s24 = int_to_ptr.hbm [resolvable:$true] %s438_s24 }
  0x16   : > { %1554 = dma.hbm_to_vmem [thread:$0]  (!%p2101_p5), %s412_s20, 256, %s414_s26, [#allocation5], %s2295_s23, %s2295_s23, %s1978_s25  }
  0x17   : > { %1560 = dma.hbm_to_vmem [thread:$0]  (!%p2101_p5), %s439_s24, 16, %s441_s16, [#allocation8]  }
  0x18   : > { %s464_s22 = sshll.u32 %s2308_s9, 4  ;;  %s466_s7 = sshll.u32 %s1979_s5, 4  ;;  %s465_s22 = int_to_ptr.hbm [resolvable:$true] %s464_s22  ;;  %s467_s7 = int_to_ptr.vmem [resolvable:$true] %s466_s7 }
  0x19   : > { %s491_s18 = sshll.u32 %s2291_s12, 4  ;;  %s1980_s19 = smov [#allocation13]   ;;  %s492_s18 = int_to_ptr.hbm [resolvable:$true] %s491_s18 }
  0x1a   : > { %1566 = dma.hbm_to_vmem [thread:$0]  (!%p2101_p5), %s465_s22, 16, %s467_s7, [#allocation11]  }
  0x1b   : > { %s493_s9 = sshll.u32 %s1980_s19, 4  ;;  %s41_s20 = sadd.s32 1, %s1969_s30  ;;  %s494_s9 = int_to_ptr.vmem [resolvable:$true] %s493_s9 }
  0x1c   : > { %1572 = dma.hbm_to_vmem [thread:$0]  (!%p2101_p5), %s492_s18, 16, %s494_s9, [#allocation14]  }
  0x1d   : > { %p43_p6 = scmp.ge.s32.totalorder %s41_s20, 2  ;;  %s2309_s4 = sld [smem:[#allocation22_spill]] }
  0x1e   : > { %s1981_s15 = smov [#allocation2]   ;;  %s2310_s6 = sld [smem:[#allocation24_spill]] }
  0x1f   : > { %s2316_s20 = smov (%p43_p6, %s41_s20), 0  ;;  %s399_s16 = sshll.u32 %s1981_s15, 4  ;;  %s400_s16 = int_to_ptr.vmem [resolvable:$true] %s399_s16 }
  0x20   : > { %s2311_s9 = smov 64   ;;  %s449_s19 = sshll.u32 %s2287_s8, 4  ;;  %s450_s19 = int_to_ptr.hbm [resolvable:$true] %s449_s19 }
  0x21   : > { %s1982_s24 = smov [#allocation6]   ;;  %s1983_s23 = smov [#allocation9]  }
  0x22   : > { %s428_s26 = sshll.u32 %s1982_s24, 4  ;;  %s451_s15 = sshll.u32 %s1983_s23, 4  ;;  %s429_s26 = int_to_ptr.vmem [resolvable:$true] %s428_s26  ;;  %s452_s15 = int_to_ptr.vmem [resolvable:$true] %s451_s15 }
  0x23   : > { %s397_s5 = sshll.u32 %s2309_s4, 4  ;;  %s503_s22 = sshll.u32 %s2292_s13, 4  ;;  %s398_s5 = int_to_ptr.hbm [resolvable:$true] %s397_s5  ;;  %s504_s22 = int_to_ptr.hbm [resolvable:$true] %s503_s22 }
  0x24   : > { %s426_s7 = sshll.u32 %s2310_s6, 4  ;;  %s479_s6 = sshll.u32 %s2290_s11, 4  ;;  %s427_s7 = int_to_ptr.hbm [resolvable:$true] %s426_s7  ;;  %s480_s6 = int_to_ptr.hbm [resolvable:$true] %s479_s6 }
  0x25   : > { %1551 = dma.hbm_to_vmem [thread:$0]  (!%p2101_p5), %s398_s5, 256, %s400_s16, [#allocation3], %s2311_s9, %s2311_s9, %s1978_s25  }
  0x26   : > { %1557 = dma.hbm_to_vmem [thread:$0]  (!%p2101_p5), %s427_s7, 16, %s429_s26, [#allocation5]  }
  0x27   : > { %1563 = dma.hbm_to_vmem [thread:$0]  (!%p2101_p5), %s450_s19, 256, %s452_s15, [#allocation8], %s2311_s9, %s2311_s9, %s1978_s25  }
  0x28   : > { %s1984_s18 = smov [#allocation12]   ;;  %s1985_s24 = smov [#allocation15]  }
  0x29   : > { %s481_s7 = sshll.u32 %s1984_s18, 4  ;;  %s505_s4 = sshll.u32 %s1985_s24, 4  ;;  %s482_s7 = int_to_ptr.vmem [resolvable:$true] %s481_s7  ;;  %s506_s4 = int_to_ptr.vmem [resolvable:$true] %s505_s4 }
  0x2a   : > { %1569 = dma.hbm_to_vmem [thread:$0]  (!%p2101_p5), %s480_s6, 16, %s482_s7, [#allocation11]  }
  0x2b   : > { %1575 = dma.hbm_to_vmem [thread:$0]  (!%p2101_p5), %s504_s22, 16, %s506_s4, [#allocation14]  }
  0x2c   : > { %535 = sbr.rel (%p2090_p3) target bundleno = 1670 (0x686), region = 76 }
  0x31   : > { %1944 = dma.done.wait (%p2083_p2), [#allocation3], 256  }
  0x32   : > { %1946 = vsyncadd (%p2083_p2), [#allocation3], 4294967040 }
  0x33   : > { %1948 = dma.done.wait (%p2083_p2), [#allocation5], 272  }
  0x34   : > { %1950 = vsyncadd (%p2083_p2), [#allocation5], 4294967024 }
  0x35   : > { %1952 = dma.done.wait (%p2083_p2), [#allocation8], 272  }
  0x36   : > { %1954 = vsyncadd (%p2083_p2), [#allocation8], 4294967024 }
  0x37   : > { %1956 = dma.done.wait (%p2083_p2), [#allocation11], 32  }
  0x38   : > { %1958 = vsyncadd (%p2083_p2), [#allocation11], 4294967264 }
  0x39   : > { %1960 = dma.done.wait (%p2083_p2), [#allocation14], 32  }
  0x3a   : > { %1962 = vsyncadd (%p2083_p2), [#allocation14], 4294967264  ;;  %p630_p7 = scmp.lt.s32.totalorder %s1965_s29, 1  ;;  %v1503_v0 = vld [vmem:[%s2282_s3 + $0x8] sm:$0xff]  ;;  %v1502_v1 = vld [vmem:[%s2282_s3] sm:$0xff]  ;;  %vm667_vm0 = vcmask 261120  }
  0x3b   : > { %v1501_v2 = vld [vmem:[%s2281_s2 + $0x8] sm:$0xff]  ;;  %v1500_v4 = vld [vmem:[%s2281_s2] sm:$0xff]  ;;  %712 = vmatpush.bf16.msra.mxu1 %v1503_v0  ;;  %vm750_vm1 = vcmask 64512   ;;  %s1986_s18 = smov 104   ;;  %s1987_s7 = smov 120   ;;  %vm783_vm2 = vcmask 1043456  }
  0x3c   : > { %s2318_s29 = smov (!%p630_p7, %s1965_s29), 1  ;;  %677 = vmatpush.bf16.msra.mxu0 %v1501_v2  ;;  %v1505_v8 = vld [vmem:[#allocation2 + $0x8] sm:$0xff]  ;;  %v1504_v9 = vld [vmem:[#allocation2] sm:$0xff]  ;;  %s1988_s24 = smov 112   ;;  %v974_v58 = vld [vmem:[#allocation4] sm:$0xf] }
  0x3d   : > { %s2180_s6 = sshll.u32 %s2318_s29, 3  ;;  %742 = vmatpush.bf16.msra.mxu2 %v1505_v8  ;;  %v979_v59 = vsel %vm783_vm2, %v974_v58, 0  ;;  %vm1181_vm7 = vcmask 523264  }
  0x3e   : > { %s640_s25 = scalar_lea.vmem %s2280_s1, %s2180_s6  ;;  %s636_s26 = scalar_lea.vmem %s2279_s0, %s2180_s6 }
  0x3f   : > { %v685_v3 = vld [vmem:[%s640_s25] sm:$0xff]  ;;  %713 = vmatpush.bf16.msra.mxu1 %v1502_v1  ;;  %s647_s28 = scalar_lea.vmem %s2293_s14, %s2180_s6 }
  0x40   : > { %v2202_v5 = vld [vmem:[%s636_s26] sm:$0xff]  ;;  %v686_v6 = vpack.c.bf16 %v685_v3, %v685_v3  ;;  %678 = vmatpush.bf16.msra.mxu0 %v1500_v4 }
  0x41   : > { %v650_v7 = vpack.c.bf16 %v2202_v5, %v2202_v5  ;;  %743 = vmatpush.bf16.msra.mxu2 %v1504_v9 }
  0x42   : > { %1450 = vmatmul.msk.bf16.vlgmr.msra.gmra.mxu1 %vm667_vm0, %v686_v6 }
  0x43   : > { %1441 = vmatmul.msk.bf16.vlgmr.msra.gmra.mxu0 %vm667_vm0, %v650_v7 }
  0x44   : > { %1459 = vmatmul.msk.bf16.vlgmr.msra.gmra.mxu2 %vm667_vm0, %v686_v6 }
  0xbf   : > { %v715_v10 = vpop.f32.mrf.mxu1 }
  0xc0   : > { %v680_v11 = vpop.f32.mrf.mxu0  ;;  %v719_v12 = vpack.c.bf16 %v715_v10, %v715_v10 }
  0xc1   : > { %v684_v13 = vpack.c.bf16 %v680_v11, %v680_v11 }
  0xc2   : > { %v806_v14 = vunpack.c.l.b16 %v719_v12  ;;  %v755_v15 = vsel %vm750_vm1, %v719_v12, 0 }
  0xc3   : > { %v801_v16 = vunpack.c.l.b16 %v684_v13  ;;  %764 = vmatpush.bf16.xpose.msra.mxu3 %v755_v15 }
  0xc4   : > { %v807_v17 = vpack.c.b16 %v806_v14, %v806_v14 }
  0xc5   : > { %v802_v18 = vpack.c.b16 %v801_v16, %v801_v16 }
  0xc6   : > { %919 = vrot.lane.b32.xlu1 %v807_v17, %s1986_s18  ;;  %808 = vrot.lane.b32.xlu0 %v807_v17, %s1987_s7 }
  0xc7   : > { %v717_v19 = vpop.f32.mrf.mxu1  ;;  %917 = vrot.lane.b32.xlu2 %v802_v18, %s1986_s18  ;;  %v745_v25 = vpop.f32.mrf.mxu2 }
  0xc8   : > { %v682_v20 = vpop.f32.mrf.mxu0  ;;  %v749_v26 = vpack.c.bf16 %v745_v25, %v745_v25  ;;  %v998_v25 = vld [vmem:[#allocation4 + $0x4] sm:$0xf] }
  0xca   : > { %1460 = vmatmul.msk.bf16.vlgmr.msra.gmra.mxu3 %vm750_vm1, %v684_v13  ;;  %v840_v28 = vunpack.c.l.b16 %v749_v26  ;;  %v785_v29 = vsel %vm783_vm2, %v749_v26, 0  ;;  %v1003_v26 = vsel %vm783_vm2, %v998_v25, 0 }
  0xcb   : > { %794 = vmatpush.bf16.msrb.mxu0 %v785_v29 }
  0xcc   : > { %v841_v32 = vpack.c.b16 %v840_v28, %v840_v28 }
  0xce   : > { %865 = vrot.lane.b32.xlu1 %v807_v17, %s1988_s24  ;;  %803 = vrot.lane.b32.xlu0 %v802_v18, %s1987_s7 }
  0xcf   : > { %863 = vrot.lane.b32.xlu2 %v802_v18, %s1988_s24  ;;  %v747_v34 = vpop.f32.mrf.mxu2 }
  0xd7   : > { %842 = vrot.lane.b32.xlu2 %v841_v32, %s1987_s7 }
 0x121   : > { %v918_v27 = vpop.permute.xlu2 %917 }
 0x129   : > { %v864_v35 = vpop.permute.xlu2 %863 }
 0x131   : > { %v843_v45 = vpop.permute.xlu2 %842 }
 0x132   : > { %v848_v46 = vsel %vm783_vm2, %v843_v45, 0 }
 0x133   : > { %857 = vmatpush.bf16.msrb.mxu2 %v848_v46 }
 0x138   : > { %v920_v21 = vpop.permute.xlu1 %919  ;;  %v809_v22 = vpop.permute.xlu0 %808 }
 0x139   : > { %v925_v23 = vsel %vm750_vm1, %v920_v21, 0  ;;  %v814_v24 = vsel %vm750_vm1, %v809_v22, 0 }
 0x13a   : > { %823 = vmatpush.bf16.xpose.msrb.mxu1 %v814_v24 }
 0x140   : > { %v866_v30 = vpop.permute.xlu1 %865  ;;  %v804_v31 = vpop.permute.xlu0 %803 }
 0x141   : > { %1462 = vmatmul.msk.bf16.vlgmr.msrb.gmra.mxu1 %vm750_vm1, %v804_v31  ;;  %v871_v33 = vsel %vm750_vm1, %v866_v30, 0 }
 0x142   : > { %934 = vmatpush.bf16.xpose.msra.mxu1 %v925_v23  ;;  %880 = vmatpush.bf16.xpose.msrb.mxu3 %v871_v33  ;;  %v1022_v23 = vld [vmem:[#allocation4 + $0x8] sm:$0xf] }
 0x143   : > { %v1027_v24 = vsel %vm783_vm2, %v1022_v23, 0  ;;  %v1634_v23 = vld [vmem:[#allocation7] ss:$0 sm:$0xff] }
 0x149   : > { %1464 = vmatmul.msk.bf16.vlgmr.msrb.gmra.mxu3 %vm750_vm1, %v864_v35 }
 0x14a   : > { %988 = vmatpush.bf16.msra.mxu3 %v979_v59  ;;  %1036 = vmatpush.bf16.msrb.mxu1 %v1027_v24 }
 0x14d   : > { %v766_v36 = vpop.f32.mrf.mxu3 }
 0x14e   : > { %v770_v37 = vsel %vm750_vm1, %v766_v36, -inf }
 0x14f   : > { %771 = vmax.xlane.f32.xlu1 %v770_v37 }
 0x151   : > { %1466 = vmatmul.msk.bf16.vlgmr.msra.gmra.mxu1 %vm750_vm1, %v918_v27  ;;  %v1046_v27 = vld [vmem:[#allocation4 + $0xc] sm:$0xf] }
 0x152   : > { %v1051_v28 = vsel %vm783_vm2, %v1046_v27, 0 }
 0x155   : > { %v768_v38 = vpop.f32.mrf.mxu3 }
 0x168   : > { %950 = vrot.lane.b32.xlu1 %v841_v32, %s1986_s18 }
 0x1be   : > { %v825_v39 = vpop.f32.mrf.mxu1 }
 0x1bf   : > { %v829_v40 = vsel %vm750_vm1, %v825_v39, -inf }
 0x1c0   : > { %830 = vmax.xlane.f32.xlu0 %v829_v40 }
 0x1c2   : > { %v772_v41 = vpop.xlane.xlu1 %771 }
 0x1c3   : > { %v773_v42 = vsub.f32 %v766_v36, %v772_v41 }
 0x1c5   : > { %v774_v43 = vmul.f32 1.442695, %v773_v42 }
 0x1c6   : > { %v827_v44 = vpop.f32.mrf.mxu1 }
 0x1c7   : > { %1639 = vpow2.f32 %v774_v43 }
 0x1cc   : > { %v882_v47 = vpop.f32.mrf.mxu3 }
 0x1cd   : > { %v1640_v48 = vpop.eup %1639  ;;  %v886_v49 = vsel %vm750_vm1, %v882_v47, -inf }
 0x1ce   : > { %v936_v50 = vpop.f32.mrf.mxu1  ;;  %887 = vmax.xlane.f32.xlu0 %v886_v49  ;;  %v779_v51 = vpack.c.bf16 %v1640_v48, %v1640_v48  ;;  %v776_v54 = vsel %vm750_vm1, %v1640_v48, 0.0 }
 0x1cf   : > { %v940_v52 = vsel %vm750_vm1, %v936_v50, -inf }
 0x1d0   : > { %941 = vmax.xlane.f32.xlu2 %v940_v52  ;;  %1461 = vmatmul.msk.bf16.vlgmr.msrb.gmra.mxu0 %vm750_vm1, %v779_v51 }
 0x1d4   : > { %v884_v53 = vpop.f32.mrf.mxu3 }
 0x1d6   : > { %v938_v55 = vpop.f32.mrf.mxu1  ;;  %777 = vadd.xlane.f32.xlu0 %v776_v54 }
 0x1da   : > { %v951_v56 = vpop.permute.xlu1 %950 }
 0x1db   : > { %v956_v57 = vsel %vm783_vm2, %v951_v56, 0 }
 0x1dc   : > { %965 = vmatpush.bf16.msra.mxu2 %v956_v57 }
 0x1e8   : > { %896 = vrot.lane.b32.xlu2 %v841_v32, %s1988_s24 }
 0x233   : > { %v831_v60 = vpop.xlane.xlu0 %830 }
 0x234   : > { %v832_v61 = vsub.f32 %v825_v39, %v831_v60  ;;  %v1989_v60 = vmov 32.0  }
 0x236   : > { %v833_v62 = vmul.f32 1.442695, %v832_v61 }
 0x238   : > { %1641 = vpow2.f32 %v833_v62 }
 0x23e   : > { %v1642_v63 = vpop.eup %1641 }
 0x23f   : > { %v838_v0 = vpack.c.bf16 %v1642_v63, %v1642_v63  ;;  %v835_v22 = vsel %vm750_vm1, %v1642_v63, 0.0 }
 0x241   : > { %1463 = vmatmul.msk.bf16.vlgmr.msrb.gmra.mxu2 %vm750_vm1, %v838_v0  ;;  %v888_v1 = vpop.xlane.xlu0 %887 }
 0x242   : > { %v889_v2 = vsub.f32 %v882_v47, %v888_v1  ;;  %1060 = vmatpush.bf16.msrb.mxu2 %v1051_v28  ;;  %v1509_v28 = vld [vmem:[%s2289_s10 + $0x8] sm:$0xff] }
 0x243   : > { %v942_v3 = vpop.xlane.xlu2 %941 }
 0x244   : > { %v890_v4 = vmul.f32 1.442695, %v889_v2  ;;  %v943_v6 = vsub.f32 %v936_v50, %v942_v3 }
 0x246   : > { %1643 = vpow2.f32 %v890_v4  ;;  %v944_v7 = vmul.f32 1.442695, %v943_v6 }
 0x248   : > { %1645 = vpow2.f32 %v944_v7 }
 0x249   : > { %v778_v8 = vpop.xlane.xlu0 %777 }
 0x24a   : > { %1647 = vrcp.f32 %v778_v8  ;;  %v1507_v8 = vld [vmem:[#allocation9 + $0x8] sm:$0xff] }
 0x24b   : > { %v897_v9 = vpop.permute.xlu2 %896  ;;  %1136 = vmatpush.bf16.msrb.mxu3 %v1507_v8 }
 0x24c   : > { %v1644_v10 = vpop.eup %1643  ;;  %v902_v11 = vsel %vm783_vm2, %v897_v9, 0  ;;  %v1506_v9 = vld [vmem:[#allocation9] sm:$0xff] }
 0x24d   : > { %v895_v12 = vpack.c.bf16 %v1644_v10, %v1644_v10  ;;  %v796_v13 = vpop.f32.mrf.mxu0  ;;  %911 = vmatpush.bf16.msra.mxu0 %v902_v11  ;;  %v892_v14 = vsel %vm750_vm1, %v1644_v10, 0.0  ;;  %v1511_v10 = vld [vmem:[%s2289_s10 + $0x18] sm:$0xff] }
 0x24e   : > { %v1646_v15 = vpop.eup %1645  ;;  %893 = vadd.xlane.f32.xlu1 %v892_v14 }
 0x24f   : > { %v949_v16 = vpack.c.bf16 %v1646_v15, %v1646_v15  ;;  %v946_v17 = vsel %vm750_vm1, %v1646_v15, 0.0  ;;  %1137 = vmatpush.bf16.msrb.mxu3 %v1506_v9 }
 0x250   : > { %v1648_v18 = vpop.eup %1647  ;;  %947 = vadd.xlane.f32.xlu0 %v946_v17  ;;  %1465 = vmatmul.msk.bf16.vlgmr.msra.gmra.mxu0 %vm750_vm1, %v895_v12 }
 0x251   : > { %v972_v19 = vmul.f32 %v1648_v18, %v796_v13  ;;  %1467 = vmatmul.msk.bf16.vlgmr.msra.gmra.mxu2 %vm750_vm1, %v949_v16  ;;  %1012 = vmatpush.bf16.msrb.mxu0 %v1003_v26  ;;  %v1510_v13 = vld [vmem:[%s2289_s10 + $0x10] sm:$0xff] }
 0x253   : > { %v973_v20 = vpack.c.bf16 %v972_v19, %v972_v19 }
 0x255   : > { %v798_v21 = vpop.f32.mrf.mxu0  ;;  %1468 = vmatmul.msk.bf16.vlgmr.msra.gmra.mxu3 %vm750_vm1, %v973_v20  ;;  %1189 = vmatpush.bf16.msra.mxu0 %v1511_v10 }
 0x256   : > { %v1633_v21 = vld [vmem:[#allocation6] ss:$0 sm:$0xff] }
 0x258   : > { %836 = vadd.xlane.f32.xlu0 %v835_v22 }
 0x259   : > { %1190 = vmatpush.bf16.msra.mxu0 %v1510_v13 }
 0x25d   : > { %1191 = vmatpush.bf16.msra.mxu0 %v1509_v28 }
 0x2c1   : > { %v894_v30 = vpop.xlane.xlu1 %893 }
 0x2c2   : > { %1649 = vrcp.f32 %v894_v30  ;;  %v1635_v30 = vld [vmem:[#allocation10] ss:$0 sm:$0xff] }
 0x2c3   : > { %v948_v29 = vpop.xlane.xlu0 %947 }
 0x2c4   : > { %v859_v31 = vpop.f32.mrf.mxu2 }
 0x2c8   : > { %v1650_v34 = vpop.eup %1649 }
 0x2cb   : > { %v837_v32 = vpop.xlane.xlu0 %836 }
 0x2cc   : > { %1651 = vrcp.f32 %v837_v32  ;;  %v861_v33 = vpop.f32.mrf.mxu2 }
 0x2cd   : > { %v913_v35 = vpop.f32.mrf.mxu0  ;;  %1653 = vrcp.f32 %v948_v29  ;;  %v1508_v29 = vld [vmem:[%s2289_s10] sm:$0xff] }
 0x2ce   : > { %v1020_v36 = vmul.f32 %v1650_v34, %v913_v35  ;;  %1655 = vrcp.f32 %v1989_v60  ;;  %1192 = vmatpush.bf16.msra.mxu0 %v1508_v29 }
 0x2d0   : > { %v1021_v37 = vpack.c.bf16 %v1020_v36, %v1020_v36  ;;  %v1636_v36 = vld [vmem:[#allocation12] ss:$0 sm:$0xff] }
 0x2d2   : > { %v1652_v38 = vpop.eup %1651  ;;  %1470 = vmatmul.msk.bf16.vlgmr.msrb.gmra.mxu1 %vm750_vm1, %v1021_v37 }
 0x2d3   : > { %v996_v39 = vmul.f32 %v1652_v38, %v859_v31  ;;  %v1654_v40 = vpop.eup %1653 }
 0x2d4   : > { %v967_v41 = vpop.f32.mrf.mxu2  ;;  %v1656_v61 = vpop.eup %1655 }
 0x2d5   : > { %v997_v42 = vpack.c.bf16 %v996_v39, %v996_v39  ;;  %v1044_v43 = vmul.f32 %v1654_v40, %v967_v41  ;;  %v915_v44 = vpop.f32.mrf.mxu0  ;;  %v1073_v62 = vmul.f32 32.0, %v1656_v61  ;;  %vm1077_vm3 = vweird.f32 %v1656_v61 }
 0x2d7   : > { %v1045_v45 = vpack.c.bf16 %v1044_v43, %v1044_v43  ;;  %1469 = vmatmul.msk.bf16.vlgmr.msrb.gmra.mxu0 %vm750_vm1, %v997_v42  ;;  %v1074_v63 = vsub.f32 1.0, %v1073_v62 }
 0x2d8   : > { %v990_v46 = vpop.f32.mrf.mxu3 }
 0x2d9   : > { %1471 = vmatmul.msk.bf16.vlgmr.msrb.gmra.mxu2 %vm750_vm1, %v1045_v45  ;;  %v994_v51 = vadd.f32 %v990_v46, %v2202_v5  ;;  %v1075_v0 = vmul.f32 %v1656_v61, %v1074_v63 }
 0x2db   : > { %v1076_v1 = vadd.f32 %v1656_v61, %v1075_v0 }
 0x2dc   : > { %v969_v47 = vpop.f32.mrf.mxu2 }
 0x2dd   : > { %v1078_v2 = vsel %vm1077_vm3, %v1656_v61, %v1076_v1 }
 0x2e0   : > { %v992_v48 = vpop.f32.mrf.mxu3 }
 0x34f   : > { %v1038_v49 = vpop.f32.mrf.mxu1 }
 0x354   : > { %v1014_v50 = vpop.f32.mrf.mxu0 }
 0x355   : > { %v1018_v52 = vadd.f32 %v1014_v50, %v994_v51 }
 0x357   : > { %v1040_v53 = vpop.f32.mrf.mxu1  ;;  %v1042_v54 = vadd.f32 %v1038_v49, %v1018_v52 }
 0x35c   : > { %v1016_v55 = vpop.f32.mrf.mxu0  ;;  %v1062_v56 = vpop.f32.mrf.mxu2 }
 0x35d   : > { %v1066_v57 = vadd.f32 %v1062_v56, %v1042_v54  ;;  %v1637_v56 = vld [vmem:[#allocation13] ss:$0 sm:$0xff] }
 0x35f   : > { %v1069_v58 = vsel %vm667_vm0, %v1066_v57, 0.0 }
 0x360   : > { %1070 = vadd.xlane.f32.xlu2 %v1069_v58  ;;  %v1638_v58 = vld [vmem:[#allocation15] ss:$0 sm:$0xff] }
 0x364   : > { %v1064_v59 = vpop.f32.mrf.mxu2 }
 0x3d3   : > { %v1071_v5 = vpop.xlane.xlu2 %1070 }
 0x3d4   : > { %v1079_v3 = vmul.f32 %v1078_v2, %v1071_v5 }
 0x3d6   : > { %v1080_v4 = vsub.f32 %v1066_v57, %v1079_v3 }
 0x3d8   : > { %v1081_v6 = vmul.f32 %v1080_v4, %v1080_v4 }
 0x3da   : > { %v1082_v7 = vsel %vm667_vm0, %v1081_v6, 0.0 }
 0x3db   : > { %1083 = vadd.xlane.f32.xlu0 %v1082_v7 }
 0x44e   : > { %v1084_v11 = vpop.xlane.xlu0 %1083 }
 0x44f   : > { %v1085_v12 = vmul.f32 %v1084_v11, %v1078_v2 }
 0x451   : > { %v1086_v14 = vadd.f32 1e-06, %v1085_v12 }
 0x453   : > { %1657 = vrsqrt.f32 %v1086_v14  ;;  %vm1093_vm5 = vweird.f32 %v1086_v14 }
 0x459   : > { %v1658_v15 = vpop.eup %1657 }
 0x45a   : > { %v1088_v16 = vmul.f32 %v1658_v15, %v1086_v14  ;;  %vm1094_vm4 = vweird.f32 %v1658_v15 }
 0x45b   : > { %vm1095_vm6 = vmor %vm1093_vm5, %vm1094_vm4 }
 0x45c   : > { %v1089_v17 = vmul.f32 %v1658_v15, %v1088_v16 }
 0x45e   : > { %v1090_v18 = vmul.f32 0.5, %v1089_v17 }
 0x460   : > { %v1091_v19 = vsub.f32 1.5, %v1090_v18 }
 0x462   : > { %v1092_v20 = vmul.f32 %v1658_v15, %v1091_v19 }
 0x464   : > { %v1096_v22 = vsel %vm1095_vm6, %v1658_v15, %v1092_v20 }
 0x465   : > { %v1097_v24 = vmul.f32 %v1096_v22, %v1080_v4 }
 0x467   : > { %v1101_v25 = vmul.f32 %v1633_v21, %v1097_v24 }
 0x469   : > { %v1105_v26 = vadd.f32 %v1634_v23, %v1101_v25 }
 0x46b   : > { %v1106_v27 = vpack.c.bf16 %v1105_v26, %v1105_v26 }
 0x46d   : > { %1480 = vmatmul.msk.bf16.vlgmr.msrb.gmra.mxu3 %vm667_vm0, %v1106_v27 }
 0x4f0   : > { %v1139_v31 = vpop.f32.mrf.mxu3 }
 0x4f1   : > { %v1140_v32 = vadd.f32 %v1635_v30, %v1139_v31 }
 0x4f3   : > { %v1143_v33 = vmax.f32 %v1140_v32, 0.0 }
 0x4f5   : > { %v1144_v34 = vpack.c.bf16 %v1143_v33, %v1143_v33 }
 0x4f7   : > { %1497 = vmatmul.msk.bf16.vlgmr.msra.gmra.mxu0 %vm1181_vm7, %v1144_v34 }
 0x4f8   : > { %v1141_v35 = vpop.f32.mrf.mxu3 }
 0x574   : > { %v1194_v37 = vpop.f32.mrf.mxu0 }
 0x575   : > { %v1195_v38 = vadd.f32 %v1636_v36, %v1194_v37 }
 0x577   : > { %v1198_v39 = vadd.f32 %v1195_v38, %v1105_v26 }
 0x579   : > { %v1201_v40 = vsel %vm667_vm0, %v1198_v39, 0.0 }
 0x57a   : > { %1202 = vadd.xlane.f32.xlu0 %v1201_v40 }
 0x57c   : > { %v1196_v41 = vpop.f32.mrf.mxu0 }
 0x5ed   : > { %v1203_v42 = vpop.xlane.xlu0 %1202 }
 0x5ee   : > { %v1204_v43 = vmul.f32 %v1203_v42, %v1078_v2 }
 0x5f0   : > { %v1205_v44 = vsub.f32 %v1198_v39, %v1204_v43 }
 0x5f2   : > { %v1206_v45 = vmul.f32 %v1205_v44, %v1205_v44 }
 0x5f4   : > { %v1207_v46 = vsel %vm667_vm0, %v1206_v45, 0.0 }
 0x5f5   : > { %1208 = vadd.xlane.f32.xlu0 %v1207_v46 }
 0x668   : > { %v1209_v47 = vpop.xlane.xlu0 %1208 }
 0x669   : > { %v1210_v48 = vmul.f32 %v1209_v47, %v1078_v2 }
 0x66b   : > { %v1211_v49 = vadd.f32 1e-06, %v1210_v48 }
 0x66d   : > { %1659 = vrsqrt.f32 %v1211_v49  ;;  %vm1218_vm9 = vweird.f32 %v1211_v49 }
 0x673   : > { %v1660_v50 = vpop.eup %1659 }
 0x674   : > { %v1213_v51 = vmul.f32 %v1660_v50, %v1211_v49  ;;  %vm1219_vm8 = vweird.f32 %v1660_v50 }
 0x675   : > { %vm1220_vm10 = vmor %vm1218_vm9, %vm1219_vm8 }
 0x676   : > { %v1214_v52 = vmul.f32 %v1660_v50, %v1213_v51 }
 0x678   : > { %v1215_v53 = vmul.f32 0.5, %v1214_v52 }
 0x67a   : > { %v1216_v54 = vsub.f32 1.5, %v1215_v53 }
 0x67c   : > { %v1217_v55 = vmul.f32 %v1660_v50, %v1216_v54 }
 0x67e   : > { %v1221_v57 = vsel %vm1220_vm10, %v1660_v50, %v1217_v55 }
 0x67f   : > { %v1222_v59 = vmul.f32 %v1221_v57, %v1205_v44 }
 0x681   : > { %v1226_v60 = vmul.f32 %v1637_v56, %v1222_v59 }
 0x683   : > { %v1230_v61 = vadd.f32 %v1638_v58, %v1226_v60 }
 0x685   : > { %1231 = vst.msk [vmem:[%s647_s28] sm:$0xff] %vm667_vm0, %v1230_v61 }
 0x686 PF: > { %s2312_s29 = sld [smem:[#allocation21_spill]] }
 0x68c   : > { %s29_s15 = sadd.s32 1, %s2312_s29   ;;  %s2313_s29 = smov %s1969_s30 }
 0x68d   : > { %p26_p8 = scmp.ge.s32.totalorder %s29_s15, 4   ;;  %s2314_s30 = smov %s2316_s20 }
 0x68f   :  { %28 = sbr.rel (!%p26_p8) target bundleno = 12 (0xc), region = 146 }
 0x694   :  { %1257 = vsyncpa [#allocation3], 1 }
 0x695   :  { %1259 = vsyncpa [#allocation3 + $0x1], 1 }
 0x696   :  { %1260 = vsyncpa [#allocation5], 1 }
 0x697   :  { %1261 = vsyncpa [#allocation8], 1 }
 0x698   :  { %1262 = vsyncpa [#allocation11], 1 }
 0x699   :  { %1263 = vsyncpa [#allocation14], 1 }

// kernel: cross_attn_forward.6
= control target key start
LH: loop header
LB: loop body
LE: loop exit
PB: predicated region body
PF: predicated region fallthrough
CT: control target
= control target key end

     0   :  { %s1909_s0 = inlined_call_operand.vmem [shape: f32[2,8,32], index: 0, kind: input, shape index: {}, may-alias: {0,1}]   ;;  %s1910_s1 = inlined_call_operand.vmem [shape: f32[2,8,32], index: 1, kind: input, shape index: {}, may-alias: {0,1}]   ;;  %s1911_s2 = inlined_call_operand.vmem [shape: bf16[32,32], index: 2, kind: input, shape index: {}]   ;;  %s1912_s3 = inlined_call_operand.hbm [shape: bf16[32,32], index: 3, kind: input, shape index: {}]   ;;  %s1913_s4 = inlined_call_operand.hbm [shape: bf16[32,32], index: 4, kind: input, shape index: {}]   ;;  %s1914_s5 = inlined_call_operand.hbm [shape: bf16[32,32], index: 5, kind: input, shape index: {}]   ;;  %s1915_s6 = inlined_call_operand.vmem [shape: f32[1,32], index: 6, kind: input, shape index: {}]   ;;  %s1916_s7 = inlined_call_operand.vmem [shape: f32[1,32], index: 7, kind: input, shape index: {}]   ;;  %s1917_s8 = inlined_call_operand.hbm [shape: bf16[32,64], index: 8, kind: input, shape index: {}]   ;;  %s1918_s9 = inlined_call_operand.vmem [shape: f32[1,64], index: 9, kind: input, shape index: {}]   ;;  %s1919_s10 = inlined_call_operand.vmem [shape: bf16[64,32], index: 10, kind: input, shape index: {}]   ;;  %s1920_s11 = inlined_call_operand.vmem [shape: f32[1,32], index: 11, kind: input, shape index: {}]   ;;  %s1921_s12 = inlined_call_operand.vmem [shape: f32[1,32], index: 12, kind: input, shape index: {}]   ;;  %s1922_s13 = inlined_call_operand.vmem [shape: f32[1,32], index: 13, kind: input, shape index: {}]   ;;  %s1923_s14 = inlined_call_operand.vmem [shape: f32[2,8,32], index: 14, kind: output, shape index: {}]  }
   0x1   :  { %1926 = sst [smem:[#allocation15_spill]] %s1913_s4 }
   0x2   :  { %1927 = sst [smem:[#allocation16_spill]] %s1922_s13 }
   0x3   :  { %1928 = sst [smem:[#allocation17_spill]] %s1923_s14 }
   0x4   :  { %19 = vsyncpa [#allocation3], 0 }
   0x5   :  { %20 = vsyncpa [#allocation5], 0 }
   0x6   :  { %21 = vsyncpa [#allocation8], 0  ;;  %s1725_s29 = smov 0   ;;  %s1727_s30 = smov 0  }
   0x7   :  { %s1729_s15 = smov 0  }
   0x8 LB: > { %1929 = sst [smem:[#allocation12_spill]] %s1634_s30  ;;  %s1290_s16 = sadd.s32 4294967295, %s1638_s15   ;;  %s1638_s15 = sphi %s1729_s15, %s27_s15   ;;  %s1634_s30 = sphi %s1727_s30, %s1940_s30   ;;  %s1630_s29 = sphi %s1725_s29, %s1939_s29  }
   0x9   : > { %1930 = sst [smem:[#allocation13_spill]] %s1638_s15  ;;  %p1292_p0 = scmp.ge.s32.totalorder %s1638_s15, 1 }
   0xa   : > { %p378_p1 = scmp.lt.s32.totalorder %s1638_s15, 3  ;;  %p1743_p2 = scmp.eq.s32.totalorder %s1290_s16, 0 }
   0xb   : > { %s1932_s4 = sld [smem:[#allocation15_spill]]  ;;  %s1640_s22 = smov [#allocation4]  }
   0xc   : > { %p1750_p3 = pnand %p1292_p0, %p378_p1  ;;  %s408_s23 = sshll.u32 %s1640_s22, 4  ;;  %s409_s23 = int_to_ptr.vmem [resolvable:$true] %s408_s23 }
   0xd   : > { %s39_s25 = sadd.s32 1, %s1634_s30  ;;  %s1641_s26 = smov 64  }
   0xe   : > { %p1401_p4 = pneg %p1750_p3  ;;  %p41_p6 = scmp.ge.s32.totalorder %s39_s25, 2 }
   0xf   : > { %s1642_s27 = smov 4   ;;  %s392_s18 = sshll.u32 %s1912_s3, 4  ;;  %s393_s18 = int_to_ptr.hbm [resolvable:$true] %s392_s18 }
  0x10   : > { %p1758_p5 = pnand %p1743_p2, %p1401_p4  ;;  %s1942_s25 = smov (%p41_p6, %s39_s25), 0 }
  0x11   : > { %s406_s20 = sshll.u32 %s1932_s4, 4  ;;  %1935 = sst [smem:[#allocation14_spill]] %s1942_s25  ;;  %s407_s20 = int_to_ptr.hbm [resolvable:$true] %s406_s20 }
  0x12   : > { %1407 = dma.hbm_to_vmem [thread:$0]  (!%p1758_p5), %s407_s20, 256, %s409_s23, [#allocation5], %s1641_s26, %s1641_s26, %s1642_s27  }
  0x13   : > { %s1643_s19 = smov [#allocation2]   ;;  %s420_s30 = sshll.u32 %s1914_s5, 4  ;;  %s421_s30 = int_to_ptr.hbm [resolvable:$true] %s420_s30 }
  0x14   : > { %s394_s22 = sshll.u32 %s1643_s19, 4  ;;  %s1644_s14 = smov [#allocation6]   ;;  %s395_s22 = int_to_ptr.vmem [resolvable:$true] %s394_s22 }
  0x15   : > { %1404 = dma.hbm_to_vmem [thread:$0]  (!%p1758_p5), %s393_s18, 256, %s395_s22, [#allocation3], %s1641_s26, %s1641_s26, %s1642_s27  }
  0x16   : > { %s422_s20 = sshll.u32 %s1644_s14, 4  ;;  %s440_s13 = sshll.u32 %s1917_s8, 4  ;;  %s423_s20 = int_to_ptr.vmem [resolvable:$true] %s422_s20  ;;  %s441_s13 = int_to_ptr.hbm [resolvable:$true] %s440_s13 }
  0x17   : > { %1410 = dma.hbm_to_vmem [thread:$0]  (!%p1758_p5), %s421_s30, 256, %s423_s20, [#allocation5], %s1641_s26, %s1641_s26, %s1642_s27  }
  0x18   : > { %s1645_s28 = smov [#allocation7]   ;;  %490 = sbr.rel (%p1750_p3) target bundleno = 1646 (0x66e), region = 76 }
  0x19   : > { %s442_s16 = sshll.u32 %s1645_s28, 4  ;;  %s443_s16 = int_to_ptr.vmem [resolvable:$true] %s442_s16 }
  0x1a   : > { %1413 = dma.hbm_to_vmem [thread:$0]  (!%p1758_p5), %s441_s13, 256, %s443_s16, [#allocation8], %s1641_s26, %s1641_s26, %s1642_s27  }
  0x1d   : > { %1617 = dma.done.wait (%p1743_p2), [#allocation3], 256  }
  0x1e   : > { %1619 = vsyncadd (%p1743_p2), [#allocation3], 4294967040 }
  0x1f   : > { %1621 = dma.done.wait (%p1743_p2), [#allocation5], 512  }
  0x20   : > { %1623 = vsyncadd (%p1743_p2), [#allocation5], 4294966784 }
  0x21   : > { %1625 = dma.done.wait (%p1743_p2), [#allocation8], 256  }
  0x22   : > { %1627 = vsyncadd (%p1743_p2), [#allocation8], 4294967040  ;;  %p560_p7 = scmp.lt.s32.totalorder %s1630_s29, 1  ;;  %v1376_v0 = vld [vmem:[#allocation2 + $0x8] sm:$0xff]  ;;  %v1375_v1 = vld [vmem:[#allocation2] sm:$0xff]  ;;  %vm597_vm0 = vcmask 261120  }
  0x23   : > { %v1374_v2 = vld [vmem:[%s1911_s2 + $0x8] sm:$0xff]  ;;  %v1373_v4 = vld [vmem:[%s1911_s2] sm:$0xff]  ;;  %642 = vmatpush.bf16.msra.mxu1 %v1376_v0  ;;  %v1378_v8 = vld [vmem:[#allocation4 + $0x8] sm:$0xff]  ;;  %vm680_vm1 = vcmask 64512   ;;  %s1646_s27 = smov 104   ;;  %s1647_s18 = smov 120  }
  0x24   : > { %s1944_s29 = smov (!%p560_p7, %s1630_s29), 1  ;;  %607 = vmatpush.bf16.msra.mxu0 %v1374_v2  ;;  %672 = vmatpush.bf16.msra.mxu2 %v1378_v8  ;;  %v1377_v9 = vld [vmem:[#allocation4] sm:$0xff]  ;;  %s1648_s19 = smov 112   ;;  %vm713_vm2 = vcmask 1043456   ;;  %v904_v58 = vld [vmem:[#allocation6] sm:$0xf] }
  0x25   : > { %s1798_s4 = sshll.u32 %s1944_s29, 3  ;;  %v909_v59 = vsel %vm713_vm2, %v904_v58, 0  ;;  %vm1111_vm7 = vcmask 523264   ;;  %s1936_s23 = sld [smem:[#allocation16_spill]] }
  0x26   : > { %s570_s30 = scalar_lea.vmem %s1910_s1, %s1798_s4  ;;  %s566_s24 = scalar_lea.vmem %s1909_s0, %s1798_s4 }
  0x27   : > { %v615_v3 = vld [vmem:[%s570_s30] sm:$0xff]  ;;  %643 = vmatpush.bf16.msra.mxu1 %v1375_v1  ;;  %s1937_s13 = sld [smem:[#allocation17_spill]] }
  0x28   : > { %v1814_v5 = vld [vmem:[%s566_s24] sm:$0xff]  ;;  %v616_v6 = vpack.c.bf16 %v615_v3, %v615_v3  ;;  %608 = vmatpush.bf16.msra.mxu0 %v1373_v4  ;;  %673 = vmatpush.bf16.msra.mxu2 %v1377_v9 }
  0x29   : > { %v580_v7 = vpack.c.bf16 %v1814_v5, %v1814_v5 }
  0x2a   : > { %1323 = vmatmul.msk.bf16.vlgmr.msra.gmra.mxu1 %vm597_vm0, %v616_v6 }
  0x2b   : > { %1314 = vmatmul.msk.bf16.vlgmr.msra.gmra.mxu0 %vm597_vm0, %v580_v7  ;;  %1332 = vmatmul.msk.bf16.vlgmr.msra.gmra.mxu2 %vm597_vm0, %v616_v6 }
  0x2d   : > { %s577_s14 = scalar_lea.vmem %s1937_s13, %s1798_s4 }
  0xa7   : > { %v645_v10 = vpop.f32.mrf.mxu1 }
  0xa8   : > { %v610_v11 = vpop.f32.mrf.mxu0  ;;  %v649_v12 = vpack.c.bf16 %v645_v10, %v645_v10 }
  0xa9   : > { %v614_v13 = vpack.c.bf16 %v610_v11, %v610_v11 }
  0xaa   : > { %v736_v14 = vunpack.c.l.b16 %v649_v12  ;;  %v685_v15 = vsel %vm680_vm1, %v649_v12, 0 }
  0xab   : > { %v731_v16 = vunpack.c.l.b16 %v614_v13  ;;  %694 = vmatpush.bf16.xpose.msra.mxu3 %v685_v15 }
  0xac   : > { %v737_v17 = vpack.c.b16 %v736_v14, %v736_v14 }
  0xad   : > { %v732_v18 = vpack.c.b16 %v731_v16, %v731_v16 }
  0xae   : > { %849 = vrot.lane.b32.xlu1 %v737_v17, %s1646_s27  ;;  %738 = vrot.lane.b32.xlu0 %v737_v17, %s1647_s18  ;;  %v675_v25 = vpop.f32.mrf.mxu2 }
  0xaf   : > { %v647_v19 = vpop.f32.mrf.mxu1  ;;  %847 = vrot.lane.b32.xlu2 %v732_v18, %s1646_s27  ;;  %v679_v26 = vpack.c.bf16 %v675_v25, %v675_v25  ;;  %v928_v25 = vld [vmem:[#allocation6 + $0x4] sm:$0xf] }
  0xb0   : > { %v612_v20 = vpop.f32.mrf.mxu0 }
  0xb1   : > { %v770_v28 = vunpack.c.l.b16 %v679_v26  ;;  %v715_v29 = vsel %vm713_vm2, %v679_v26, 0  ;;  %v933_v26 = vsel %vm713_vm2, %v928_v25, 0 }
  0xb2   : > { %1333 = vmatmul.msk.bf16.vlgmr.msra.gmra.mxu3 %vm680_vm1, %v614_v13  ;;  %724 = vmatpush.bf16.msrb.mxu0 %v715_v29 }
  0xb3   : > { %v771_v32 = vpack.c.b16 %v770_v28, %v770_v28 }
  0xb6   : > { %795 = vrot.lane.b32.xlu1 %v737_v17, %s1648_s19  ;;  %733 = vrot.lane.b32.xlu0 %v732_v18, %s1647_s18  ;;  %v677_v34 = vpop.f32.mrf.mxu2 }
  0xb7   : > { %793 = vrot.lane.b32.xlu2 %v732_v18, %s1648_s19 }
  0xbf   : > { %772 = vrot.lane.b32.xlu2 %v771_v32, %s1647_s18 }
 0x109   : > { %v848_v27 = vpop.permute.xlu2 %847 }
 0x111   : > { %v794_v35 = vpop.permute.xlu2 %793 }
 0x119   : > { %v773_v45 = vpop.permute.xlu2 %772 }
 0x11a   : > { %v778_v46 = vsel %vm713_vm2, %v773_v45, 0 }
 0x11b   : > { %787 = vmatpush.bf16.msrb.mxu2 %v778_v46 }
 0x120   : > { %v850_v21 = vpop.permute.xlu1 %849  ;;  %v739_v22 = vpop.permute.xlu0 %738 }
 0x121   : > { %v855_v23 = vsel %vm680_vm1, %v850_v21, 0  ;;  %v744_v24 = vsel %vm680_vm1, %v739_v22, 0 }
 0x122   : > { %753 = vmatpush.bf16.xpose.msrb.mxu1 %v744_v24 }
 0x128   : > { %v796_v30 = vpop.permute.xlu1 %795  ;;  %v734_v31 = vpop.permute.xlu0 %733 }
 0x129   : > { %1335 = vmatmul.msk.bf16.vlgmr.msrb.gmra.mxu1 %vm680_vm1, %v734_v31  ;;  %v801_v33 = vsel %vm680_vm1, %v796_v30, 0 }
 0x12a   : > { %864 = vmatpush.bf16.xpose.msra.mxu1 %v855_v23  ;;  %810 = vmatpush.bf16.xpose.msrb.mxu3 %v801_v33  ;;  %v952_v23 = vld [vmem:[#allocation6 + $0x8] sm:$0xf] }
 0x12b   : > { %v957_v24 = vsel %vm713_vm2, %v952_v23, 0  ;;  %v1457_v23 = vld [vmem:[%s1916_s7] ss:$0 sm:$0xff] }
 0x131   : > { %1337 = vmatmul.msk.bf16.vlgmr.msrb.gmra.mxu3 %vm680_vm1, %v794_v35 }
 0x132   : > { %918 = vmatpush.bf16.msra.mxu3 %v909_v59  ;;  %966 = vmatpush.bf16.msrb.mxu1 %v957_v24 }
 0x135   : > { %v696_v36 = vpop.f32.mrf.mxu3 }
 0x136   : > { %v700_v37 = vsel %vm680_vm1, %v696_v36, -inf }
 0x137   : > { %701 = vmax.xlane.f32.xlu1 %v700_v37 }
 0x139   : > { %1339 = vmatmul.msk.bf16.vlgmr.msra.gmra.mxu1 %vm680_vm1, %v848_v27  ;;  %v976_v27 = vld [vmem:[#allocation6 + $0xc] sm:$0xf] }
 0x13a   : > { %v981_v28 = vsel %vm713_vm2, %v976_v27, 0 }
 0x13d   : > { %v698_v38 = vpop.f32.mrf.mxu3 }
 0x150   : > { %880 = vrot.lane.b32.xlu1 %v771_v32, %s1646_s27 }
 0x1a6   : > { %v755_v39 = vpop.f32.mrf.mxu1 }
 0x1a7   : > { %v759_v40 = vsel %vm680_vm1, %v755_v39, -inf }
 0x1a8   : > { %760 = vmax.xlane.f32.xlu0 %v759_v40 }
 0x1aa   : > { %v702_v41 = vpop.xlane.xlu1 %701 }
 0x1ab   : > { %v703_v42 = vsub.f32 %v696_v36, %v702_v41 }
 0x1ad   : > { %v704_v43 = vmul.f32 1.442695, %v703_v42 }
 0x1ae   : > { %v757_v44 = vpop.f32.mrf.mxu1 }
 0x1af   : > { %1462 = vpow2.f32 %v704_v43 }
 0x1b4   : > { %v812_v47 = vpop.f32.mrf.mxu3 }
 0x1b5   : > { %v1463_v48 = vpop.eup %1462  ;;  %v816_v49 = vsel %vm680_vm1, %v812_v47, -inf }
 0x1b6   : > { %v866_v50 = vpop.f32.mrf.mxu1  ;;  %817 = vmax.xlane.f32.xlu0 %v816_v49  ;;  %v709_v51 = vpack.c.bf16 %v1463_v48, %v1463_v48  ;;  %v706_v54 = vsel %vm680_vm1, %v1463_v48, 0.0 }
 0x1b7   : > { %v870_v52 = vsel %vm680_vm1, %v866_v50, -inf }
 0x1b8   : > { %871 = vmax.xlane.f32.xlu2 %v870_v52  ;;  %1334 = vmatmul.msk.bf16.vlgmr.msrb.gmra.mxu0 %vm680_vm1, %v709_v51 }
 0x1bc   : > { %v814_v53 = vpop.f32.mrf.mxu3 }
 0x1be   : > { %v868_v55 = vpop.f32.mrf.mxu1  ;;  %707 = vadd.xlane.f32.xlu0 %v706_v54 }
 0x1c2   : > { %v881_v56 = vpop.permute.xlu1 %880 }
 0x1c3   : > { %v886_v57 = vsel %vm713_vm2, %v881_v56, 0 }
 0x1c4   : > { %895 = vmatpush.bf16.msra.mxu2 %v886_v57 }
 0x1d0   : > { %826 = vrot.lane.b32.xlu2 %v771_v32, %s1648_s19 }
 0x21b   : > { %v761_v60 = vpop.xlane.xlu0 %760 }
 0x21c   : > { %v762_v61 = vsub.f32 %v755_v39, %v761_v60  ;;  %v1649_v60 = vmov 32.0  }
 0x21e   : > { %v763_v62 = vmul.f32 1.442695, %v762_v61 }
 0x220   : > { %1464 = vpow2.f32 %v763_v62 }
 0x226   : > { %v1465_v63 = vpop.eup %1464 }
 0x227   : > { %v768_v0 = vpack.c.bf16 %v1465_v63, %v1465_v63  ;;  %v765_v22 = vsel %vm680_vm1, %v1465_v63, 0.0 }
 0x229   : > { %1336 = vmatmul.msk.bf16.vlgmr.msrb.gmra.mxu2 %vm680_vm1, %v768_v0  ;;  %v818_v1 = vpop.xlane.xlu0 %817 }
 0x22a   : > { %v819_v2 = vsub.f32 %v812_v47, %v818_v1  ;;  %990 = vmatpush.bf16.msrb.mxu2 %v981_v28  ;;  %v1382_v28 = vld [vmem:[%s1919_s10 + $0x8] sm:$0xff] }
 0x22b   : > { %v872_v3 = vpop.xlane.xlu2 %871 }
 0x22c   : > { %v820_v4 = vmul.f32 1.442695, %v819_v2  ;;  %v873_v6 = vsub.f32 %v866_v50, %v872_v3 }
 0x22e   : > { %1466 = vpow2.f32 %v820_v4  ;;  %v874_v7 = vmul.f32 1.442695, %v873_v6 }
 0x230   : > { %1468 = vpow2.f32 %v874_v7 }
 0x231   : > { %v708_v8 = vpop.xlane.xlu0 %707 }
 0x232   : > { %1470 = vrcp.f32 %v708_v8  ;;  %v1380_v8 = vld [vmem:[#allocation7 + $0x8] sm:$0xff] }
 0x233   : > { %v827_v9 = vpop.permute.xlu2 %826  ;;  %1066 = vmatpush.bf16.msrb.mxu3 %v1380_v8 }
 0x234   : > { %v1467_v10 = vpop.eup %1466  ;;  %v832_v11 = vsel %vm713_vm2, %v827_v9, 0  ;;  %v1379_v9 = vld [vmem:[#allocation7] sm:$0xff] }
 0x235   : > { %v825_v12 = vpack.c.bf16 %v1467_v10, %v1467_v10  ;;  %v726_v13 = vpop.f32.mrf.mxu0  ;;  %841 = vmatpush.bf16.msra.mxu0 %v832_v11  ;;  %v822_v14 = vsel %vm680_vm1, %v1467_v10, 0.0  ;;  %v1384_v10 = vld [vmem:[%s1919_s10 + $0x18] sm:$0xff] }
 0x236   : > { %v1469_v15 = vpop.eup %1468  ;;  %823 = vadd.xlane.f32.xlu1 %v822_v14 }
 0x237   : > { %v879_v16 = vpack.c.bf16 %v1469_v15, %v1469_v15  ;;  %v876_v17 = vsel %vm680_vm1, %v1469_v15, 0.0  ;;  %1067 = vmatpush.bf16.msrb.mxu3 %v1379_v9 }
 0x238   : > { %v1471_v18 = vpop.eup %1470  ;;  %877 = vadd.xlane.f32.xlu0 %v876_v17  ;;  %1338 = vmatmul.msk.bf16.vlgmr.msra.gmra.mxu0 %vm680_vm1, %v825_v12 }
 0x239   : > { %v902_v19 = vmul.f32 %v1471_v18, %v726_v13  ;;  %1340 = vmatmul.msk.bf16.vlgmr.msra.gmra.mxu2 %vm680_vm1, %v879_v16  ;;  %942 = vmatpush.bf16.msrb.mxu0 %v933_v26  ;;  %v1383_v13 = vld [vmem:[%s1919_s10 + $0x10] sm:$0xff] }
 0x23b   : > { %v903_v20 = vpack.c.bf16 %v902_v19, %v902_v19 }
 0x23d   : > { %v728_v21 = vpop.f32.mrf.mxu0  ;;  %1341 = vmatmul.msk.bf16.vlgmr.msra.gmra.mxu3 %vm680_vm1, %v903_v20  ;;  %1119 = vmatpush.bf16.msra.mxu0 %v1384_v10 }
 0x23e   : > { %v1456_v21 = vld [vmem:[%s1915_s6] ss:$0 sm:$0xff] }
 0x240   : > { %766 = vadd.xlane.f32.xlu0 %v765_v22 }
 0x241   : > { %1120 = vmatpush.bf16.msra.mxu0 %v1383_v13 }
 0x245   : > { %1121 = vmatpush.bf16.msra.mxu0 %v1382_v28 }
 0x2a9   : > { %v824_v30 = vpop.xlane.xlu1 %823 }
 0x2aa   : > { %1472 = vrcp.f32 %v824_v30  ;;  %v1458_v30 = vld [vmem:[%s1918_s9] ss:$0 sm:$0xff] }
 0x2ab   : > { %v878_v29 = vpop.xlane.xlu0 %877 }
 0x2ac   : > { %v789_v31 = vpop.f32.mrf.mxu2 }
 0x2b0   : > { %v1473_v34 = vpop.eup %1472 }
 0x2b3   : > { %v767_v32 = vpop.xlane.xlu0 %766 }
 0x2b4   : > { %1474 = vrcp.f32 %v767_v32  ;;  %v791_v33 = vpop.f32.mrf.mxu2 }
 0x2b5   : > { %v843_v35 = vpop.f32.mrf.mxu0  ;;  %1476 = vrcp.f32 %v878_v29  ;;  %v1381_v29 = vld [vmem:[%s1919_s10] sm:$0xff] }
 0x2b6   : > { %v950_v36 = vmul.f32 %v1473_v34, %v843_v35  ;;  %1478 = vrcp.f32 %v1649_v60  ;;  %1122 = vmatpush.bf16.msra.mxu0 %v1381_v29 }
 0x2b8   : > { %v951_v37 = vpack.c.bf16 %v950_v36, %v950_v36  ;;  %v1459_v36 = vld [vmem:[%s1920_s11] ss:$0 sm:$0xff] }
 0x2ba   : > { %v1475_v38 = vpop.eup %1474  ;;  %1343 = vmatmul.msk.bf16.vlgmr.msrb.gmra.mxu1 %vm680_vm1, %v951_v37 }
 0x2bb   : > { %v926_v39 = vmul.f32 %v1475_v38, %v789_v31  ;;  %v1477_v40 = vpop.eup %1476 }
 0x2bc   : > { %v897_v41 = vpop.f32.mrf.mxu2  ;;  %v1479_v61 = vpop.eup %1478 }
 0x2bd   : > { %v927_v42 = vpack.c.bf16 %v926_v39, %v926_v39  ;;  %v974_v43 = vmul.f32 %v1477_v40, %v897_v41  ;;  %v845_v44 = vpop.f32.mrf.mxu0  ;;  %v1003_v62 = vmul.f32 32.0, %v1479_v61  ;;  %vm1007_vm3 = vweird.f32 %v1479_v61 }
 0x2bf   : > { %v975_v45 = vpack.c.bf16 %v974_v43, %v974_v43  ;;  %1342 = vmatmul.msk.bf16.vlgmr.msrb.gmra.mxu0 %vm680_vm1, %v927_v42  ;;  %v1004_v63 = vsub.f32 1.0, %v1003_v62 }
 0x2c0   : > { %v920_v46 = vpop.f32.mrf.mxu3 }
 0x2c1   : > { %1344 = vmatmul.msk.bf16.vlgmr.msrb.gmra.mxu2 %vm680_vm1, %v975_v45  ;;  %v924_v51 = vadd.f32 %v920_v46, %v1814_v5  ;;  %v1005_v0 = vmul.f32 %v1479_v61, %v1004_v63 }
 0x2c3   : > { %v1006_v1 = vadd.f32 %v1479_v61, %v1005_v0 }
 0x2c4   : > { %v899_v47 = vpop.f32.mrf.mxu2 }
 0x2c5   : > { %v1008_v2 = vsel %vm1007_vm3, %v1479_v61, %v1006_v1 }
 0x2c8   : > { %v922_v48 = vpop.f32.mrf.mxu3 }
 0x337   : > { %v968_v49 = vpop.f32.mrf.mxu1 }
 0x33c   : > { %v944_v50 = vpop.f32.mrf.mxu0 }
 0x33d   : > { %v948_v52 = vadd.f32 %v944_v50, %v924_v51 }
 0x33f   : > { %v970_v53 = vpop.f32.mrf.mxu1  ;;  %v972_v54 = vadd.f32 %v968_v49, %v948_v52 }
 0x344   : > { %v946_v55 = vpop.f32.mrf.mxu0  ;;  %v992_v56 = vpop.f32.mrf.mxu2 }
 0x345   : > { %v996_v57 = vadd.f32 %v992_v56, %v972_v54  ;;  %v1460_v56 = vld [vmem:[%s1921_s12] ss:$0 sm:$0xff] }
 0x347   : > { %v999_v58 = vsel %vm597_vm0, %v996_v57, 0.0 }
 0x348   : > { %1000 = vadd.xlane.f32.xlu2 %v999_v58  ;;  %v1461_v58 = vld [vmem:[%s1936_s23] ss:$0 sm:$0xff] }
 0x34c   : > { %v994_v59 = vpop.f32.mrf.mxu2 }
 0x3bb   : > { %v1001_v5 = vpop.xlane.xlu2 %1000 }
 0x3bc   : > { %v1009_v3 = vmul.f32 %v1008_v2, %v1001_v5 }
 0x3be   : > { %v1010_v4 = vsub.f32 %v996_v57, %v1009_v3 }
 0x3c0   : > { %v1011_v6 = vmul.f32 %v1010_v4, %v1010_v4 }
 0x3c2   : > { %v1012_v7 = vsel %vm597_vm0, %v1011_v6, 0.0 }
 0x3c3   : > { %1013 = vadd.xlane.f32.xlu0 %v1012_v7 }
 0x436   : > { %v1014_v11 = vpop.xlane.xlu0 %1013 }
 0x437   : > { %v1015_v12 = vmul.f32 %v1014_v11, %v1008_v2 }
 0x439   : > { %v1016_v14 = vadd.f32 1e-06, %v1015_v12 }
 0x43b   : > { %1480 = vrsqrt.f32 %v1016_v14  ;;  %vm1023_vm5 = vweird.f32 %v1016_v14 }
 0x441   : > { %v1481_v15 = vpop.eup %1480 }
 0x442   : > { %v1018_v16 = vmul.f32 %v1481_v15, %v1016_v14  ;;  %vm1024_vm4 = vweird.f32 %v1481_v15 }
 0x443   : > { %vm1025_vm6 = vmor %vm1023_vm5, %vm1024_vm4 }
 0x444   : > { %v1019_v17 = vmul.f32 %v1481_v15, %v1018_v16 }
 0x446   : > { %v1020_v18 = vmul.f32 0.5, %v1019_v17 }
 0x448   : > { %v1021_v19 = vsub.f32 1.5, %v1020_v18 }
 0x44a   : > { %v1022_v20 = vmul.f32 %v1481_v15, %v1021_v19 }
 0x44c   : > { %v1026_v22 = vsel %vm1025_vm6, %v1481_v15, %v1022_v20 }
 0x44d   : > { %v1027_v24 = vmul.f32 %v1026_v22, %v1010_v4 }
 0x44f   : > { %v1031_v25 = vmul.f32 %v1456_v21, %v1027_v24 }
 0x451   : > { %v1035_v26 = vadd.f32 %v1457_v23, %v1031_v25 }
 0x453   : > { %v1036_v27 = vpack.c.bf16 %v1035_v26, %v1035_v26 }
 0x455   : > { %1353 = vmatmul.msk.bf16.vlgmr.msrb.gmra.mxu3 %vm597_vm0, %v1036_v27 }
 0x4d8   : > { %v1069_v31 = vpop.f32.mrf.mxu3 }
 0x4d9   : > { %v1070_v32 = vadd.f32 %v1458_v30, %v1069_v31 }
 0x4db   : > { %v1073_v33 = vmax.f32 %v1070_v32, 0.0 }
 0x4dd   : > { %v1074_v34 = vpack.c.bf16 %v1073_v33, %v1073_v33 }
 0x4df   : > { %1370 = vmatmul.msk.bf16.vlgmr.msra.gmra.mxu0 %vm1111_vm7, %v1074_v34 }
 0x4e0   : > { %v1071_v35 = vpop.f32.mrf.mxu3 }
 0x55c   : > { %v1124_v37 = vpop.f32.mrf.mxu0 }
 0x55d   : > { %v1125_v38 = vadd.f32 %v1459_v36, %v1124_v37 }
 0x55f   : > { %v1128_v39 = vadd.f32 %v1125_v38, %v1035_v26 }
 0x561   : > { %v1131_v40 = vsel %vm597_vm0, %v1128_v39, 0.0 }
 0x562   : > { %1132 = vadd.xlane.f32.xlu0 %v1131_v40 }
 0x564   : > { %v1126_v41 = vpop.f32.mrf.mxu0 }
 0x5d5   : > { %v1133_v42 = vpop.xlane.xlu0 %1132 }
 0x5d6   : > { %v1134_v43 = vmul.f32 %v1133_v42, %v1008_v2 }
 0x5d8   : > { %v1135_v44 = vsub.f32 %v1128_v39, %v1134_v43 }
 0x5da   : > { %v1136_v45 = vmul.f32 %v1135_v44, %v1135_v44 }
 0x5dc   : > { %v1137_v46 = vsel %vm597_vm0, %v1136_v45, 0.0 }
 0x5dd   : > { %1138 = vadd.xlane.f32.xlu0 %v1137_v46 }
 0x650   : > { %v1139_v47 = vpop.xlane.xlu0 %1138 }
 0x651   : > { %v1140_v48 = vmul.f32 %v1139_v47, %v1008_v2 }
 0x653   : > { %v1141_v49 = vadd.f32 1e-06, %v1140_v48 }
 0x655   : > { %1482 = vrsqrt.f32 %v1141_v49  ;;  %vm1148_vm9 = vweird.f32 %v1141_v49 }
 0x65b   : > { %v1483_v50 = vpop.eup %1482 }
 0x65c   : > { %v1143_v51 = vmul.f32 %v1483_v50, %v1141_v49  ;;  %vm1149_vm8 = vweird.f32 %v1483_v50 }
 0x65d   : > { %vm1150_vm10 = vmor %vm1148_vm9, %vm1149_vm8 }
 0x65e   : > { %v1144_v52 = vmul.f32 %v1483_v50, %v1143_v51 }
 0x660   : > { %v1145_v53 = vmul.f32 0.5, %v1144_v52 }
 0x662   : > { %v1146_v54 = vsub.f32 1.5, %v1145_v53 }
 0x664   : > { %v1147_v55 = vmul.f32 %v1483_v50, %v1146_v54 }
 0x666   : > { %v1151_v57 = vsel %vm1150_vm10, %v1483_v50, %v1147_v55 }
 0x667   : > { %v1152_v59 = vmul.f32 %v1151_v57, %v1135_v44 }
 0x669   : > { %v1156_v60 = vmul.f32 %v1460_v56, %v1152_v59 }
 0x66b   : > { %v1160_v61 = vadd.f32 %v1461_v58, %v1156_v60 }
 0x66d   : > { %1161 = vst.msk [vmem:[%s577_s14] sm:$0xff] %vm597_vm0, %v1160_v61 }
 0x66e PF: > { %s1938_s30 = sld [smem:[#allocation13_spill]] }
 0x66f   : > { %s1939_s29 = sld [smem:[#allocation12_spill]] }
 0x674   : > { %s27_s15 = sadd.s32 1, %s1938_s30   ;;  %s1940_s30 = sld [smem:[#allocation14_spill]] }
 0x675   : > { %p24_p8 = scmp.ge.s32.totalorder %s27_s15, 4  }
 0x677   :  { %26 = sbr.rel (!%p24_p8) target bundleno = 8 (0x8), region = 126 }
 0x67c   :  { %1187 = vsyncpa [#allocation3], 1 }
 0x67d   :  { %1189 = vsyncpa [#allocation3 + $0x1], 1 }
 0x67e   :  { %1190 = vsyncpa [#allocation5], 1 }
 0x67f   :  { %1191 = vsyncpa [#allocation8], 1 }

// kernel: cross_attn_forward.9
= control target key start
LH: loop header
LB: loop body
LE: loop exit
PB: predicated region body
PF: predicated region fallthrough
CT: control target
= control target key end

     0   :  { %s2353_s0 = inlined_call_operand.vmem [shape: f32[2,8,32], index: 0, kind: input, shape index: {}]   ;;  %s2354_s1 = inlined_call_operand.vmem [shape: f32[2,8,32], index: 1, kind: input, shape index: {}]   ;;  %s2355_s2 = inlined_call_operand.vmem [shape: bf16[32,32], index: 2, kind: input, shape index: {}]   ;;  %s2356_s3 = inlined_call_operand.vmem [shape: bf16[32,32], index: 3, kind: input, shape index: {}]   ;;  %s2357_s4 = inlined_call_operand.vmem [shape: bf16[32,32], index: 4, kind: input, shape index: {}]   ;;  %s2358_s5 = inlined_call_operand.hbm [shape: bf16[32,32], index: 5, kind: input, shape index: {}]   ;;  %s2359_s6 = inlined_call_operand.hbm [shape: f32[1,32], index: 6, kind: input, shape index: {}]   ;;  %s2360_s7 = inlined_call_operand.hbm [shape: f32[1,32], index: 7, kind: input, shape index: {}]   ;;  %s2361_s8 = inlined_call_operand.hbm [shape: bf16[32,64], index: 8, kind: input, shape index: {}]   ;;  %s2362_s9 = inlined_call_operand.hbm [shape: f32[1,64], index: 9, kind: input, shape index: {}]   ;;  %s2363_s10 = inlined_call_operand.vmem [shape: bf16[64,32], index: 10, kind: input, shape index: {}]   ;;  %s2364_s11 = inlined_call_operand.hbm [shape: f32[1,32], index: 11, kind: input, shape index: {}]   ;;  %s2365_s12 = inlined_call_operand.hbm [shape: f32[1,32], index: 12, kind: input, shape index: {}]   ;;  %s2366_s13 = inlined_call_operand.hbm [shape: f32[1,32], index: 13, kind: input, shape index: {}]   ;;  %s2367_s14 = inlined_call_operand.hbm [shape: f32[2,8,32], index: 14, kind: output, shape index: {}]  }
   0x1   :  { %2379 = sst [smem:[#allocation32_spill]] %s2359_s6 }
   0x2   :  { %2380 = sst [smem:[#allocation33_spill]] %s2361_s8 }
   0x3   :  { %2381 = sst [smem:[#allocation34_spill]] %s2367_s14 }
   0x4   :  { %19 = vsyncpa [#allocation3], 0 }
   0x5   :  { %20 = vsyncpa [#allocation6], 0 }
   0x6   :  { %21 = vsyncpa [#allocation9], 0 }
   0x7   :  { %22 = vsyncpa [#allocation12], 0 }
   0x8   :  { %23 = vsyncpa [#allocation15], 0 }
   0x9   :  { %24 = vsyncpa [#allocation4], 0 }
   0xa   :  { %26 = vsyncpa [#allocation4 + $0x1], 0  ;;  %s2093_s29 = smov 0   ;;  %s2095_s30 = smov 0  }
   0xb   :  { %s2097_s15 = smov 0   ;;  %s2099_s16 = smov 0  }
   0xc   :  { %s2101_s17 = smov 0   ;;  %s2103_s18 = smov 0  }
   0xd LB: > { %2382 = sst [smem:[#allocation23_spill]] %s1982_s29  ;;  %s1389_s19 = sadd.s32 4294967295, %s2002_s18   ;;  %s2002_s18 = sphi %s2103_s18, %s32_s18   ;;  %s1998_s17 = sphi %s2101_s17, %s2408_s17   ;;  %s1994_s16 = sphi %s2099_s16, %s2407_s16   ;;  %s1990_s15 = sphi %s2097_s15, %s2406_s15   ;;  %s1986_s30 = sphi %s2095_s30, %s2405_s30   ;;  %s1982_s29 = sphi %s2093_s29, %s2404_s29  }
   0xe   : > { %2383 = sst [smem:[#allocation24_spill]] %s1986_s30  ;;  %s1390_s20 = sadd.s32 4294967294, %s2002_s18  }
   0xf   : > { %2384 = sst [smem:[#allocation25_spill]] %s1990_s15  ;;  %s44_s21 = sadd.s32 1, %s1998_s17 }
  0x10   : > { %2385 = sst [smem:[#allocation26_spill]] %s1998_s17  ;;  %s359_s22 = sadd.s32 1, %s1990_s15 }
  0x11   : > { %2386 = sst [smem:[#allocation27_spill]] %s2002_s18  ;;  %p46_p0 = scmp.ge.s32.totalorder %s44_s21, 2 }
  0x12   : > { %p369_p1 = scmp.ne.s32.totalorder %s1990_s15, %s1986_s30  ;;  %p370_p2 = scmp.eq.s32.totalorder %s1389_s19, 1 }
  0x13   : > { %p375_p3 = scmp.ne.s32.totalorder %s1986_s30, %s1982_s29  ;;  %s2410_s21 = smov (%p46_p0, %s44_s21), 0 }
  0x14   : > { %2387 = sst [smem:[#allocation28_spill]] %s2410_s21  ;;  %p2133_p4 = por %p370_p2, %p369_p1 }
  0x15   : > { %p376_p5 = scmp.eq.s32.totalorder %s1390_s20, 1  ;;  %s354_s24 = ssub.s32 %s1998_s17, %s2410_s21 }
  0x16   : > { %s2388_s23 = scalar_select %p2133_p4, 1, 0 }
  0x17   : > { %p1391_p6 = scmp.ge.s32.totalorder %s2002_s18, 1  ;;  %p357_p7 = scmp.eq.s32.totalorder %s354_s24, 0 }
  0x18   : > { %2389 = sst [smem:[#allocation29_spill]] %s2388_s23  ;;  %p2140_p8 = por %p376_p5, %p375_p3 }
  0x19   : > { %p383_p9 = scmp.lt.s32.totalorder %s2002_s18, 3  ;;  %p2152_p11 = scmp.eq.s32.totalorder %s1389_s19, 0 }
  0x1a   : > { %s2390_s25 = scalar_select %p2140_p8, 1, 0 }
  0x1b   : > { %s2146_s26 = scalar_select %p357_p7, %s1990_s15, %s359_s22  }
  0x1c   : > { %2391 = sst [smem:[#allocation30_spill]] %s2390_s25  ;;  %p2148_p10 = pnand %p1391_p6, %p383_p9 }
  0x1d   : > { %2392 = sst [smem:[#allocation31_spill]] %s2146_s26  ;;  %s2004_s17 = smov [#allocation5]  }
  0x1e   : > { %s2395_s6 = sld [smem:[#allocation32_spill]]  ;;  %p1528_p12 = pneg %p2148_p10 }
  0x1f   : > { %s420_s22 = sshll.u32 %s2004_s17, 4  ;;  %s2397_s8 = sld [smem:[#allocation33_spill]]  ;;  %s421_s22 = int_to_ptr.vmem [resolvable:$true] %s420_s22 }
  0x20   : > { %p2163_p13 = pnand %p2152_p11, %p1528_p12  ;;  %s471_s17 = sshll.u32 %s2364_s11, 4  ;;  %s472_s17 = int_to_ptr.hbm [resolvable:$true] %s471_s17 }
  0x21   : > { %s2005_s25 = smov [#allocation8]   ;;  %s2006_s18 = smov 64  }
  0x22   : > { %s443_s29 = sshll.u32 %s2005_s25, 4  ;;  %s2007_s23 = smov 4   ;;  %s444_s29 = int_to_ptr.vmem [resolvable:$true] %s443_s29 }
  0x23   : > { %s2008_s14 = smov [#allocation11]   ;;  %s2011_s19 = smov [#allocation10]  }
  0x24   : > { %s418_s24 = sshll.u32 %s2395_s6, 4  ;;  %s473_s30 = sshll.u32 %s2008_s14, 4  ;;  %s419_s24 = int_to_ptr.hbm [resolvable:$true] %s418_s24  ;;  %s474_s30 = int_to_ptr.vmem [resolvable:$true] %s473_s30 }
  0x25   : > { %s441_s21 = sshll.u32 %s2397_s8, 4  ;;  %s403_s6 = sshll.u32 %s2358_s5, 4  ;;  %s442_s21 = int_to_ptr.hbm [resolvable:$true] %s441_s21  ;;  %s404_s6 = int_to_ptr.hbm [resolvable:$true] %s403_s6 }
  0x26   : > { %1534 = dma.hbm_to_vmem [thread:$0]  (!%p2163_p13), %s419_s24, 16, %s421_s22, [#allocation6]  }
  0x27   : > { %1540 = dma.hbm_to_vmem [thread:$0]  (!%p2163_p13), %s442_s21, 256, %s444_s29, [#allocation9], %s2006_s18, %s2006_s18, %s2007_s23  }
  0x28   : > { %1546 = dma.hbm_to_vmem [thread:$0]  (!%p2163_p13), %s472_s17, 16, %s474_s30, [#allocation12]  }
  0x29   : > { %s2009_s22 = smov [#allocation2]   ;;  %s430_s8 = sshll.u32 %s2360_s7, 4  ;;  %s431_s8 = int_to_ptr.hbm [resolvable:$true] %s430_s8 }
  0x2a   : > { %s405_s25 = sshll.u32 %s2009_s22, 4  ;;  %s2010_s14 = smov [#allocation7]   ;;  %s406_s25 = int_to_ptr.vmem [resolvable:$true] %s405_s25 }
  0x2b   : > { %1531 = dma.hbm_to_vmem [thread:$0]  (!%p2163_p13), %s404_s6, 256, %s406_s25, [#allocation3], %s2006_s18, %s2006_s18, %s2007_s23  }
  0x2c   : > { %s432_s29 = sshll.u32 %s2010_s14, 4  ;;  %s456_s17 = sshll.u32 %s2362_s9, 4  ;;  %s433_s29 = int_to_ptr.vmem [resolvable:$true] %s432_s29  ;;  %s457_s17 = int_to_ptr.hbm [resolvable:$true] %s456_s17 }
  0x2d   : > { %1537 = dma.hbm_to_vmem [thread:$0]  (!%p2163_p13), %s431_s8, 16, %s433_s29, [#allocation6]  }
  0x2e   : > { %s483_s22 = sshll.u32 %s2365_s12, 4  ;;  %s458_s20 = sshll.u32 %s2011_s19, 4  ;;  %s484_s22 = int_to_ptr.hbm [resolvable:$true] %s483_s22  ;;  %s459_s20 = int_to_ptr.vmem [resolvable:$true] %s458_s20 }
  0x2f   : > { %1543 = dma.hbm_to_vmem [thread:$0]  (!%p2163_p13), %s457_s17, 16, %s459_s20, [#allocation9]  }
  0x30   : > { %s2012_s18 = smov [#allocation13]   ;;  %s495_s14 = sshll.u32 %s2366_s13, 4  ;;  %s496_s14 = int_to_ptr.hbm [resolvable:$true] %s495_s14 }
  0x31   : > { %s485_s23 = sshll.u32 %s2012_s18, 4  ;;  %s2013_s8 = smov [#allocation14]   ;;  %s486_s23 = int_to_ptr.vmem [resolvable:$true] %s485_s23 }
  0x32   : > { %1549 = dma.hbm_to_vmem [thread:$0]  (!%p2163_p13), %s484_s22, 16, %s486_s23, [#allocation12]  }
  0x33   : > { %s497_s29 = sshll.u32 %s2013_s8, 4  ;;  %527 = sbr.rel (%p2148_p10) target bundleno = 1680 (0x690), region = 76  ;;  %s498_s29 = int_to_ptr.vmem [resolvable:$true] %s497_s29 }
  0x34   : > { %1552 = dma.hbm_to_vmem [thread:$0]  (!%p2163_p13), %s496_s14, 16, %s498_s29, [#allocation15]  }
  0x38   : > { %1957 = dma.done.wait (%p2152_p11), [#allocation3], 256  }
  0x39   : > { %1959 = vsyncadd (%p2152_p11), [#allocation3], 4294967040 }
  0x3a   : > { %1961 = dma.done.wait (%p2152_p11), [#allocation6], 32  }
  0x3b   : > { %1963 = vsyncadd (%p2152_p11), [#allocation6], 4294967264 }
  0x3c   : > { %1965 = dma.done.wait (%p2152_p11), [#allocation9], 272  }
  0x3d   : > { %1967 = vsyncadd (%p2152_p11), [#allocation9], 4294967024 }
  0x3e   : > { %1969 = dma.done.wait (%p2152_p11), [#allocation12], 32  }
  0x3f   : > { %1971 = vsyncadd (%p2152_p11), [#allocation12], 4294967264 }
  0x40   : > { %1973 = dma.done.wait (%p2152_p11), [#allocation15], 16  }
  0x41   : > { %1975 = vsyncadd (%p2152_p11), [#allocation15], 4294967280  ;;  %p615_p0 = scmp.lt.s32.totalorder %s1994_s16, 1  ;;  %v1485_v0 = vld [vmem:[%s2356_s3 + $0x8] sm:$0xff]  ;;  %v1484_v1 = vld [vmem:[%s2356_s3] sm:$0xff]  ;;  %vm645_vm0 = vcmask 261120  }
  0x42   : > { %v1483_v2 = vld [vmem:[%s2355_s2 + $0x8] sm:$0xff]  ;;  %v1482_v4 = vld [vmem:[%s2355_s2] sm:$0xff]  ;;  %690 = vmatpush.bf16.msra.mxu1 %v1485_v0  ;;  %vm728_vm1 = vcmask 64512   ;;  %s2014_s30 = smov 104   ;;  %s2015_s21 = smov 120   ;;  %vm761_vm2 = vcmask 1043456  }
  0x43   : > { %s616_s26 = scalar_select %p615_p0, %s1994_s16, 1  ;;  %655 = vmatpush.bf16.msra.mxu0 %v1483_v2  ;;  %v1487_v8 = vld [vmem:[%s2357_s4 + $0x8] sm:$0xff]  ;;  %v1486_v9 = vld [vmem:[%s2357_s4] sm:$0xff]  ;;  %vm1159_vm7 = vcmask 523264  }
  0x44   : > { %720 = vmatpush.bf16.msra.mxu2 %v1487_v8  ;;  %v952_v58 = vld [vmem:[#allocation2] sm:$0xf]  ;;  %s2398_s6 = sld [smem:[#allocation24_spill]]  ;;  %s1479_s8 = sshll.u32 %s1994_s16, 3 }
  0x45   : > { %s1411_s27 = sshll.u32 %s616_s26, 3  ;;  %v957_v59 = vsel %vm761_vm2, %v952_v58, 0 }
  0x46   : > { %s625_s17 = scalar_lea.vmem %s2354_s1, %s1411_s27  ;;  %s621_s22 = scalar_lea.vmem %s2353_s0, %s1411_s27  ;;  %691 = vmatpush.bf16.msra.mxu1 %v1484_v1 }
  0x47   : > { %v663_v3 = vld [vmem:[%s625_s17] sm:$0xff]  ;;  %656 = vmatpush.bf16.msra.mxu0 %v1482_v4  ;;  %s2016_s17 = smov 112   ;;  %s2399_s27 = sld [smem:[#allocation34_spill]] }
  0x48   : > { %v2246_v5 = vld [vmem:[%s621_s22] sm:$0xff]  ;;  %v664_v6 = vpack.c.bf16 %v663_v3, %v663_v3  ;;  %721 = vmatpush.bf16.msra.mxu2 %v1486_v9 }
  0x49   : > { %v628_v7 = vpack.c.bf16 %v2246_v5, %v2246_v5 }
  0x4a   : > { %1430 = vmatmul.msk.bf16.vlgmr.msra.gmra.mxu1 %vm645_vm0, %v664_v6  ;;  %s612_s25 = sand.u32 1, %s2398_s6  }
  0x4b   : > { %1421 = vmatmul.msk.bf16.vlgmr.msra.gmra.mxu0 %vm645_vm0, %v628_v7  ;;  %1439 = vmatmul.msk.bf16.vlgmr.msra.gmra.mxu2 %vm645_vm0, %v664_v6  ;;  %s1410_s14 = sshll.u32 %s612_s25, 3  ;;  %s1211_s16 = scalar_lea.sflag [#allocation4], %s612_s25 }
  0x4d   : > { %s1924_s28 = scalar_lea.hbm %s2399_s27, 16 }
  0xc7   : > { %v693_v10 = vpop.f32.mrf.mxu1 }
  0xc8   : > { %v658_v11 = vpop.f32.mrf.mxu0  ;;  %v697_v12 = vpack.c.bf16 %v693_v10, %v693_v10 }
  0xc9   : > { %v662_v13 = vpack.c.bf16 %v658_v11, %v658_v11 }
  0xca   : > { %v784_v14 = vunpack.c.l.b16 %v697_v12  ;;  %v733_v15 = vsel %vm728_vm1, %v697_v12, 0 }
  0xcb   : > { %v779_v16 = vunpack.c.l.b16 %v662_v13  ;;  %742 = vmatpush.bf16.xpose.msra.mxu3 %v733_v15 }
  0xcc   : > { %v785_v17 = vpack.c.b16 %v784_v14, %v784_v14 }
  0xcd   : > { %v780_v18 = vpack.c.b16 %v779_v16, %v779_v16 }
  0xce   : > { %897 = vrot.lane.b32.xlu1 %v785_v17, %s2014_s30  ;;  %786 = vrot.lane.b32.xlu0 %v785_v17, %s2015_s21  ;;  %v723_v25 = vpop.f32.mrf.mxu2 }
  0xcf   : > { %v695_v19 = vpop.f32.mrf.mxu1  ;;  %895 = vrot.lane.b32.xlu2 %v780_v18, %s2014_s30  ;;  %v727_v26 = vpack.c.bf16 %v723_v25, %v723_v25  ;;  %v976_v25 = vld [vmem:[#allocation2 + $0x4] sm:$0xf] }
  0xd0   : > { %v660_v20 = vpop.f32.mrf.mxu0 }
  0xd1   : > { %v818_v28 = vunpack.c.l.b16 %v727_v26  ;;  %v763_v29 = vsel %vm761_vm2, %v727_v26, 0  ;;  %v981_v26 = vsel %vm761_vm2, %v976_v25, 0 }
  0xd2   : > { %1440 = vmatmul.msk.bf16.vlgmr.msra.gmra.mxu3 %vm728_vm1, %v662_v13  ;;  %772 = vmatpush.bf16.msrb.mxu0 %v763_v29 }
  0xd3   : > { %v819_v32 = vpack.c.b16 %v818_v28, %v818_v28 }
  0xd6   : > { %843 = vrot.lane.b32.xlu1 %v785_v17, %s2016_s17  ;;  %781 = vrot.lane.b32.xlu0 %v780_v18, %s2015_s21  ;;  %v725_v34 = vpop.f32.mrf.mxu2 }
  0xd7   : > { %841 = vrot.lane.b32.xlu2 %v780_v18, %s2016_s17 }
  0xdf   : > { %820 = vrot.lane.b32.xlu2 %v819_v32, %s2015_s21 }
 0x129   : > { %v896_v27 = vpop.permute.xlu2 %895 }
 0x131   : > { %v842_v35 = vpop.permute.xlu2 %841 }
 0x139   : > { %v821_v45 = vpop.permute.xlu2 %820 }
 0x13a   : > { %v826_v46 = vsel %vm761_vm2, %v821_v45, 0 }
 0x13b   : > { %835 = vmatpush.bf16.msrb.mxu2 %v826_v46 }
 0x140   : > { %v898_v21 = vpop.permute.xlu1 %897  ;;  %v787_v22 = vpop.permute.xlu0 %786 }
 0x141   : > { %v903_v23 = vsel %vm728_vm1, %v898_v21, 0  ;;  %v792_v24 = vsel %vm728_vm1, %v787_v22, 0 }
 0x142   : > { %801 = vmatpush.bf16.xpose.msrb.mxu1 %v792_v24 }
 0x148   : > { %v844_v30 = vpop.permute.xlu1 %843  ;;  %v782_v31 = vpop.permute.xlu0 %781 }
 0x149   : > { %1442 = vmatmul.msk.bf16.vlgmr.msrb.gmra.mxu1 %vm728_vm1, %v782_v31  ;;  %v849_v33 = vsel %vm728_vm1, %v844_v30, 0 }
 0x14a   : > { %912 = vmatpush.bf16.xpose.msra.mxu1 %v903_v23  ;;  %858 = vmatpush.bf16.xpose.msrb.mxu3 %v849_v33  ;;  %v1000_v23 = vld [vmem:[#allocation2 + $0x8] sm:$0xf] }
 0x14b   : > { %v1005_v24 = vsel %vm761_vm2, %v1000_v23, 0  ;;  %v1637_v23 = vld [vmem:[#allocation7] ss:$0 sm:$0xff] }
 0x151   : > { %1444 = vmatmul.msk.bf16.vlgmr.msrb.gmra.mxu3 %vm728_vm1, %v842_v35 }
 0x152   : > { %966 = vmatpush.bf16.msra.mxu3 %v957_v59  ;;  %1014 = vmatpush.bf16.msrb.mxu1 %v1005_v24 }
 0x155   : > { %v744_v36 = vpop.f32.mrf.mxu3 }
 0x156   : > { %v748_v37 = vsel %vm728_vm1, %v744_v36, -inf }
 0x157   : > { %749 = vmax.xlane.f32.xlu1 %v748_v37 }
 0x159   : > { %1446 = vmatmul.msk.bf16.vlgmr.msra.gmra.mxu1 %vm728_vm1, %v896_v27  ;;  %v1024_v27 = vld [vmem:[#allocation2 + $0xc] sm:$0xf] }
 0x15a   : > { %v1029_v28 = vsel %vm761_vm2, %v1024_v27, 0 }
 0x15d   : > { %v746_v38 = vpop.f32.mrf.mxu3 }
 0x170   : > { %928 = vrot.lane.b32.xlu1 %v819_v32, %s2014_s30  ;;  %s1222_s30 = scalar_lea.hbm %s2399_s27, %s1479_s8 }
 0x171   : > { %s1226_s24 = sshll.u32 %s1222_s30, 4  ;;  %s1227_s24 = int_to_ptr.hbm [resolvable:$true] %s1226_s24 }
 0x172   : > { %s1918_s22 = sshra.s32 %s1227_s24, 4  ;;  %s1919_s22 = int_to_ptr.hbm [resolvable:$true] %s1918_s22 }
 0x173   : > { %s1920_s19 = scalar_lea.hbm %s1919_s22, 8  ;;  %p1925_p5 = scmp.lt.s32.totalorder %s1919_s22, %s2399_s27 }
 0x174   : > { %p1921_p1 = scmp.ne.s32.totalorder %s1919_s22, %s1920_s19  ;;  %p1926_p6 = scmp.lt.s32.totalorder %s1924_s28, %s1920_s19 }
 0x176   : > { %p1922_p2 = pnand %p1921_p1, %p2133_p4  ;;  %p1927_p7 = por %p1926_p6, %p1925_p5 }
 0x178   : > { %p1923_p3 = pneg %p1922_p2 }
 0x17a   : > { %p1928_p9 = pnand %p1927_p7, %p1923_p3 }
 0x1c6   : > { %v803_v39 = vpop.f32.mrf.mxu1 }
 0x1c7   : > { %v807_v40 = vsel %vm728_vm1, %v803_v39, -inf }
 0x1c8   : > { %808 = vmax.xlane.f32.xlu0 %v807_v40 }
 0x1ca   : > { %v750_v41 = vpop.xlane.xlu1 %749 }
 0x1cb   : > { %v751_v42 = vsub.f32 %v744_v36, %v750_v41 }
 0x1cd   : > { %v752_v43 = vmul.f32 1.442695, %v751_v42 }
 0x1ce   : > { %v805_v44 = vpop.f32.mrf.mxu1 }
 0x1cf   : > { %1642 = vpow2.f32 %v752_v43 }
 0x1d4   : > { %v860_v47 = vpop.f32.mrf.mxu3 }
 0x1d5   : > { %v1643_v48 = vpop.eup %1642  ;;  %v864_v49 = vsel %vm728_vm1, %v860_v47, -inf }
 0x1d6   : > { %v914_v50 = vpop.f32.mrf.mxu1  ;;  %865 = vmax.xlane.f32.xlu0 %v864_v49  ;;  %v757_v51 = vpack.c.bf16 %v1643_v48, %v1643_v48  ;;  %v754_v54 = vsel %vm728_vm1, %v1643_v48, 0.0 }
 0x1d7   : > { %v918_v52 = vsel %vm728_vm1, %v914_v50, -inf }
 0x1d8   : > { %919 = vmax.xlane.f32.xlu2 %v918_v52  ;;  %1441 = vmatmul.msk.bf16.vlgmr.msrb.gmra.mxu0 %vm728_vm1, %v757_v51 }
 0x1dc   : > { %v862_v53 = vpop.f32.mrf.mxu3 }
 0x1de   : > { %v916_v55 = vpop.f32.mrf.mxu1  ;;  %755 = vadd.xlane.f32.xlu0 %v754_v54 }
 0x1e2   : > { %v929_v56 = vpop.permute.xlu1 %928 }
 0x1e3   : > { %v934_v57 = vsel %vm761_vm2, %v929_v56, 0 }
 0x1e4   : > { %943 = vmatpush.bf16.msra.mxu2 %v934_v57 }
 0x1f0   : > { %874 = vrot.lane.b32.xlu2 %v819_v32, %s2016_s17  ;;  %s614_s17 = scalar_lea.vmem [#allocation16], %s1410_s14 }
 0x1f1   : > { %s1224_s15 = sshll.u32 %s614_s17, 4  ;;  %s1225_s15 = int_to_ptr.vmem [resolvable:$true] %s1224_s15 }
 0x23b   : > { %v809_v60 = vpop.xlane.xlu0 %808 }
 0x23c   : > { %v810_v61 = vsub.f32 %v803_v39, %v809_v60  ;;  %v2017_v60 = vmov 32.0  }
 0x23e   : > { %v811_v62 = vmul.f32 1.442695, %v810_v61 }
 0x240   : > { %1644 = vpow2.f32 %v811_v62 }
 0x246   : > { %v1645_v63 = vpop.eup %1644 }
 0x247   : > { %v816_v0 = vpack.c.bf16 %v1645_v63, %v1645_v63  ;;  %v813_v22 = vsel %vm728_vm1, %v1645_v63, 0.0 }
 0x249   : > { %1443 = vmatmul.msk.bf16.vlgmr.msrb.gmra.mxu2 %vm728_vm1, %v816_v0  ;;  %v866_v1 = vpop.xlane.xlu0 %865 }
 0x24a   : > { %v867_v2 = vsub.f32 %v860_v47, %v866_v1  ;;  %1038 = vmatpush.bf16.msrb.mxu2 %v1029_v28  ;;  %v1491_v28 = vld [vmem:[%s2363_s10 + $0x8] sm:$0xff] }
 0x24b   : > { %v920_v3 = vpop.xlane.xlu2 %919 }
 0x24c   : > { %v868_v4 = vmul.f32 1.442695, %v867_v2  ;;  %v921_v6 = vsub.f32 %v914_v50, %v920_v3 }
 0x24e   : > { %1646 = vpow2.f32 %v868_v4  ;;  %v922_v7 = vmul.f32 1.442695, %v921_v6 }
 0x250   : > { %1648 = vpow2.f32 %v922_v7 }
 0x251   : > { %v756_v8 = vpop.xlane.xlu0 %755 }
 0x252   : > { %1650 = vrcp.f32 %v756_v8  ;;  %v1489_v8 = vld [vmem:[#allocation8 + $0x8] sm:$0xff] }
 0x253   : > { %v875_v9 = vpop.permute.xlu2 %874  ;;  %1114 = vmatpush.bf16.msrb.mxu3 %v1489_v8 }
 0x254   : > { %v1647_v10 = vpop.eup %1646  ;;  %v880_v11 = vsel %vm761_vm2, %v875_v9, 0  ;;  %v1488_v9 = vld [vmem:[#allocation8] sm:$0xff] }
 0x255   : > { %v873_v12 = vpack.c.bf16 %v1647_v10, %v1647_v10  ;;  %v774_v13 = vpop.f32.mrf.mxu0  ;;  %889 = vmatpush.bf16.msra.mxu0 %v880_v11  ;;  %v870_v14 = vsel %vm728_vm1, %v1647_v10, 0.0  ;;  %v1493_v10 = vld [vmem:[%s2363_s10 + $0x18] sm:$0xff] }
 0x256   : > { %v1649_v15 = vpop.eup %1648  ;;  %871 = vadd.xlane.f32.xlu1 %v870_v14 }
 0x257   : > { %v927_v16 = vpack.c.bf16 %v1649_v15, %v1649_v15  ;;  %v924_v17 = vsel %vm728_vm1, %v1649_v15, 0.0  ;;  %1115 = vmatpush.bf16.msrb.mxu3 %v1488_v9 }
 0x258   : > { %v1651_v18 = vpop.eup %1650  ;;  %925 = vadd.xlane.f32.xlu0 %v924_v17  ;;  %1445 = vmatmul.msk.bf16.vlgmr.msra.gmra.mxu0 %vm728_vm1, %v873_v12 }
 0x259   : > { %v950_v19 = vmul.f32 %v1651_v18, %v774_v13  ;;  %1447 = vmatmul.msk.bf16.vlgmr.msra.gmra.mxu2 %vm728_vm1, %v927_v16  ;;  %990 = vmatpush.bf16.msrb.mxu0 %v981_v26  ;;  %v1492_v13 = vld [vmem:[%s2363_s10 + $0x10] sm:$0xff] }
 0x25b   : > { %v951_v20 = vpack.c.bf16 %v950_v19, %v950_v19 }
 0x25d   : > { %v776_v21 = vpop.f32.mrf.mxu0  ;;  %1448 = vmatmul.msk.bf16.vlgmr.msra.gmra.mxu3 %vm728_vm1, %v951_v20  ;;  %1167 = vmatpush.bf16.msra.mxu0 %v1493_v10 }
 0x25e   : > { %v1636_v21 = vld [vmem:[#allocation5] ss:$0 sm:$0xff] }
 0x260   : > { %814 = vadd.xlane.f32.xlu0 %v813_v22 }
 0x261   : > { %1168 = vmatpush.bf16.msra.mxu0 %v1492_v13 }
 0x265   : > { %1169 = vmatpush.bf16.msra.mxu0 %v1491_v28 }
 0x2c9   : > { %v872_v30 = vpop.xlane.xlu1 %871 }
 0x2ca   : > { %1652 = vrcp.f32 %v872_v30  ;;  %v1638_v30 = vld [vmem:[#allocation10] ss:$0 sm:$0xff] }
 0x2cb   : > { %v926_v29 = vpop.xlane.xlu0 %925 }
 0x2cc   : > { %v837_v31 = vpop.f32.mrf.mxu2 }
 0x2d0   : > { %v1653_v34 = vpop.eup %1652 }
 0x2d3   : > { %v815_v32 = vpop.xlane.xlu0 %814 }
 0x2d4   : > { %1654 = vrcp.f32 %v815_v32  ;;  %v839_v33 = vpop.f32.mrf.mxu2 }
 0x2d5   : > { %v891_v35 = vpop.f32.mrf.mxu0  ;;  %1656 = vrcp.f32 %v926_v29  ;;  %v1490_v29 = vld [vmem:[%s2363_s10] sm:$0xff] }
 0x2d6   : > { %v998_v36 = vmul.f32 %v1653_v34, %v891_v35  ;;  %1658 = vrcp.f32 %v2017_v60  ;;  %1170 = vmatpush.bf16.msra.mxu0 %v1490_v29 }
 0x2d8   : > { %v999_v37 = vpack.c.bf16 %v998_v36, %v998_v36  ;;  %v1639_v36 = vld [vmem:[#allocation11] ss:$0 sm:$0xff] }
 0x2da   : > { %v1655_v38 = vpop.eup %1654  ;;  %1450 = vmatmul.msk.bf16.vlgmr.msrb.gmra.mxu1 %vm728_vm1, %v999_v37 }
 0x2db   : > { %v974_v39 = vmul.f32 %v1655_v38, %v837_v31  ;;  %v1657_v40 = vpop.eup %1656 }
 0x2dc   : > { %v945_v41 = vpop.f32.mrf.mxu2  ;;  %v1659_v61 = vpop.eup %1658 }
 0x2dd   : > { %v975_v42 = vpack.c.bf16 %v974_v39, %v974_v39  ;;  %v1022_v43 = vmul.f32 %v1657_v40, %v945_v41  ;;  %v893_v44 = vpop.f32.mrf.mxu0  ;;  %v1051_v62 = vmul.f32 32.0, %v1659_v61  ;;  %vm1055_vm3 = vweird.f32 %v1659_v61 }
 0x2df   : > { %v1023_v45 = vpack.c.bf16 %v1022_v43, %v1022_v43  ;;  %1449 = vmatmul.msk.bf16.vlgmr.msrb.gmra.mxu0 %vm728_vm1, %v975_v42  ;;  %v1052_v63 = vsub.f32 1.0, %v1051_v62 }
 0x2e0   : > { %v968_v46 = vpop.f32.mrf.mxu3 }
 0x2e1   : > { %1451 = vmatmul.msk.bf16.vlgmr.msrb.gmra.mxu2 %vm728_vm1, %v1023_v45  ;;  %v972_v51 = vadd.f32 %v968_v46, %v2246_v5  ;;  %v1053_v0 = vmul.f32 %v1659_v61, %v1052_v63 }
 0x2e3   : > { %v1054_v1 = vadd.f32 %v1659_v61, %v1053_v0 }
 0x2e4   : > { %v947_v47 = vpop.f32.mrf.mxu2 }
 0x2e5   : > { %v1056_v2 = vsel %vm1055_vm3, %v1659_v61, %v1054_v1 }
 0x2e8   : > { %v970_v48 = vpop.f32.mrf.mxu3 }
 0x357   : > { %v1016_v49 = vpop.f32.mrf.mxu1 }
 0x35c   : > { %v992_v50 = vpop.f32.mrf.mxu0 }
 0x35d   : > { %v996_v52 = vadd.f32 %v992_v50, %v972_v51 }
 0x35f   : > { %v1018_v53 = vpop.f32.mrf.mxu1  ;;  %v1020_v54 = vadd.f32 %v1016_v49, %v996_v52 }
 0x364   : > { %v994_v55 = vpop.f32.mrf.mxu0  ;;  %v1040_v56 = vpop.f32.mrf.mxu2 }
 0x365   : > { %v1044_v57 = vadd.f32 %v1040_v56, %v1020_v54  ;;  %v1640_v56 = vld [vmem:[#allocation13] ss:$0 sm:$0xff] }
 0x367   : > { %v1047_v58 = vsel %vm645_vm0, %v1044_v57, 0.0 }
 0x368   : > { %1048 = vadd.xlane.f32.xlu2 %v1047_v58 }
 0x36c   : > { %v1042_v59 = vpop.f32.mrf.mxu2 }
 0x36d   : > { %v1641_v59 = vld [vmem:[#allocation14] ss:$0 sm:$0xff] }
 0x3db   : > { %v1049_v5 = vpop.xlane.xlu2 %1048 }
 0x3dc   : > { %v1057_v3 = vmul.f32 %v1056_v2, %v1049_v5 }
 0x3de   : > { %v1058_v4 = vsub.f32 %v1044_v57, %v1057_v3 }
 0x3e0   : > { %v1059_v6 = vmul.f32 %v1058_v4, %v1058_v4 }
 0x3e2   : > { %v1060_v7 = vsel %vm645_vm0, %v1059_v6, 0.0 }
 0x3e3   : > { %1061 = vadd.xlane.f32.xlu0 %v1060_v7 }
 0x456   : > { %v1062_v11 = vpop.xlane.xlu0 %1061 }
 0x457   : > { %v1063_v12 = vmul.f32 %v1062_v11, %v1056_v2 }
 0x459   : > { %v1064_v14 = vadd.f32 1e-06, %v1063_v12 }
 0x45b   : > { %1660 = vrsqrt.f32 %v1064_v14  ;;  %vm1071_vm5 = vweird.f32 %v1064_v14 }
 0x461   : > { %v1661_v15 = vpop.eup %1660 }
 0x462   : > { %v1066_v16 = vmul.f32 %v1661_v15, %v1064_v14  ;;  %vm1072_vm4 = vweird.f32 %v1661_v15 }
 0x463   : > { %vm1073_vm6 = vmor %vm1071_vm5, %vm1072_vm4 }
 0x464   : > { %v1067_v17 = vmul.f32 %v1661_v15, %v1066_v16 }
 0x466   : > { %v1068_v18 = vmul.f32 0.5, %v1067_v17 }
 0x468   : > { %v1069_v19 = vsub.f32 1.5, %v1068_v18 }
 0x46a   : > { %v1070_v20 = vmul.f32 %v1661_v15, %v1069_v19 }
 0x46c   : > { %v1074_v22 = vsel %vm1073_vm6, %v1661_v15, %v1070_v20 }
 0x46d   : > { %v1075_v24 = vmul.f32 %v1074_v22, %v1058_v4 }
 0x46f   : > { %v1079_v25 = vmul.f32 %v1636_v21, %v1075_v24 }
 0x471   : > { %v1083_v26 = vadd.f32 %v1637_v23, %v1079_v25 }
 0x473   : > { %v1084_v27 = vpack.c.bf16 %v1083_v26, %v1083_v26 }
 0x475   : > { %1460 = vmatmul.msk.bf16.vlgmr.msrb.gmra.mxu3 %vm645_vm0, %v1084_v27 }
 0x4f8   : > { %v1117_v31 = vpop.f32.mrf.mxu3 }
 0x4f9   : > { %v1118_v32 = vadd.f32 %v1638_v30, %v1117_v31 }
 0x4fb   : > { %v1121_v33 = vmax.f32 %v1118_v32, 0.0 }
 0x4fd   : > { %v1122_v34 = vpack.c.bf16 %v1121_v33, %v1121_v33 }
 0x4ff   : > { %1477 = vmatmul.msk.bf16.vlgmr.msra.gmra.mxu0 %vm1159_vm7, %v1122_v34 }
 0x500   : > { %v1119_v35 = vpop.f32.mrf.mxu3 }
 0x57c   : > { %v1172_v37 = vpop.f32.mrf.mxu0 }
 0x57d   : > { %v1173_v38 = vadd.f32 %v1639_v36, %v1172_v37 }
 0x57f   : > { %v1176_v39 = vadd.f32 %v1173_v38, %v1083_v26 }
 0x581   : > { %v1179_v40 = vsel %vm645_vm0, %v1176_v39, 0.0 }
 0x582   : > { %1180 = vadd.xlane.f32.xlu0 %v1179_v40 }
 0x584   : > { %v1174_v41 = vpop.f32.mrf.mxu0 }
 0x5f5   : > { %v1181_v42 = vpop.xlane.xlu0 %1180 }
 0x5f6   : > { %v1182_v43 = vmul.f32 %v1181_v42, %v1056_v2 }
 0x5f8   : > { %v1183_v44 = vsub.f32 %v1176_v39, %v1182_v43 }
 0x5fa   : > { %v1184_v45 = vmul.f32 %v1183_v44, %v1183_v44 }
 0x5fc   : > { %v1185_v46 = vsel %vm645_vm0, %v1184_v45, 0.0 }
 0x5fd   : > { %1186 = vadd.xlane.f32.xlu0 %v1185_v46 }
 0x670   : > { %v1187_v47 = vpop.xlane.xlu0 %1186 }
 0x671   : > { %v1188_v48 = vmul.f32 %v1187_v47, %v1056_v2 }
 0x673   : > { %v1189_v49 = vadd.f32 1e-06, %v1188_v48 }
 0x675   : > { %1662 = vrsqrt.f32 %v1189_v49  ;;  %vm1196_vm9 = vweird.f32 %v1189_v49 }
 0x67b   : > { %v1663_v50 = vpop.eup %1662 }
 0x67c   : > { %v1191_v51 = vmul.f32 %v1663_v50, %v1189_v49  ;;  %vm1197_vm8 = vweird.f32 %v1663_v50 }
 0x67d   : > { %vm1198_vm10 = vmor %vm1196_vm9, %vm1197_vm8 }
 0x67e   : > { %v1192_v52 = vmul.f32 %v1663_v50, %v1191_v51 }
 0x680   : > { %v1193_v53 = vmul.f32 0.5, %v1192_v52 }
 0x682   : > { %v1194_v54 = vsub.f32 1.5, %v1193_v53 }
 0x684   : > { %v1195_v55 = vmul.f32 %v1663_v50, %v1194_v54 }
 0x686   : > { %v1199_v57 = vsel %vm1198_vm10, %v1663_v50, %v1195_v55 }
 0x687   : > { %v1200_v58 = vmul.f32 %v1199_v57, %v1183_v44 }
 0x689   : > { %v1204_v60 = vmul.f32 %v1640_v56, %v1200_v58 }
 0x68b   : > { %v1208_v61 = vadd.f32 %v1641_v59, %v1204_v60 }
 0x68d   : > { %1209 = vst.msk [vmem:[%s614_s17] sm:$0xff] %vm645_vm0, %v1208_v61 }
 0x68e   : > { %1931 = shalt.err (!%p1928_p9)
}
 0x68f   : > { %1526 = dma.vmem_to_hbm [thread:$0]  (%p2133_p4), %s1225_s15, 128, %s1227_s24, %s1211_s16  }
 0x690 PF: > { %s2401_s25 = sld [smem:[#allocation27_spill]] }
 0x691   : > { %s2402_s14 = sld [smem:[#allocation23_spill]] }
 0x696   : > { %p1573_p10 = scmp.ge.s32.totalorder %s2401_s25, 2 }
 0x697   : > { %s1238_s29 = sand.u32 1, %s2402_s14  }
 0x698   : > { %p1554_p11 = pnand %p1573_p10, %p2140_p8  ;;  %s1239_s26 = scalar_lea.sflag [#allocation4], %s1238_s29 }
 0x69a   : > { %p1555_p12 = pneg %p1554_p11 }
 0x69c   : > { %1977 = dma.done.wait (%p1555_p12), %s1239_s26, 128  }
 0x69d   : > { %1979 = vsyncadd (%p1555_p12), %s1239_s26, 4294967168  ;;  %s32_s18 = sadd.s32 1, %s2401_s25   ;;  %s2404_s29 = sld [smem:[#allocation24_spill]] }
 0x69e   : > { %p29_p13 = scmp.ge.s32.totalorder %s32_s18, 4   ;;  %s2405_s30 = sld [smem:[#allocation25_spill]] }
 0x69f   : > { %s2406_s15 = sld [smem:[#allocation31_spill]] }
 0x6a0   : > { %s2407_s16 = sld [smem:[#allocation26_spill]]  ;;  %31 = sbr.rel (!%p29_p13) target bundleno = 13 (0xd), region = 147 }
 0x6a1   : > { %s2408_s17 = sld [smem:[#allocation28_spill]] }
 0x6a5   :  { %1245 = vsyncpa [#allocation3], 1 }
 0x6a6   :  { %1247 = vsyncpa [#allocation3 + $0x1], 1 }
 0x6a7   :  { %1248 = vsyncpa [#allocation6], 1 }
 0x6a8   :  { %1249 = vsyncpa [#allocation9], 1 }
 0x6a9   :  { %1250 = vsyncpa [#allocation12], 1 }
 0x6aa   :  { %1251 = vsyncpa [#allocation15], 1 }
 0x6ab   :  { %1252 = vsyncpa [#allocation4], 1 }
 0x6ac   :  { %1254 = vsyncpa [#allocation4 + $0x1], 1 }

</bundles_post_ra>
